<compile_context>
chip_gen: v5e
topology: v5e:2x2
jax: 0.10.0
libtpu: 0.0.40
codegen_flags: <defaults>
</compile_context>

<pallas_src>
import math

import jax
import jax.numpy as jnp
from jax.experimental import pallas as pl
from jax.experimental.pallas import tpu as pltpu


# ----------------------------------------------------------------------------
# Fused kernel: img_linear -> align -> wq -> softmax(seq) -> tanh fusion ->
#               (W folded into) classifier, for a block of BB batch elements
# ----------------------------------------------------------------------------
def fusion_classifier_kernel(text_ref, img_ref,
                             w_img_ref, b_img_ref,
                             w_align_ref, b_align_ref,
                             wq_w_ref, wq_b_ref,
                             wc_ref, bc_ref,
                             out_ref):
    BB, S, H = text_ref.shape
    _, P, D = img_ref.shape            # P already padded to a multiple of 16
    L = out_ref.shape[-1]
    f32 = jnp.float32
    bf16 = jnp.bfloat16

    t = text_ref[...]                                          # (BB, S, H) f32

    # ---- img_linear: batch block folded into the MXU M dimension ----------
    # img arrives as bf16; P padded so this reshape (and the one back) is
    # layout-free.
    img2 = img_ref[...].reshape(BB * P, D)                     # (BB*P, D) bf16
    img_lin = jnp.dot(img2, w_img_ref[...], preferred_element_type=f32)
    img_lin = img_lin.reshape(BB, P, H) + b_img_ref[...]       # (BB, P, H) f32

    # ---- align: img_al[b,s,h] = sum_p w_align[s,p]*img_lin[b,p,h] + b_al[s]
    # (padded P columns of w_align are zero, so padded patch rows drop out)
    wa = jnp.broadcast_to(w_align_ref[...], (BB, S, P))        # bf16, tiny
    img_al = jnp.einsum("bsp,bph->bsh", wa, img_lin.astype(bf16),
                        preferred_element_type=f32)
    img_al = img_al + b_align_ref[...]                         # (BB, S, H) f32

    # ---- wq (Linear H->1): VPU multiply + lane reduction (MXU stays free) --
    wq = wq_w_ref[...]                                         # (1, H) f32
    wq_b = wq_b_ref[0]                                         # SMEM scalar
    scale = 1.0 / math.sqrt(H)                                 # np.sqrt(hidden)
    q_t = (jnp.sum(t * wq, axis=-1, keepdims=True) + wq_b) * scale       # (BB,S,1)
    q_i = (jnp.sum(img_al * wq, axis=-1, keepdims=True) + wq_b) * scale  # (BB,S,1)

    def softmax_seq(x):  # softmax over the sequence axis, per example
        m = jnp.max(x, axis=1, keepdims=True)
        e = jnp.exp(x - m)
        return e / jnp.sum(e, axis=1, keepdims=True)

    alpha_1 = softmax_seq(q_t)                                 # (BB, S, 1)
    alpha_2 = softmax_seq(q_i)                                 # (BB, S, 1)

    fused = jnp.tanh(alpha_1 * t + alpha_2 * img_al)           # (BB, S, H) f32

    # ---- classifier with the W projection folded in ------------------------
    # Wrapper precomputes W_eff[l,s,h] = sum_k ww[h,k]*wc[l,s,k] and
    # b_eff[l] = sum_{s,k} bw[k]*wc[l,s,k] + bc[l], so
    #   logits[b,l] = sum_{s,h} fused[b,s,h] * W_eff[l,s,h] + b_eff[l].
    # L is small & static -> per-label VPU reduction (no (S,H)->(S*H) relayout,
    # no MXU N=L matmul).  Logits assembled with a single concatenate.
    cols = []
    for l in range(L):
        p = fused * wc_ref[l][None]                            # (BB, S, H)
        r = jnp.sum(jnp.sum(p, axis=2, keepdims=True),
                    axis=1, keepdims=True)                     # (BB, 1, 1)
        cols.append(r + bc_ref[l])
    out_ref[...] = jnp.concatenate(cols, axis=2)               # (BB, 1, L)


# ----------------------------------------------------------------------------
# Per-generation defaults (batch block, scoped VMEM request)
# ----------------------------------------------------------------------------
def _chip_defaults():
    vmem = None
    try:
        info = pltpu.get_tpu_info()
        vmem = getattr(info, "vmem_capacity_bytes", None)
    except Exception:
        vmem = None
    if vmem is not None and vmem <= 96 * 1024 * 1024:
        # v7x-class: 64 MiB VMEM per TensorCore, each TC holds its own weights
        return 8, 40 * 1024 * 1024
    if vmem is not None:
        # v5e / v6e: 128 MiB VMEM
        return 16, 80 * 1024 * 1024
    # unknown backend: conservative
    return 8, 48 * 1024 * 1024


# ----------------------------------------------------------------------------
# pallas_call builder + wrapper
# ----------------------------------------------------------------------------
def _build_fusion_call(Bp, S, H, P, D, L, BB, vmem_limit, single_buffer_weights):
    # Constant-index weights: request single buffering (they are never
    # re-fetched, so double-buffering them just wastes VMEM).
    wkw = dict(pipeline_mode=pl.Buffered(1)) if single_buffer_weights else {}

    def batched(*blk):
        n = len(blk)
        return pl.BlockSpec(blk, lambda b: (b,) + (0,) * (n - 1))

    def const(*blk, **kw):
        n = len(blk)
        return pl.BlockSpec(blk, lambda b: (0,) * n, **kw)

    smem = pl.BlockSpec(memory_space=pltpu.MemorySpace.SMEM)

    return pl.pallas_call(
        fusion_classifier_kernel,
        out_shape=jax.ShapeDtypeStruct((Bp, 1, L), jnp.float32),
        grid=(Bp // BB,),
        in_specs=[
            batched(BB, S, H),        # text block, f32
            batched(BB, P, D),        # image block, bf16 (P padded)
            const(D, H, **wkw),       # img_linear weight (in,out), bf16
            const(1, H, **wkw),       # img_linear bias, f32
            const(S, P, **wkw),       # align weight (out,in)=(S,P_pad), bf16
            const(S, 1, **wkw),       # align bias, f32
            const(1, H, **wkw),       # wq weight, f32 (VPU path)
            smem,                     # wq bias (1,), SMEM
            const(L, S, H, **wkw),    # folded classifier weight W_eff, f32
            smem,                     # folded classifier bias (L,), SMEM
        ],
        out_specs=pl.BlockSpec((BB, 1, L), lambda b: (b, 0, 0)),
        compiler_params=pltpu.CompilerParams(
            dimension_semantics=("parallel",),   # batch-block axis -> megacore
            vmem_limit_bytes=vmem_limit,
        ),
    )


def bert_resnet_additive_forward(text_feature, img_feature, params, *,
                                 block_b=None):
    text_feature = text_feature.astype(jnp.float32)
    B, S, H = text_feature.shape
    _, P, D = img_feature.shape
    L = params["wc"].shape[-1]

    auto_bb, vmem_limit = _chip_defaults()
    BB = auto_bb if block_b is None else block_b
    BB = max(1, min(BB, B))
    n_blk = -(-B // BB)
    Bp = n_blk * BB

    bf16, f32 = jnp.bfloat16, jnp.float32

    # Pad the patch axis (49 in the real model) to a multiple of 16 so the
    # in-kernel reshapes across it never cross (sublane) tile boundaries.
    P_pad = -(-P // 16) * 16
    img_bf16 = img_feature.astype(bf16)
    w_align = params["w_align"].astype(bf16)                   # (S, P)
    if P_pad != P:
        img_bf16 = jnp.pad(img_bf16, ((0, 0), (0, P_pad - P), (0, 0)))
        w_align = jnp.pad(w_align, ((0, 0), (0, P_pad - P)))

    if Bp != B:  # pad the batch so it tiles evenly; padded rows are dropped
        text_feature = jnp.pad(text_feature, ((0, Bp - B), (0, 0), (0, 0)))
        img_bf16 = jnp.pad(img_bf16, ((0, Bp - B), (0, 0), (0, 0)))

    # Fold the (linear) W projection into the (linear) classifier.
    wc3 = params["wc"].reshape(S, H, L).astype(f32)            # (S, H_out, L)
    ww = params["ww"].astype(f32)                              # (H_in, H_out)
    w_eff = jnp.einsum("hk,skl->lsh", ww, wc3)                 # (L, S, H)
    b_eff = jnp.einsum("k,skl->l", params["bw"].astype(f32), wc3) \
        + params["bc"].astype(f32)                             # (L,)

    args = (
        text_feature,                                          # (Bp, S, H) f32
        img_bf16,                                              # (Bp, P_pad, D) bf16
        params["w_img"].astype(bf16),                          # (D, H)
        params["b_img"].reshape(1, H).astype(f32),
        w_align,                                               # (S, P_pad) bf16
        params["b_align"].reshape(S, 1).astype(f32),
        params["wq_w"].reshape(1, H).astype(f32),              # (H,1) -> (1,H)
        params["wq_b"].reshape(1).astype(f32),
        w_eff.astype(f32),                                     # (L, S, H)
        b_eff.reshape(L).astype(f32),
    )

    try:
        out = _build_fusion_call(Bp, S, H, P_pad, D, L, BB,
                                 vmem_limit, True)(*args)
    except Exception as e:  # capability fallback (pl.Buffered(1) unsupported)
        print(f"[bert_resnet_additive] single-buffered weights rejected "
              f"({type(e).__name__}); retrying with default double buffering.")
        out = _build_fusion_call(Bp, S, H, P_pad, D, L, BB,
                                 vmem_limit, False)(*args)

    return out[:B, 0, :]


# ----------------------------------------------------------------------------
# Pure-JAX f32 reference (mirrors the PyTorch text+image forward branch,
# including the un-folded W projection and classifier).
# ----------------------------------------------------------------------------
def reference_forward(text, img, params):
    B, S, H = text.shape
    img_lin = img @ params["w_img"] + params["b_img"]                      # (B,P,H)
    img_al = jnp.einsum("sp,bph->bsh", params["w_align"], img_lin) \
        + params["b_align"][None, :, None]                                 # (B,S,H)
    scale = 1.0 / jnp.sqrt(jnp.float32(H))
    q_t = text @ params["wq_w"] + params["wq_b"]                           # (B,S,1)
    q_i = img_al @ params["wq_w"] + params["wq_b"]
    a1 = jax.nn.softmax(q_t * scale, axis=1)
    a2 = jax.nn.softmax(q_i * scale, axis=1)
    feats = jnp.tanh(a1 * text + a2 * img_al) @ params["ww"] + params["bw"]
    return feats.reshape(B, -1) @ params["wc"] + params["bc"]


if __name__ == "__main__":
    # Small shapes consistent with the module structure
    # (real model: H=768, S=64, P=49, D=2048).  P=12 deliberately exercises
    # the patch-axis padding path (49 -> 64 in the real model).
    B, S, H = 8, 16, 32          # batch, max_seq_length, hidden_size
    P, D = 12, 64                # image patches, resnet feature dim
    L = 4                        # num_labels

    key = jax.random.PRNGKey(0)
    ks = jax.random.split(key, 12)
    f32 = jnp.float32

    text_feature = jax.random.normal(ks[0], (B, S, H), f32)
    img_feature = jax.random.normal(ks[1], (B, P, D), f32)

    params = {
        "w_img":   0.05 * jax.random.normal(ks[2], (D, H), f32),   # (in, out)
        "b_img":   0.05 * jax.random.normal(ks[3], (H,), f32),
        "w_align": 0.05 * jax.random.normal(ks[4], (S, P), f32),   # (out, in)
        "b_align": 0.05 * jax.random.normal(ks[5], (S,), f32),
        "wq_w":    0.05 * jax.random.normal(ks[6], (H, 1), f32),   # (in, out)
        "wq_b":    0.05 * jax.random.normal(ks[7], (1,), f32),
        "ww":      0.05 * jax.random.normal(ks[8], (H, H), f32),   # (in, out)
        "bw":      0.05 * jax.random.normal(ks[9], (H,), f32),
        "wc":      0.05 * jax.random.normal(ks[10], (S * H, L), f32),
        "bc":      0.05 * jax.random.normal(ks[11], (L,), f32),
    }

    logits = bert_resnet_additive_forward(text_feature, img_feature, params)
    logits = jax.block_until_ready(logits)

    ref = reference_forward(text_feature, img_feature, params)
    assert logits.shape == (B, L)
    max_err = float(jnp.max(jnp.abs(logits - ref)))
    assert jnp.allclose(logits, ref, atol=2e-2, rtol=2e-2), \
        f"mismatch vs reference (max abs err {max_err})"

    print("KERNEL_OK")
</pallas_src>

<mosaic_0001>
module attributes {stable_mosaic.version = 11 : i64} {
  func.func @fusion_classifier_kernel(%arg0: i32, %arg1: memref<8x16x32xf32, #tpu.memory_space<vmem>>, %arg2: memref<8x16x64xbf16, #tpu.memory_space<vmem>>, %arg3: memref<64x32xbf16, #tpu.memory_space<vmem>>, %arg4: memref<1x32xf32, #tpu.memory_space<vmem>>, %arg5: memref<16x16xbf16, #tpu.memory_space<vmem>>, %arg6: memref<16x1xf32, #tpu.memory_space<vmem>>, %arg7: memref<1x32xf32, #tpu.memory_space<vmem>>, %arg8: memref<1xf32, #tpu.memory_space<smem>>, %arg9: memref<4x16x32xf32, #tpu.memory_space<vmem>>, %arg10: memref<4xf32, #tpu.memory_space<smem>>, %arg11: memref<8x1x4xf32, #tpu.memory_space<vmem>>) attributes {dimension_semantics = [#tpu.dimension_semantics<parallel>], iteration_bounds = array<i64: 1>, scalar_prefetch = 0 : i64, scratch_operands = 0 : i64, tpu.core_type = #tpu.core_type<tc>, window_params = [{transform_indices = @transform_0, window_bounds = array<i64: 8, 16, 32>}, {transform_indices = @transform_1, window_bounds = array<i64: 8, 16, 64>}, {pipeline_mode = #tpu.pipeline_mode<synchronous>, transform_indices = @transform_2, window_bounds = array<i64: 64, 32>}, {pipeline_mode = #tpu.pipeline_mode<synchronous>, transform_indices = @transform_3, window_bounds = array<i64: 1, 32>}, {pipeline_mode = #tpu.pipeline_mode<synchronous>, transform_indices = @transform_4, window_bounds = array<i64: 16, 16>}, {pipeline_mode = #tpu.pipeline_mode<synchronous>, transform_indices = @transform_5, window_bounds = array<i64: 16, 1>}, {pipeline_mode = #tpu.pipeline_mode<synchronous>, transform_indices = @transform_6, window_bounds = array<i64: 1, 32>}, {transform_indices = @transform_7, window_bounds = array<i64: 1>}, {pipeline_mode = #tpu.pipeline_mode<synchronous>, transform_indices = @transform_8, window_bounds = array<i64: 4, 16, 32>}, {transform_indices = @transform_9, window_bounds = array<i64: 4>}, {transform_indices = @transform_10, window_bounds = array<i64: 8, 1, 4>}]} {
    %c0 = arith.constant 0 : index
    %c0_0 = arith.constant 0 : index
    %c0_1 = arith.constant 0 : index
    %0 = vector.load %arg1[%c0, %c0_0, %c0_1] : memref<8x16x32xf32, #tpu.memory_space<vmem>>, vector<8x16x32xf32>
    %c0_2 = arith.constant 0 : index
    %c0_3 = arith.constant 0 : index
    %c0_4 = arith.constant 0 : index
    %1 = vector.load %arg2[%c0_2, %c0_3, %c0_4] : memref<8x16x64xbf16, #tpu.memory_space<vmem>>, vector<8x16x64xbf16>
    %2 = vector.shape_cast %1 : vector<8x16x64xbf16> to vector<128x64xbf16>
    %c0_5 = arith.constant 0 : index
    %c0_6 = arith.constant 0 : index
    %3 = vector.load %arg3[%c0_5, %c0_6] : memref<64x32xbf16, #tpu.memory_space<vmem>>, vector<64x32xbf16>
    %cst = arith.constant dense<0.000000e+00> : vector<128x32xf32>
    %4 = tpu.matmul %2, %3, %cst {dimension_numbers = #tpu.dot_dimension_numbers<[1], [0], [0], [1], [0, 0, 1, 1], [], []>} : vector<128x64xbf16>, vector<64x32xbf16>, vector<128x32xf32> -> vector<128x32xf32>
    %5 = vector.shape_cast %4 : vector<128x32xf32> to vector<8x16x32xf32>
    %c0_7 = arith.constant 0 : index
    %c0_8 = arith.constant 0 : index
    %6 = vector.load %arg4[%c0_7, %c0_8] : memref<1x32xf32, #tpu.memory_space<vmem>>, vector<1x32xf32>
    %7 = vector.shape_cast %6 : vector<1x32xf32> to vector<1x1x32xf32>
    %8 = vector.broadcast %7 : vector<1x1x32xf32> to vector<8x16x32xf32>
    %9 = arith.addf %5, %8 : vector<8x16x32xf32>
    %c0_9 = arith.constant 0 : index
    %c0_10 = arith.constant 0 : index
    %10 = vector.load %arg5[%c0_9, %c0_10] : memref<16x16xbf16, #tpu.memory_space<vmem>>, vector<16x16xbf16>
    %11 = vector.shape_cast %10 : vector<16x16xbf16> to vector<1x16x16xbf16>
    %12 = vector.broadcast %11 : vector<1x16x16xbf16> to vector<8x16x16xbf16>
    %13 = arith.truncf %9 : vector<8x16x32xf32> to vector<8x16x32xbf16>
    "tpu.trace_start"() <{level = 10 : i32, message = "bsp,bph->bsh"}> : () -> ()
    %cst_11 = arith.constant dense<0.000000e+00> : vector<8x16x32xf32>
    %14 = tpu.matmul %12, %13, %cst_11 {dimension_numbers = #tpu.dot_dimension_numbers<[2], [1], [1], [2], [0, 0, 0, 1, 1, 2], [0], [0]>} : vector<8x16x16xbf16>, vector<8x16x32xbf16>, vector<8x16x32xf32> -> vector<8x16x32xf32>
    "tpu.trace_stop"() : () -> ()
    %c0_12 = arith.constant 0 : index
    %c0_13 = arith.constant 0 : index
    %15 = vector.load %arg6[%c0_12, %c0_13] : memref<16x1xf32, #tpu.memory_space<vmem>>, vector<16x1xf32>
    %16 = vector.shape_cast %15 : vector<16x1xf32> to vector<1x16x1xf32>
    %17 = vector.broadcast %16 : vector<1x16x1xf32> to vector<8x16x32xf32>
    %18 = arith.addf %14, %17 : vector<8x16x32xf32>
    %c0_14 = arith.constant 0 : index
    %c0_15 = arith.constant 0 : index
    %19 = vector.load %arg7[%c0_14, %c0_15] : memref<1x32xf32, #tpu.memory_space<vmem>>, vector<1x32xf32>
    %c0_16 = arith.constant 0 : index
    %20 = memref.load %arg8[%c0_16] : memref<1xf32, #tpu.memory_space<smem>>
    %21 = vector.shape_cast %19 : vector<1x32xf32> to vector<1x1x32xf32>
    %22 = vector.broadcast %21 : vector<1x1x32xf32> to vector<8x16x32xf32>
    %23 = arith.mulf %0, %22 : vector<8x16x32xf32>
    %cst_17 = arith.constant dense<0.000000e+00> : vector<8x16xf32>
    %24 = vector.multi_reduction <add>, %23, %cst_17 [2] : vector<8x16x32xf32> to vector<8x16xf32>
    %25 = vector.shape_cast %24 : vector<8x16xf32> to vector<8x16x1xf32>
    %26 = vector.broadcast %20 : f32 to vector<8x16x1xf32>
    %27 = arith.addf %25, %26 : vector<8x16x1xf32>
    %cst_18 = arith.constant 0.176776692 : f32
    %28 = vector.broadcast %cst_18 : f32 to vector<8x16x1xf32>
    %29 = arith.mulf %27, %28 : vector<8x16x1xf32>
    %30 = vector.shape_cast %19 : vector<1x32xf32> to vector<1x1x32xf32>
    %31 = vector.broadcast %30 : vector<1x1x32xf32> to vector<8x16x32xf32>
    %32 = arith.mulf %18, %31 : vector<8x16x32xf32>
    %cst_19 = arith.constant dense<0.000000e+00> : vector<8x16xf32>
    %33 = vector.multi_reduction <add>, %32, %cst_19 [2] : vector<8x16x32xf32> to vector<8x16xf32>
    %34 = vector.shape_cast %33 : vector<8x16xf32> to vector<8x16x1xf32>
    %35 = vector.broadcast %20 : f32 to vector<8x16x1xf32>
    %36 = arith.addf %34, %35 : vector<8x16x1xf32>
    %cst_20 = arith.constant 0.176776692 : f32
    %37 = vector.broadcast %cst_20 : f32 to vector<8x16x1xf32>
    %38 = arith.mulf %36, %37 : vector<8x16x1xf32>
    %cst_21 = arith.constant dense<0xFF800000> : vector<8x1xf32>
    %39 = vector.multi_reduction <maximumf>, %29, %cst_21 [1] : vector<8x16x1xf32> to vector<8x1xf32>
    %40 = vector.shape_cast %39 : vector<8x1xf32> to vector<8x1x1xf32>
    %41 = vector.broadcast %40 : vector<8x1x1xf32> to vector<8x16x1xf32>
    %42 = arith.subf %29, %41 : vector<8x16x1xf32>
    %43 = math.exp %42 : vector<8x16x1xf32>
    %cst_22 = arith.constant dense<0.000000e+00> : vector<8x1xf32>
    %44 = vector.multi_reduction <add>, %43, %cst_22 [1] : vector<8x16x1xf32> to vector<8x1xf32>
    %45 = vector.shape_cast %44 : vector<8x1xf32> to vector<8x1x1xf32>
    %46 = vector.broadcast %45 : vector<8x1x1xf32> to vector<8x16x1xf32>
    %47 = arith.divf %43, %46 : vector<8x16x1xf32>
    %cst_23 = arith.constant dense<0xFF800000> : vector<8x1xf32>
    %48 = vector.multi_reduction <maximumf>, %38, %cst_23 [1] : vector<8x16x1xf32> to vector<8x1xf32>
    %49 = vector.shape_cast %48 : vector<8x1xf32> to vector<8x1x1xf32>
    %50 = vector.broadcast %49 : vector<8x1x1xf32> to vector<8x16x1xf32>
    %51 = arith.subf %38, %50 : vector<8x16x1xf32>
    %52 = math.exp %51 : vector<8x16x1xf32>
    %cst_24 = arith.constant dense<0.000000e+00> : vector<8x1xf32>
    %53 = vector.multi_reduction <add>, %52, %cst_24 [1] : vector<8x16x1xf32> to vector<8x1xf32>
    %54 = vector.shape_cast %53 : vector<8x1xf32> to vector<8x1x1xf32>
    %55 = vector.broadcast %54 : vector<8x1x1xf32> to vector<8x16x1xf32>
    %56 = arith.divf %52, %55 : vector<8x16x1xf32>
    %57 = vector.broadcast %47 : vector<8x16x1xf32> to vector<8x16x32xf32>
    %58 = arith.mulf %57, %0 : vector<8x16x32xf32>
    %59 = vector.broadcast %56 : vector<8x16x1xf32> to vector<8x16x32xf32>
    %60 = arith.mulf %59, %18 : vector<8x16x32xf32>
    %61 = arith.addf %58, %60 : vector<8x16x32xf32>
    %62 = math.tanh %61 : vector<8x16x32xf32>
    %c0_25 = arith.constant 0 : index
    %c0_26 = arith.constant 0 : index
    %c0_27 = arith.constant 0 : index
    %63 = vector.load %arg9[%c0_25, %c0_26, %c0_27] : memref<4x16x32xf32, #tpu.memory_space<vmem>>, vector<1x16x32xf32>
    %64 = vector.shape_cast %63 : vector<1x16x32xf32> to vector<16x32xf32>
    %65 = vector.shape_cast %64 : vector<16x32xf32> to vector<1x16x32xf32>
    %66 = vector.broadcast %65 : vector<1x16x32xf32> to vector<8x16x32xf32>
    %67 = arith.mulf %62, %66 : vector<8x16x32xf32>
    %cst_28 = arith.constant dense<0.000000e+00> : vector<8x16xf32>
    %68 = vector.multi_reduction <add>, %67, %cst_28 [2] : vector<8x16x32xf32> to vector<8x16xf32>
    %69 = vector.shape_cast %68 : vector<8x16xf32> to vector<8x16x1xf32>
    %cst_29 = arith.constant dense<0.000000e+00> : vector<8x1xf32>
    %70 = vector.multi_reduction <add>, %69, %cst_29 [1] : vector<8x16x1xf32> to vector<8x1xf32>
    %71 = vector.shape_cast %70 : vector<8x1xf32> to vector<8x1x1xf32>
    %c0_30 = arith.constant 0 : index
    %72 = memref.load %arg10[%c0_30] : memref<4xf32, #tpu.memory_space<smem>>
    %73 = vector.broadcast %72 : f32 to vector<8x1x1xf32>
    %74 = arith.addf %71, %73 : vector<8x1x1xf32>
    %c1 = arith.constant 1 : index
    %c0_31 = arith.constant 0 : index
    %c0_32 = arith.constant 0 : index
    %75 = vector.load %arg9[%c1, %c0_31, %c0_32] : memref<4x16x32xf32, #tpu.memory_space<vmem>>, vector<1x16x32xf32>
    %76 = vector.shape_cast %75 : vector<1x16x32xf32> to vector<16x32xf32>
    %77 = vector.shape_cast %76 : vector<16x32xf32> to vector<1x16x32xf32>
    %78 = vector.broadcast %77 : vector<1x16x32xf32> to vector<8x16x32xf32>
    %79 = arith.mulf %62, %78 : vector<8x16x32xf32>
    %cst_33 = arith.constant dense<0.000000e+00> : vector<8x16xf32>
    %80 = vector.multi_reduction <add>, %79, %cst_33 [2] : vector<8x16x32xf32> to vector<8x16xf32>
    %81 = vector.shape_cast %80 : vector<8x16xf32> to vector<8x16x1xf32>
    %cst_34 = arith.constant dense<0.000000e+00> : vector<8x1xf32>
    %82 = vector.multi_reduction <add>, %81, %cst_34 [1] : vector<8x16x1xf32> to vector<8x1xf32>
    %83 = vector.shape_cast %82 : vector<8x1xf32> to vector<8x1x1xf32>
    %c1_35 = arith.constant 1 : index
    %84 = memref.load %arg10[%c1_35] : memref<4xf32, #tpu.memory_space<smem>>
    %85 = vector.broadcast %84 : f32 to vector<8x1x1xf32>
    %86 = arith.addf %83, %85 : vector<8x1x1xf32>
    %c2 = arith.constant 2 : index
    %c0_36 = arith.constant 0 : index
    %c0_37 = arith.constant 0 : index
    %87 = vector.load %arg9[%c2, %c0_36, %c0_37] : memref<4x16x32xf32, #tpu.memory_space<vmem>>, vector<1x16x32xf32>
    %88 = vector.shape_cast %87 : vector<1x16x32xf32> to vector<16x32xf32>
    %89 = vector.shape_cast %88 : vector<16x32xf32> to vector<1x16x32xf32>
    %90 = vector.broadcast %89 : vector<1x16x32xf32> to vector<8x16x32xf32>
    %91 = arith.mulf %62, %90 : vector<8x16x32xf32>
    %cst_38 = arith.constant dense<0.000000e+00> : vector<8x16xf32>
    %92 = vector.multi_reduction <add>, %91, %cst_38 [2] : vector<8x16x32xf32> to vector<8x16xf32>
    %93 = vector.shape_cast %92 : vector<8x16xf32> to vector<8x16x1xf32>
    %cst_39 = arith.constant dense<0.000000e+00> : vector<8x1xf32>
    %94 = vector.multi_reduction <add>, %93, %cst_39 [1] : vector<8x16x1xf32> to vector<8x1xf32>
    %95 = vector.shape_cast %94 : vector<8x1xf32> to vector<8x1x1xf32>
    %c2_40 = arith.constant 2 : index
    %96 = memref.load %arg10[%c2_40] : memref<4xf32, #tpu.memory_space<smem>>
    %97 = vector.broadcast %96 : f32 to vector<8x1x1xf32>
    %98 = arith.addf %95, %97 : vector<8x1x1xf32>
    %c3 = arith.constant 3 : index
    %c0_41 = arith.constant 0 : index
    %c0_42 = arith.constant 0 : index
    %99 = vector.load %arg9[%c3, %c0_41, %c0_42] : memref<4x16x32xf32, #tpu.memory_space<vmem>>, vector<1x16x32xf32>
    %100 = vector.shape_cast %99 : vector<1x16x32xf32> to vector<16x32xf32>
    %101 = vector.shape_cast %100 : vector<16x32xf32> to vector<1x16x32xf32>
    %102 = vector.broadcast %101 : vector<1x16x32xf32> to vector<8x16x32xf32>
    %103 = arith.mulf %62, %102 : vector<8x16x32xf32>
    %cst_43 = arith.constant dense<0.000000e+00> : vector<8x16xf32>
    %104 = vector.multi_reduction <add>, %103, %cst_43 [2] : vector<8x16x32xf32> to vector<8x16xf32>
    %105 = vector.shape_cast %104 : vector<8x16xf32> to vector<8x16x1xf32>
    %cst_44 = arith.constant dense<0.000000e+00> : vector<8x1xf32>
    %106 = vector.multi_reduction <add>, %105, %cst_44 [1] : vector<8x16x1xf32> to vector<8x1xf32>
    %107 = vector.shape_cast %106 : vector<8x1xf32> to vector<8x1x1xf32>
    %c3_45 = arith.constant 3 : index
    %108 = memref.load %arg10[%c3_45] : memref<4xf32, #tpu.memory_space<smem>>
    %109 = vector.broadcast %108 : f32 to vector<8x1x1xf32>
    %110 = arith.addf %107, %109 : vector<8x1x1xf32>
    %111 = tpu.concatenate %74, %86, %98, %110 in 2 : vector<8x1x1xf32>, vector<8x1x1xf32>, vector<8x1x1xf32>, vector<8x1x1xf32> -> vector<8x1x4xf32>
    %c0_46 = arith.constant 0 : index
    %c0_47 = arith.constant 0 : index
    %c0_48 = arith.constant 0 : index
    %112 = vector.load %arg11[%c0_46, %c0_47, %c0_48] : memref<8x1x4xf32, #tpu.memory_space<vmem>>, vector<8x1x4xf32>
    tpu.vector_store %arg11[%c0_46, %c0_47, %c0_48], %111 {strides = array<i32>} : memref<8x1x4xf32, #tpu.memory_space<vmem>>, vector<8x1x4xf32>,
    return
  }
  func.func @transform_0(%arg0: i32) -> (i32, i32, i32) {
    %c0_i32 = arith.constant 0 : i32
    %c0_i32_0 = arith.constant 0 : i32
    %c0_i32_1 = arith.constant 0 : i32
    return %arg0, %c0_i32, %c0_i32_0 : i32, i32, i32
  }
  func.func @transform_1(%arg0: i32) -> (i32, i32, i32) {
    %c0_i32 = arith.constant 0 : i32
    %c0_i32_0 = arith.constant 0 : i32
    %c0_i32_1 = arith.constant 0 : i32
    return %arg0, %c0_i32, %c0_i32_0 : i32, i32, i32
  }
  func.func @transform_2(%arg0: i32) -> (i32, i32) {
    %c0_i32 = arith.constant 0 : i32
    %c0_i32_0 = arith.constant 0 : i32
    %c0_i32_1 = arith.constant 0 : i32
    return %c0_i32, %c0_i32_0 : i32, i32
  }
  func.func @transform_3(%arg0: i32) -> (i32, i32) {
    %c0_i32 = arith.constant 0 : i32
    %c0_i32_0 = arith.constant 0 : i32
    %c0_i32_1 = arith.constant 0 : i32
    return %c0_i32, %c0_i32_0 : i32, i32
  }
  func.func @transform_4(%arg0: i32) -> (i32, i32) {
    %c0_i32 = arith.constant 0 : i32
    %c0_i32_0 = arith.constant 0 : i32
    %c0_i32_1 = arith.constant 0 : i32
    return %c0_i32, %c0_i32_0 : i32, i32
  }
  func.func @transform_5(%arg0: i32) -> (i32, i32) {
    %c0_i32 = arith.constant 0 : i32
    %c0_i32_0 = arith.constant 0 : i32
    %c0_i32_1 = arith.constant 0 : i32
    return %c0_i32, %c0_i32_0 : i32, i32
  }
  func.func @transform_6(%arg0: i32) -> (i32, i32) {
    %c0_i32 = arith.constant 0 : i32
    %c0_i32_0 = arith.constant 0 : i32
    %c0_i32_1 = arith.constant 0 : i32
    return %c0_i32, %c0_i32_0 : i32, i32
  }
  func.func @transform_7(%arg0: i32) -> i32 {
    %c0_i32 = arith.constant 0 : i32
    %c0_i32_0 = arith.constant 0 : i32
    return %c0_i32 : i32
  }
  func.func @transform_8(%arg0: i32) -> (i32, i32, i32) {
    %c0_i32 = arith.constant 0 : i32
    %c0_i32_0 = arith.constant 0 : i32
    %c0_i32_1 = arith.constant 0 : i32
    %c0_i32_2 = arith.constant 0 : i32
    return %c0_i32, %c0_i32_0, %c0_i32_1 : i32, i32, i32
  }
  func.func @transform_9(%arg0: i32) -> i32 {
    %c0_i32 = arith.constant 0 : i32
    %c0_i32_0 = arith.constant 0 : i32
    return %c0_i32 : i32
  }
  func.func @transform_10(%arg0: i32) -> (i32, i32, i32) {
    %c0_i32 = arith.constant 0 : i32
    %c0_i32_0 = arith.constant 0 : i32
    %c0_i32_1 = arith.constant 0 : i32
    return %arg0, %c0_i32, %c0_i32_0 : i32, i32, i32
  }
}

module attributes {stable_mosaic.version = 11 : i64} {
  func.func @fusion_classifier_kernel(%arg0: i32, %arg1: memref<8x16x32xf32, #tpu.memory_space<vmem>>, %arg2: memref<8x16x64xbf16, #tpu.memory_space<vmem>>, %arg3: memref<64x32xbf16, #tpu.memory_space<vmem>>, %arg4: memref<1x32xf32, #tpu.memory_space<vmem>>, %arg5: memref<16x16xbf16, #tpu.memory_space<vmem>>, %arg6: memref<16x1xf32, #tpu.memory_space<vmem>>, %arg7: memref<1x32xf32, #tpu.memory_space<vmem>>, %arg8: memref<1xf32, #tpu.memory_space<smem>>, %arg9: memref<4x16x32xf32, #tpu.memory_space<vmem>>, %arg10: memref<4xf32, #tpu.memory_space<smem>>, %arg11: memref<8x1x4xf32, #tpu.memory_space<vmem>>) attributes {dimension_semantics = [#tpu.dimension_semantics<parallel>], iteration_bounds = array<i64: 1>, scalar_prefetch = 0 : i64, scratch_operands = 0 : i64, tpu.core_type = #tpu.core_type<tc>, window_params = [{transform_indices = @transform_0, window_bounds = array<i64: 8, 16, 32>}, {transform_indices = @transform_1, window_bounds = array<i64: 8, 16, 64>}, {pipeline_mode = #tpu.pipeline_mode<synchronous>, transform_indices = @transform_2, window_bounds = array<i64: 64, 32>}, {pipeline_mode = #tpu.pipeline_mode<synchronous>, transform_indices = @transform_3, window_bounds = array<i64: 1, 32>}, {pipeline_mode = #tpu.pipeline_mode<synchronous>, transform_indices = @transform_4, window_bounds = array<i64: 16, 16>}, {pipeline_mode = #tpu.pipeline_mode<synchronous>, transform_indices = @transform_5, window_bounds = array<i64: 16, 1>}, {pipeline_mode = #tpu.pipeline_mode<synchronous>, transform_indices = @transform_6, window_bounds = array<i64: 1, 32>}, {transform_indices = @transform_7, window_bounds = array<i64: 1>}, {pipeline_mode = #tpu.pipeline_mode<synchronous>, transform_indices = @transform_8, window_bounds = array<i64: 4, 16, 32>}, {transform_indices = @transform_9, window_bounds = array<i64: 4>}, {transform_indices = @transform_10, window_bounds = array<i64: 8, 1, 4>}]} {
    %c0 = arith.constant 0 : index
    %c0_0 = arith.constant 0 : index
    %c0_1 = arith.constant 0 : index
    %0 = vector.load %arg1[%c0, %c0_0, %c0_1] : memref<8x16x32xf32, #tpu.memory_space<vmem>>, vector<8x16x32xf32>
    %c0_2 = arith.constant 0 : index
    %c0_3 = arith.constant 0 : index
    %c0_4 = arith.constant 0 : index
    %1 = vector.load %arg2[%c0_2, %c0_3, %c0_4] : memref<8x16x64xbf16, #tpu.memory_space<vmem>>, vector<8x16x64xbf16>
    %2 = vector.shape_cast %1 : vector<8x16x64xbf16> to vector<128x64xbf16>
    %c0_5 = arith.constant 0 : index
    %c0_6 = arith.constant 0 : index
    %3 = vector.load %arg3[%c0_5, %c0_6] : memref<64x32xbf16, #tpu.memory_space<vmem>>, vector<64x32xbf16>
    %cst = arith.constant dense<0.000000e+00> : vector<128x32xf32>
    %4 = tpu.matmul %2, %3, %cst {dimension_numbers = #tpu.dot_dimension_numbers<[1], [0], [0], [1], [0, 0, 1, 1], [], []>} : vector<128x64xbf16>, vector<64x32xbf16>, vector<128x32xf32> -> vector<128x32xf32>
    %5 = vector.shape_cast %4 : vector<128x32xf32> to vector<8x16x32xf32>
    %c0_7 = arith.constant 0 : index
    %c0_8 = arith.constant 0 : index
    %6 = vector.load %arg4[%c0_7, %c0_8] : memref<1x32xf32, #tpu.memory_space<vmem>>, vector<1x32xf32>
    %7 = vector.shape_cast %6 : vector<1x32xf32> to vector<1x1x32xf32>
    %8 = vector.broadcast %7 : vector<1x1x32xf32> to vector<8x16x32xf32>
    %9 = arith.addf %5, %8 : vector<8x16x32xf32>
    %c0_9 = arith.constant 0 : index
    %c0_10 = arith.constant 0 : index
    %10 = vector.load %arg5[%c0_9, %c0_10] : memref<16x16xbf16, #tpu.memory_space<vmem>>, vector<16x16xbf16>
    %11 = vector.shape_cast %10 : vector<16x16xbf16> to vector<1x16x16xbf16>
    %12 = vector.broadcast %11 : vector<1x16x16xbf16> to vector<8x16x16xbf16>
    %13 = arith.truncf %9 : vector<8x16x32xf32> to vector<8x16x32xbf16>
    "tpu.trace_start"() <{level = 10 : i32, message = "bsp,bph->bsh"}> : () -> ()
    %cst_11 = arith.constant dense<0.000000e+00> : vector<8x16x32xf32>
    %14 = tpu.matmul %12, %13, %cst_11 {dimension_numbers = #tpu.dot_dimension_numbers<[2], [1], [1], [2], [0, 0, 0, 1, 1, 2], [0], [0]>} : vector<8x16x16xbf16>, vector<8x16x32xbf16>, vector<8x16x32xf32> -> vector<8x16x32xf32>
    "tpu.trace_stop"() : () -> ()
    %c0_12 = arith.constant 0 : index
    %c0_13 = arith.constant 0 : index
    %15 = vector.load %arg6[%c0_12, %c0_13] : memref<16x1xf32, #tpu.memory_space<vmem>>, vector<16x1xf32>
    %16 = vector.shape_cast %15 : vector<16x1xf32> to vector<1x16x1xf32>
    %17 = vector.broadcast %16 : vector<1x16x1xf32> to vector<8x16x32xf32>
    %18 = arith.addf %14, %17 : vector<8x16x32xf32>
    %c0_14 = arith.constant 0 : index
    %c0_15 = arith.constant 0 : index
    %19 = vector.load %arg7[%c0_14, %c0_15] : memref<1x32xf32, #tpu.memory_space<vmem>>, vector<1x32xf32>
    %c0_16 = arith.constant 0 : index
    %20 = memref.load %arg8[%c0_16] : memref<1xf32, #tpu.memory_space<smem>>
    %21 = vector.shape_cast %19 : vector<1x32xf32> to vector<1x1x32xf32>
    %22 = vector.broadcast %21 : vector<1x1x32xf32> to vector<8x16x32xf32>
    %23 = arith.mulf %0, %22 : vector<8x16x32xf32>
    %cst_17 = arith.constant dense<0.000000e+00> : vector<8x16xf32>
    %24 = vector.multi_reduction <add>, %23, %cst_17 [2] : vector<8x16x32xf32> to vector<8x16xf32>
    %25 = vector.shape_cast %24 : vector<8x16xf32> to vector<8x16x1xf32>
    %26 = vector.broadcast %20 : f32 to vector<8x16x1xf32>
    %27 = arith.addf %25, %26 : vector<8x16x1xf32>
    %cst_18 = arith.constant 0.176776692 : f32
    %28 = vector.broadcast %cst_18 : f32 to vector<8x16x1xf32>
    %29 = arith.mulf %27, %28 : vector<8x16x1xf32>
    %30 = vector.shape_cast %19 : vector<1x32xf32> to vector<1x1x32xf32>
    %31 = vector.broadcast %30 : vector<1x1x32xf32> to vector<8x16x32xf32>
    %32 = arith.mulf %18, %31 : vector<8x16x32xf32>
    %cst_19 = arith.constant dense<0.000000e+00> : vector<8x16xf32>
    %33 = vector.multi_reduction <add>, %32, %cst_19 [2] : vector<8x16x32xf32> to vector<8x16xf32>
    %34 = vector.shape_cast %33 : vector<8x16xf32> to vector<8x16x1xf32>
    %35 = vector.broadcast %20 : f32 to vector<8x16x1xf32>
    %36 = arith.addf %34, %35 : vector<8x16x1xf32>
    %cst_20 = arith.constant 0.176776692 : f32
    %37 = vector.broadcast %cst_20 : f32 to vector<8x16x1xf32>
    %38 = arith.mulf %36, %37 : vector<8x16x1xf32>
    %cst_21 = arith.constant dense<0xFF800000> : vector<8x1xf32>
    %39 = vector.multi_reduction <maximumf>, %29, %cst_21 [1] : vector<8x16x1xf32> to vector<8x1xf32>
    %40 = vector.shape_cast %39 : vector<8x1xf32> to vector<8x1x1xf32>
    %41 = vector.broadcast %40 : vector<8x1x1xf32> to vector<8x16x1xf32>
    %42 = arith.subf %29, %41 : vector<8x16x1xf32>
    %43 = math.exp %42 : vector<8x16x1xf32>
    %cst_22 = arith.constant dense<0.000000e+00> : vector<8x1xf32>
    %44 = vector.multi_reduction <add>, %43, %cst_22 [1] : vector<8x16x1xf32> to vector<8x1xf32>
    %45 = vector.shape_cast %44 : vector<8x1xf32> to vector<8x1x1xf32>
    %46 = vector.broadcast %45 : vector<8x1x1xf32> to vector<8x16x1xf32>
    %47 = arith.divf %43, %46 : vector<8x16x1xf32>
    %cst_23 = arith.constant dense<0xFF800000> : vector<8x1xf32>
    %48 = vector.multi_reduction <maximumf>, %38, %cst_23 [1] : vector<8x16x1xf32> to vector<8x1xf32>
    %49 = vector.shape_cast %48 : vector<8x1xf32> to vector<8x1x1xf32>
    %50 = vector.broadcast %49 : vector<8x1x1xf32> to vector<8x16x1xf32>
    %51 = arith.subf %38, %50 : vector<8x16x1xf32>
    %52 = math.exp %51 : vector<8x16x1xf32>
    %cst_24 = arith.constant dense<0.000000e+00> : vector<8x1xf32>
    %53 = vector.multi_reduction <add>, %52, %cst_24 [1] : vector<8x16x1xf32> to vector<8x1xf32>
    %54 = vector.shape_cast %53 : vector<8x1xf32> to vector<8x1x1xf32>
    %55 = vector.broadcast %54 : vector<8x1x1xf32> to vector<8x16x1xf32>
    %56 = arith.divf %52, %55 : vector<8x16x1xf32>
    %57 = vector.broadcast %47 : vector<8x16x1xf32> to vector<8x16x32xf32>
    %58 = arith.mulf %57, %0 : vector<8x16x32xf32>
    %59 = vector.broadcast %56 : vector<8x16x1xf32> to vector<8x16x32xf32>
    %60 = arith.mulf %59, %18 : vector<8x16x32xf32>
    %61 = arith.addf %58, %60 : vector<8x16x32xf32>
    %62 = math.tanh %61 : vector<8x16x32xf32>
    %c0_25 = arith.constant 0 : index
    %c0_26 = arith.constant 0 : index
    %c0_27 = arith.constant 0 : index
    %63 = vector.load %arg9[%c0_25, %c0_26, %c0_27] : memref<4x16x32xf32, #tpu.memory_space<vmem>>, vector<1x16x32xf32>
    %64 = vector.shape_cast %63 : vector<1x16x32xf32> to vector<16x32xf32>
    %65 = vector.shape_cast %64 : vector<16x32xf32> to vector<1x16x32xf32>
    %66 = vector.broadcast %65 : vector<1x16x32xf32> to vector<8x16x32xf32>
    %67 = arith.mulf %62, %66 : vector<8x16x32xf32>
    %cst_28 = arith.constant dense<0.000000e+00> : vector<8x16xf32>
    %68 = vector.multi_reduction <add>, %67, %cst_28 [2] : vector<8x16x32xf32> to vector<8x16xf32>
    %69 = vector.shape_cast %68 : vector<8x16xf32> to vector<8x16x1xf32>
    %cst_29 = arith.constant dense<0.000000e+00> : vector<8x1xf32>
    %70 = vector.multi_reduction <add>, %69, %cst_29 [1] : vector<8x16x1xf32> to vector<8x1xf32>
    %71 = vector.shape_cast %70 : vector<8x1xf32> to vector<8x1x1xf32>
    %c0_30 = arith.constant 0 : index
    %72 = memref.load %arg10[%c0_30] : memref<4xf32, #tpu.memory_space<smem>>
    %73 = vector.broadcast %72 : f32 to vector<8x1x1xf32>
    %74 = arith.addf %71, %73 : vector<8x1x1xf32>
    %c1 = arith.constant 1 : index
    %c0_31 = arith.constant 0 : index
    %c0_32 = arith.constant 0 : index
    %75 = vector.load %arg9[%c1, %c0_31, %c0_32] : memref<4x16x32xf32, #tpu.memory_space<vmem>>, vector<1x16x32xf32>
    %76 = vector.shape_cast %75 : vector<1x16x32xf32> to vector<16x32xf32>
    %77 = vector.shape_cast %76 : vector<16x32xf32> to vector<1x16x32xf32>
    %78 = vector.broadcast %77 : vector<1x16x32xf32> to vector<8x16x32xf32>
    %79 = arith.mulf %62, %78 : vector<8x16x32xf32>
    %cst_33 = arith.constant dense<0.000000e+00> : vector<8x16xf32>
    %80 = vector.multi_reduction <add>, %79, %cst_33 [2] : vector<8x16x32xf32> to vector<8x16xf32>
    %81 = vector.shape_cast %80 : vector<8x16xf32> to vector<8x16x1xf32>
    %cst_34 = arith.constant dense<0.000000e+00> : vector<8x1xf32>
    %82 = vector.multi_reduction <add>, %81, %cst_34 [1] : vector<8x16x1xf32> to vector<8x1xf32>
    %83 = vector.shape_cast %82 : vector<8x1xf32> to vector<8x1x1xf32>
    %c1_35 = arith.constant 1 : index
    %84 = memref.load %arg10[%c1_35] : memref<4xf32, #tpu.memory_space<smem>>
    %85 = vector.broadcast %84 : f32 to vector<8x1x1xf32>
    %86 = arith.addf %83, %85 : vector<8x1x1xf32>
    %c2 = arith.constant 2 : index
    %c0_36 = arith.constant 0 : index
    %c0_37 = arith.constant 0 : index
    %87 = vector.load %arg9[%c2, %c0_36, %c0_37] : memref<4x16x32xf32, #tpu.memory_space<vmem>>, vector<1x16x32xf32>
    %88 = vector.shape_cast %87 : vector<1x16x32xf32> to vector<16x32xf32>
    %89 = vector.shape_cast %88 : vector<16x32xf32> to vector<1x16x32xf32>
    %90 = vector.broadcast %89 : vector<1x16x32xf32> to vector<8x16x32xf32>
    %91 = arith.mulf %62, %90 : vector<8x16x32xf32>
    %cst_38 = arith.constant dense<0.000000e+00> : vector<8x16xf32>
    %92 = vector.multi_reduction <add>, %91, %cst_38 [2] : vector<8x16x32xf32> to vector<8x16xf32>
    %93 = vector.shape_cast %92 : vector<8x16xf32> to vector<8x16x1xf32>
    %cst_39 = arith.constant dense<0.000000e+00> : vector<8x1xf32>
    %94 = vector.multi_reduction <add>, %93, %cst_39 [1] : vector<8x16x1xf32> to vector<8x1xf32>
    %95 = vector.shape_cast %94 : vector<8x1xf32> to vector<8x1x1xf32>
    %c2_40 = arith.constant 2 : index
    %96 = memref.load %arg10[%c2_40] : memref<4xf32, #tpu.memory_space<smem>>
    %97 = vector.broadcast %96 : f32 to vector<8x1x1xf32>
    %98 = arith.addf %95, %97 : vector<8x1x1xf32>
    %c3 = arith.constant 3 : index
    %c0_41 = arith.constant 0 : index
    %c0_42 = arith.constant 0 : index
    %99 = vector.load %arg9[%c3, %c0_41, %c0_42] : memref<4x16x32xf32, #tpu.memory_space<vmem>>, vector<1x16x32xf32>
    %100 = vector.shape_cast %99 : vector<1x16x32xf32> to vector<16x32xf32>
    %101 = vector.shape_cast %100 : vector<16x32xf32> to vector<1x16x32xf32>
    %102 = vector.broadcast %101 : vector<1x16x32xf32> to vector<8x16x32xf32>
    %103 = arith.mulf %62, %102 : vector<8x16x32xf32>
    %cst_43 = arith.constant dense<0.000000e+00> : vector<8x16xf32>
    %104 = vector.multi_reduction <add>, %103, %cst_43 [2] : vector<8x16x32xf32> to vector<8x16xf32>
    %105 = vector.shape_cast %104 : vector<8x16xf32> to vector<8x16x1xf32>
    %cst_44 = arith.constant dense<0.000000e+00> : vector<8x1xf32>
    %106 = vector.multi_reduction <add>, %105, %cst_44 [1] : vector<8x16x1xf32> to vector<8x1xf32>
    %107 = vector.shape_cast %106 : vector<8x1xf32> to vector<8x1x1xf32>
    %c3_45 = arith.constant 3 : index
    %108 = memref.load %arg10[%c3_45] : memref<4xf32, #tpu.memory_space<smem>>
    %109 = vector.broadcast %108 : f32 to vector<8x1x1xf32>
    %110 = arith.addf %107, %109 : vector<8x1x1xf32>
    %111 = tpu.concatenate %74, %86, %98, %110 in 2 : vector<8x1x1xf32>, vector<8x1x1xf32>, vector<8x1x1xf32>, vector<8x1x1xf32> -> vector<8x1x4xf32>
    %c0_46 = arith.constant 0 : index
    %c0_47 = arith.constant 0 : index
    %c0_48 = arith.constant 0 : index
    %112 = vector.load %arg11[%c0_46, %c0_47, %c0_48] : memref<8x1x4xf32, #tpu.memory_space<vmem>>, vector<8x1x4xf32>
    tpu.vector_store %arg11[%c0_46, %c0_47, %c0_48], %111 {strides = array<i32>} : memref<8x1x4xf32, #tpu.memory_space<vmem>>, vector<8x1x4xf32>,
    return
  }
  func.func @transform_0(%arg0: i32) -> (i32, i32, i32) {
    %c0_i32 = arith.constant 0 : i32
    %c0_i32_0 = arith.constant 0 : i32
    %c0_i32_1 = arith.constant 0 : i32
    return %arg0, %c0_i32, %c0_i32_0 : i32, i32, i32
  }
  func.func @transform_1(%arg0: i32) -> (i32, i32, i32) {
    %c0_i32 = arith.constant 0 : i32
    %c0_i32_0 = arith.constant 0 : i32
    %c0_i32_1 = arith.constant 0 : i32
    return %arg0, %c0_i32, %c0_i32_0 : i32, i32, i32
  }
  func.func @transform_2(%arg0: i32) -> (i32, i32) {
    %c0_i32 = arith.constant 0 : i32
    %c0_i32_0 = arith.constant 0 : i32
    %c0_i32_1 = arith.constant 0 : i32
    return %c0_i32, %c0_i32_0 : i32, i32
  }
  func.func @transform_3(%arg0: i32) -> (i32, i32) {
    %c0_i32 = arith.constant 0 : i32
    %c0_i32_0 = arith.constant 0 : i32
    %c0_i32_1 = arith.constant 0 : i32
    return %c0_i32, %c0_i32_0 : i32, i32
  }
  func.func @transform_4(%arg0: i32) -> (i32, i32) {
    %c0_i32 = arith.constant 0 : i32
    %c0_i32_0 = arith.constant 0 : i32
    %c0_i32_1 = arith.constant 0 : i32
    return %c0_i32, %c0_i32_0 : i32, i32
  }
  func.func @transform_5(%arg0: i32) -> (i32, i32) {
    %c0_i32 = arith.constant 0 : i32
    %c0_i32_0 = arith.constant 0 : i32
    %c0_i32_1 = arith.constant 0 : i32
    return %c0_i32, %c0_i32_0 : i32, i32
  }
  func.func @transform_6(%arg0: i32) -> (i32, i32) {
    %c0_i32 = arith.constant 0 : i32
    %c0_i32_0 = arith.constant 0 : i32
    %c0_i32_1 = arith.constant 0 : i32
    return %c0_i32, %c0_i32_0 : i32, i32
  }
  func.func @transform_7(%arg0: i32) -> i32 {
    %c0_i32 = arith.constant 0 : i32
    %c0_i32_0 = arith.constant 0 : i32
    return %c0_i32 : i32
  }
  func.func @transform_8(%arg0: i32) -> (i32, i32, i32) {
    %c0_i32 = arith.constant 0 : i32
    %c0_i32_0 = arith.constant 0 : i32
    %c0_i32_1 = arith.constant 0 : i32
    %c0_i32_2 = arith.constant 0 : i32
    return %c0_i32, %c0_i32_0, %c0_i32_1 : i32, i32, i32
  }
  func.func @transform_9(%arg0: i32) -> i32 {
    %c0_i32 = arith.constant 0 : i32
    %c0_i32_0 = arith.constant 0 : i32
    return %c0_i32 : i32
  }
  func.func @transform_10(%arg0: i32) -> (i32, i32, i32) {
    %c0_i32 = arith.constant 0 : i32
    %c0_i32_0 = arith.constant 0 : i32
    %c0_i32_1 = arith.constant 0 : i32
    return %arg0, %c0_i32, %c0_i32_0 : i32, i32, i32
  }
}

</mosaic_0001>

<bundles_post_ra>
// kernel: tpu_custom_call.1
= control target key start
LH: loop header
LB: loop body
LE: loop exit
PB: predicated region body
PF: predicated region fallthrough
CT: control target
= control target key end

     0   :  { %16 = vsyncpa [#allocation4], 0  ;;  %s3527_s0 = inlined_call_operand.hbm [shape: f32[8,16,32], index: 0, kind: input, shape index: {}]   ;;  %s3528_s1 = inlined_call_operand.hbm [shape: bf16[8,16,64], index: 1, kind: input, shape index: {}]   ;;  %s3529_s2 = inlined_call_operand.vmem [shape: bf16[64,32], index: 2, kind: input, shape index: {}]   ;;  %s3530_s3 = inlined_call_operand.vmem [shape: f32[1,32], index: 3, kind: input, shape index: {}]   ;;  %s3531_s4 = inlined_call_operand.vmem [shape: bf16[16,16], index: 4, kind: input, shape index: {}]   ;;  %s3532_s5 = inlined_call_operand.vmem [shape: f32[16,1], index: 5, kind: input, shape index: {}]   ;;  %s3533_s6 = inlined_call_operand.vmem [shape: f32[1,32], index: 6, kind: input, shape index: {}]   ;;  %s3534_s7 = inlined_call_operand.<no memory space> [shape: f32[1], index: 7, kind: input, shape index: {}]   ;;  %s3535_s8 = inlined_call_operand.hbm [shape: f32[4,16,32], index: 8, kind: input, shape index: {}]   ;;  %s3536_s9 = inlined_call_operand.vmem [shape: f32[4], index: 9, kind: input, shape index: {}]   ;;  %s3537_s10 = inlined_call_operand.vmem [shape: f32[8,1,4], index: 10, kind: output, shape index: {}]  }
   0x1   :  { %17 = vsyncpa [#allocation7], 0  ;;  %s36_s15 = sshll.u32 %s3528_s1, 4  ;;  %s37_s15 = int_to_ptr.hbm [resolvable:$true] %s36_s15 }
   0x2   :  { %18 = vsyncpa [#allocation5], 0  ;;  %s2249_s16 = smov [#allocation6]   ;;  %s23_s20 = sshll.u32 %s3527_s0, 4  ;;  %s24_s20 = int_to_ptr.hbm [resolvable:$true] %s23_s20 }
   0x3   :  { %s38_s17 = sshll.u32 %s2249_s16, 4  ;;  %s2250_s21 = smov 64   ;;  %s39_s17 = int_to_ptr.vmem [resolvable:$true] %s38_s17 }
   0x4   :  { %s2251_s22 = smov 4   ;;  %s2252_s23 = smov [#allocation3]  }
   0x5   :  { %44 = dma.hbm_to_vmem [thread:$0]  %s37_s15, 1024, %s39_s17, [#allocation7], %s2250_s21, %s2250_s21, %s2251_s22  }
   0x6   :  { %s25_s24 = sshll.u32 %s2252_s23, 4  ;;  %s2253_s25 = smov 128   ;;  %s26_s24 = int_to_ptr.vmem [resolvable:$true] %s25_s24 }
   0x7   :  { %s2254_s26 = smov 8   ;;  %s61_s28 = sshll.u32 %s3535_s8, 4  ;;  %s62_s28 = int_to_ptr.hbm [resolvable:$true] %s61_s28 }
   0x8   :  { %31 = dma.hbm_to_vmem [thread:$0]  %s24_s20, 2048, %s26_s24, [#allocation4], %s2253_s25, %s2253_s25, %s2254_s26  }
   0x9   :  { %s2255_s29 = smov [#allocation8]   ;;  %s75_s12 = sshll.u32 %s3536_s9, 4  ;;  %s76_s12 = int_to_ptr.vmem [resolvable:$true] %s75_s12 }
   0xa   :  { %s63_s30 = sshll.u32 %s2255_s29, 4  ;;  %s2256_s13 = smov [#allocation9]   ;;  %s64_s30 = int_to_ptr.vmem [resolvable:$true] %s63_s30 }
   0xb   :  { %69 = dma.hbm_to_vmem [thread:$0]  %s62_s28, 1024, %s64_s30, [#allocation7], %s2253_s25, %s2253_s25, %s2254_s26  }
   0xc   :  { %78 = dma.vmem_to_smem %s76_s12, 16, %s2256_s13, [#allocation5]  }
   0xd   :  { %2243 = dma.done.wait [#allocation4], 2048  }
   0xe   :  { %2244 = vsyncadd [#allocation4], 4294965248 }
   0xf   :  { %2245 = dma.done.wait [#allocation7], 2048  }
  0x10   :  { %2246 = vsyncadd [#allocation7], 4294965248 }
  0x11   :  { %2247 = dma.done.wait [#allocation5], 16  }
  0x12   :  { %2248 = vsyncadd [#allocation5], 4294967280 }
  0x13   :  { %95 = sfence }
  0x14   :  { %v1989_v0 = vld [vmem:[%s3529_s2 + $0x18] sm:$0xff]  ;;  %v1988_v1 = vld [vmem:[%s3529_s2 + $0x10] sm:$0xff]  ;;  %v1987_v2 = vld [vmem:[%s3529_s2 + $0x8] sm:$0xff]  ;;  %vm201_vm0 = vcmask 523264   ;;  %v2257_v12 = vmov 0   ;;  %vm336_vm1 = vcmask 130048  }
  0x15   :  { %230 = vmatpush.bf16.msra.mxu0 %v1989_v0  ;;  %1993 = vmatpush.bf16.msra.mxu3 %v1989_v0  ;;  %v1986_v3 = vld [vmem:[%s3529_s2] sm:$0xff]  ;;  %v1984_v5 = vld [vmem:[#allocation6 + $0x30] sm:$0xff]  ;;  %v1983_v7 = vld [vmem:[#allocation6 + $0x28] sm:$0xff]  ;;  %vm515_vm2 = vcmask 261120   ;;  %s1455_s1 = sld [smem:[#allocation9]] }
  0x16   :  { %1991 = vmatpush.bf16.msra.mxu1 %v1989_v0  ;;  %1992 = vmatpush.bf16.msra.mxu2 %v1989_v0  ;;  %v1978_v4 = vld [vmem:[#allocation6] sm:$0xff]  ;;  %v1979_v8 = vld [vmem:[#allocation6 + $0x8] sm:$0xff]  ;;  %v1985_v9 = vld [vmem:[#allocation6 + $0x38] sm:$0xff]  ;;  %s1976_s27 = sld [smem:[#allocation9 + $0x2]] }
  0x17   :  { %v1982_v6 = vld [vmem:[#allocation6 + $0x20] sm:$0xff]  ;;  %v1980_v10 = vld [vmem:[#allocation6 + $0x10] sm:$0xff]  ;;  %v1981_v11 = vld [vmem:[#allocation6 + $0x18] sm:$0xff]  ;;  %2012 = vset.pattern.permute.xlu0 %v2257_v12  ;;  %s1977_s28 = sld [smem:[#allocation9 + $0x3]] }
  0x18   :  { %v313_v13 = vld [vmem:[%s3532_s5] sm:$0xff]  ;;  %v314_v14 = vld [vmem:[%s3532_s5 + $0x8] sm:$0xff]  ;;  %v99_v30 = vld [vmem:[#allocation3 + $0x10] sm:$0xff] }
  0x19   :  { %231 = vmatpush.bf16.msra.mxu0 %v1988_v1  ;;  %1996 = vmatpush.bf16.msra.mxu3 %v1988_v1  ;;  %v2354_v16 = vld [vmem:[%s3530_s3] ss:$0 sm:$0xff]  ;;  %v100_v45 = vld [vmem:[#allocation3 + $0x18] sm:$0xff]  ;;  %v98_v46 = vld [vmem:[#allocation3 + $0x8] sm:$0xff] }
  0x1a   :  { %1994 = vmatpush.bf16.msra.mxu1 %v1988_v1  ;;  %1995 = vmatpush.bf16.msra.mxu2 %v1988_v1  ;;  %v2365_v27 = vld [vmem:[%s3533_s6] ss:$0 sm:$0xff] }
  0x1b   :  { %317 = vperm.xlu0 %2012, %v313_v13   ;;  %v97_v31 = vld [vmem:[#allocation3] sm:$0xff]  ;;  %v501_v34 = vmul.f32 %v2365_v27, %v99_v30  ;;  %v502_v48 = vmul.f32 %v2365_v27, %v100_v45  ;;  %v500_v49 = vmul.f32 %v2365_v27, %v98_v46 }
  0x1c   :  { %v2370_v33 = vld [vmem:[%s3531_s4] sm:$0xff]  ;;  %v499_v35 = vmul.f32 %v2365_v27, %v97_v31 }
  0x1d   :  { %232 = vmatpush.bf16.msra.mxu0 %v1987_v2  ;;  %1999 = vmatpush.bf16.msra.mxu3 %v1987_v2  ;;  %v522_v38 = vsel %vm515_vm2, %v501_v34, 0.0  ;;  %v525_v55 = vsel %vm515_vm2, %v502_v48, 0.0  ;;  %v519_v56 = vsel %vm515_vm2, %v500_v49, 0.0  ;;  %v101_v46 = vld [vmem:[#allocation3 + $0x20] sm:$0xff] }
  0x1e   :  { %1997 = vmatpush.bf16.msra.mxu1 %v1987_v2  ;;  %1998 = vmatpush.bf16.msra.mxu2 %v1987_v2  ;;  %v516_v39 = vsel %vm515_vm2, %v499_v35, 0.0  ;;  %v102_v2 = vld [vmem:[#allocation3 + $0x28] sm:$0xff] }
  0x1f   :  { %523 = vadd.xlane.f32.xlu2 %v522_v38  ;;  %517 = vadd.xlane.f32.xlu1 %v516_v39 }
  0x21   :  { %233 = vmatpush.bf16.msra.mxu0 %v1986_v3  ;;  %2002 = vmatpush.bf16.msra.mxu3 %v1986_v3 }
  0x22   :  { %2000 = vmatpush.bf16.msra.mxu1 %v1986_v3  ;;  %2001 = vmatpush.bf16.msra.mxu2 %v1986_v3 }
  0x23   :  { %322 = vperm.xlu0 %2012, %v314_v14  }
  0x24   :  { %1955 = vmatmul.msk.bf16.vlgmr.msra.gmra.mxu0 %vm201_vm0, %v1978_v4  ;;  %1961 = vmatmul.msk.bf16.vlgmr.msra.gmra.mxu3 %vm201_vm0, %v1984_v5  ;;  %v504_v4 = vmul.f32 %v2365_v27, %v102_v2 }
  0x25   :  { %1959 = vmatmul.msk.bf16.vlgmr.msra.gmra.mxu1 %vm201_vm0, %v1982_v6  ;;  %1960 = vmatmul.msk.bf16.vlgmr.msra.gmra.mxu2 %vm201_vm0, %v1983_v7 }
  0x27   :  { %526 = vadd.xlane.f32.xlu2 %v525_v55  ;;  %520 = vadd.xlane.f32.xlu1 %v519_v56 }
  0x34   :  { %1956 = vmatmul.msk.bf16.gmra.mxu0 %vm201_vm0, %v1979_v8  ;;  %1962 = vmatmul.msk.bf16.gmra.mxu3 %vm201_vm0, %v1985_v9  ;;  %v531_v9 = vsel %vm515_vm2, %v504_v4, 0.0 }
  0x35   :  { %532 = vadd.xlane.f32.xlu1 %v531_v9 }
  0x44   :  { %1957 = vmatmul.msk.bf16.gmra.mxu0 %vm201_vm0, %v1980_v10 }
  0x54   :  { %1958 = vmatmul.msk.bf16.gmra.mxu0 %vm201_vm0, %v1981_v11 }
  0xa1   :  { %v235_v15 = vpop.f32.mrf.mxu0 }
  0xa2   :  { %v279_v17 = vadd.f32 %v2354_v16, %v235_v15  ;;  %v255_v18 = vpop.f32.mrf.mxu1 }
  0xa3   :  { %v287_v36 = vadd.f32 %v2354_v16, %v255_v18  ;;  %v104_v18 = vld [vmem:[#allocation3 + $0x38] sm:$0xff] }
  0xa4   :  { %v297_v21 = vpack.c.bf16 %v279_v17, %v279_v17  ;;  %v103_v17 = vld [vmem:[#allocation3 + $0x30] sm:$0xff] }
  0xa5   :  { %v305_v42 = vpack.c.bf16 %v287_v36, %v287_v36  ;;  %v105_v36 = vld [vmem:[#allocation3 + $0x40] sm:$0xff] }
  0xa6   :  { %v332_v24 = vunpack.c.l.b16 %v297_v21  ;;  %v505_v21 = vmul.f32 %v2365_v27, %v103_v17  ;;  %v507_v39 = vmul.f32 %v2365_v27, %v105_v36 }
  0xa7   :  { %v2357_v19 = vpop.f32.mrf.mxu3  ;;  %v416_v53 = vunpack.c.l.b16 %v305_v42 }
  0xa8   :  { %v260_v41 = vpop.f32.mrf.mxu2 }
  0xa9   :  { %v237_v20 = vpop.f32.mrf.mxu0  ;;  %v289_v7 = vadd.f32 %v2354_v16, %v260_v41  ;;  %v291_v41 = vadd.f32 %v2354_v16, %v2357_v19  ;;  %v107_v19 = vld [vmem:[#allocation3 + $0x50] sm:$0xff] }
  0xaa   :  { %v280_v22 = vadd.f32 %v2354_v16, %v237_v20  ;;  %v257_v29 = vpop.f32.mrf.mxu1  ;;  %v509_v48 = vmul.f32 %v2365_v27, %v107_v19 }
  0xab   :  { %v288_v37 = vadd.f32 %v2354_v16, %v257_v29  ;;  %v307_v13 = vpack.c.bf16 %v289_v7, %v289_v7  ;;  %v112_v7 = vld [vmem:[#allocation3 + $0x78] sm:$0xff] }
  0xac   :  { %v298_v23 = vpack.c.bf16 %v280_v22, %v280_v22  ;;  %v506_v22 = vmul.f32 %v2365_v27, %v104_v18  ;;  %v546_v55 = vsel %vm515_vm2, %v509_v48, 0.0  ;;  %v514_v9 = vmul.f32 %v2365_v27, %v112_v7  ;;  %v2445_v18 = vpop.permute.xlu0 %317 }
  0xad   :  { %v306_v43 = vpack.c.bf16 %v288_v37, %v288_v37  ;;  %v106_v37 = vld [vmem:[#allocation3 + $0x48] sm:$0xff] }
  0xae   :  { %v333_v25 = vunpack.c.l.b16 %v298_v23  ;;  %v537_v29 = vsel %vm515_vm2, %v506_v22, 0.0 }
  0xaf   :  { %v2360_v26 = vpop.f32.mrf.mxu3  ;;  %v417_v54 = vunpack.c.l.b16 %v306_v43  ;;  %538 = vadd.xlane.f32.xlu1 %v537_v29  ;;  %v540_v43 = vsel %vm515_vm2, %v507_v39, 0.0 }
  0xb0   :  { %v334_v28 = vpack.c.b16 %v333_v25, %v332_v24  ;;  %v262_v0 = vpop.f32.mrf.mxu2  ;;  %v436_v24 = vunpack.c.l.b16 %v307_v13  ;;  %v292_v42 = vadd.f32 %v2354_v16, %v2360_v26  ;;  %v503_v26 = vmul.f32 %v2365_v27, %v101_v46  ;;  %v2436_v13 = vpop.xlane.xlu1 %517 }
  0xb1   :  { %v240_v32 = vpop.f32.mrf.mxu0  ;;  %v418_v61 = vpack.c.b16 %v417_v54, %v416_v53  ;;  %v290_v8 = vadd.f32 %v2354_v16, %v262_v0 }
  0xb2   :  { %347 = vmatpush.bf16.msrb.mxu1 %v334_v28  ;;  %v281_v40 = vadd.f32 %v2354_v16, %v240_v32  ;;  %v534_v28 = vsel %vm515_vm2, %v505_v21, 0.0  ;;  %v528_v53 = vsel %vm515_vm2, %v503_v26, 0.0 }
  0xb3   :  { %v308_v14 = vpack.c.bf16 %v290_v8, %v290_v8  ;;  %535 = vadd.xlane.f32.xlu2 %v534_v28  ;;  %529 = vadd.xlane.f32.xlu0 %v528_v53 }
  0xb4   :  { %v299_v50 = vpack.c.bf16 %v281_v40, %v281_v40  ;;  %v508_v40 = vmul.f32 %v2365_v27, %v106_v37 }
  0xb5   :  { %1967 = vmatmul.msk.bf16.vlgmr.msrb.gmra.mxu1 %vm336_vm1, %v2370_v33  ;;  %v437_v25 = vunpack.c.l.b16 %v308_v14  ;;  %v2441_v14 = vstv %s3534_s7  ;;  %s1975_s7 = sld [smem:[#allocation9 + $0x1]] }
  0xb6   :  { %v356_v58 = vunpack.c.l.b16 %v299_v50  ;;  %v309_v50 = vpack.c.bf16 %v291_v41, %v291_v41 }
  0xb7   :  { %v270_v44 = vpop.f32.mrf.mxu3  ;;  %v438_v34 = vpack.c.b16 %v437_v25, %v436_v24 }
  0xb8   :  { %v293_v52 = vadd.f32 %v2354_v16, %v270_v44  ;;  %v543_v44 = vsel %vm515_vm2, %v508_v40, 0.0  ;;  %v2443_v17 = vpop.xlane.xlu1 %520 }
  0xb9   :  { %v242_v47 = vpop.f32.mrf.mxu0  ;;  %544 = vadd.xlane.f32.xlu1 %v543_v44 }
  0xba   :  { %v282_v51 = vadd.f32 %v2354_v16, %v242_v47  ;;  %v311_v60 = vpack.c.bf16 %v293_v52, %v293_v52  ;;  %v108_v47 = vld [vmem:[#allocation3 + $0x58] sm:$0xff] }
  0xbb   :  { %541 = vadd.xlane.f32.xlu2 %v540_v43  ;;  %v510_v49 = vmul.f32 %v2365_v27, %v108_v47 }
  0xbc   :  { %v300_v57 = vpack.c.bf16 %v282_v51, %v282_v51  ;;  %v476_v5 = vunpack.c.l.b16 %v311_v60  ;;  %v310_v51 = vpack.c.bf16 %v292_v42, %v292_v42  ;;  %v456_v60 = vunpack.c.l.b16 %v309_v50 }
  0xbd   :  { %v549_v56 = vsel %vm515_vm2, %v510_v49, 0.0 }
  0xbe   :  { %v357_v59 = vunpack.c.l.b16 %v300_v57 }
  0xbf   :  { %v272_v62 = vpop.f32.mrf.mxu3 }
  0xc0   :  { %v358_v63 = vpack.c.b16 %v357_v59, %v356_v58  ;;  %v294_v1 = vadd.f32 %v2354_v16, %v272_v62  ;;  %v109_v58 = vld [vmem:[#allocation3 + $0x60] sm:$0xff]  ;;  %v110_v59 = vld [vmem:[#allocation3 + $0x68] sm:$0xff] }
  0xc1   :  { %v245_v3 = vpop.f32.mrf.mxu0  ;;  %550 = vadd.xlane.f32.xlu1 %v549_v56  ;;  %v511_v0 = vmul.f32 %v2365_v27, %v109_v58 }
  0xc2   :  { %367 = vmatpush.bf16.msrb.mxu2 %v358_v63  ;;  %v312_v6 = vpack.c.bf16 %v294_v1, %v294_v1  ;;  %v283_v10 = vadd.f32 %v2354_v16, %v245_v3  ;;  %v512_v1 = vmul.f32 %v2365_v27, %v110_v59 }
  0xc3   :  { %547 = vadd.xlane.f32.xlu2 %v546_v55 }
  0xc4   :  { %v477_v11 = vunpack.c.l.b16 %v312_v6  ;;  %v301_v15 = vpack.c.bf16 %v283_v10, %v283_v10  ;;  %v555_v6 = vsel %vm515_vm2, %v512_v1, 0.0 }
  0xc5   :  { %1968 = vmatmul.msk.bf16.vlgmr.msrb.gmra.mxu2 %vm336_vm1, %v2370_v33 }
  0xc6   :  { %427 = vmatpush.bf16.msra.mxu2 %v418_v61  ;;  %v478_v12 = vpack.c.b16 %v477_v11, %v476_v5  ;;  %v376_v30 = vunpack.c.l.b16 %v301_v15  ;;  %v457_v61 = vunpack.c.l.b16 %v310_v51  ;;  %v552_v5 = vsel %vm515_vm2, %v511_v0, 0.0 }
  0xc7   :  { %v561_v11 = vsel %vm515_vm2, %v514_v9, 0.0 }
  0xc8   :  { %v458_v3 = vpack.c.b16 %v457_v61, %v456_v60 }
  0xc9   :  { %v247_v20 = vpop.f32.mrf.mxu0  ;;  %556 = vadd.xlane.f32.xlu1 %v555_v6 }
  0xca   :  { %487 = vmatpush.bf16.msrb.mxu2 %v478_v12  ;;  %v284_v23 = vadd.f32 %v2354_v16, %v247_v20  ;;  %v524_v12 = vpop.xlane.xlu2 %523 }
  0xcb   :  { %553 = vadd.xlane.f32.xlu2 %v552_v5  ;;  %v567_v20 = vadd.f32 %v2441_v14, %v524_v12 }
  0xcc   :  { %v302_v31 = vpack.c.bf16 %v284_v23, %v284_v23 }
  0xcd   :  { %v583_v23 = vmul.f32 0.17677669, %v567_v20 }
  0xce   :  { %v377_v32 = vunpack.c.l.b16 %v302_v31  ;;  %v533_v31 = vpop.xlane.xlu1 %532 }
  0xd0   :  { %v378_v35 = vpack.c.b16 %v377_v32, %v376_v30 }
  0xd1   :  { %v250_v38 = vpop.f32.mrf.mxu0  ;;  %562 = vadd.xlane.f32.xlu1 %v561_v11 }
  0xd2   :  { %387 = vmatpush.bf16.msrb.mxu3 %v378_v35  ;;  %v285_v45 = vadd.f32 %v2354_v16, %v250_v38  ;;  %v527_v15 = vpop.xlane.xlu2 %526 }
  0xd3   :  { %v568_v21 = vadd.f32 %v2441_v14, %v527_v15 }
  0xd4   :  { %v303_v52 = vpack.c.bf16 %v285_v45, %v285_v45 }
  0xd5   :  { %1969 = vmatmul.msk.bf16.vlgmr.msrb.gmra.mxu3 %vm336_vm1, %v2370_v33  ;;  %1971 = vmatmul.msk.bf16.vlgmr.msra.gmra.mxu2 %vm336_vm1, %v2370_v33 }
  0xd6   :  { %447 = vmatpush.bf16.msra.mxu3 %v438_v34  ;;  %v396_v62 = vunpack.c.l.b16 %v303_v52  ;;  %v2455_v34 = vpop.permute.xlu0 %322 }
  0xd9   :  { %v252_v54 = vpop.f32.mrf.mxu0 }
  0xda   :  { %v286_v57 = vadd.f32 %v2354_v16, %v252_v54  ;;  %v111_v16 = vld [vmem:[#allocation3 + $0x70] sm:$0xff] }
  0xdb   :  { %v513_v8 = vmul.f32 %v2365_v27, %v111_v16 }
  0xdc   :  { %v304_v63 = vpack.c.bf16 %v286_v57, %v286_v57 }
  0xdd   :  { %v558_v10 = vsel %vm515_vm2, %v513_v8, 0.0 }
  0xde   :  { %v397_v2 = vunpack.c.l.b16 %v304_v63  ;;  %559 = vadd.xlane.f32.xlu2 %v558_v10 }
  0xe0   :  { %v398_v4 = vpack.c.b16 %v397_v2, %v396_v62 }
  0xe2   :  { %407 = vmatpush.bf16.msra.mxu1 %v398_v4 }
  0xe5   :  { %1970 = vmatmul.msk.bf16.vlgmr.msra.gmra.mxu1 %vm336_vm1, %v2370_v33  ;;  %1972 = vmatmul.msk.bf16.vlgmr.msra.gmra.mxu3 %vm336_vm1, %v2370_v33 }
  0xe6   :  { %467 = vmatpush.bf16.msrb.mxu1 %v458_v3  ;;  %1974 = vmatmul.msk.bf16.vlgmr.msrb.gmra.mxu2 %vm336_vm1, %v2370_v33  ;;  %v570_v3 = vadd.f32 %v2441_v14, %v533_v31 }
  0xe8   :  { %v2488_v11 = vmul.f32 0.17677669, %v570_v3 }
  0xf5   :  { %1973 = vmatmul.msk.bf16.vlgmr.msrb.gmra.mxu1 %vm336_vm1, %v2370_v33  ;;  %v584_v33 = vmul.f32 0.17677669, %v568_v21 }
  0xf7   :  { %v700_v25 = vmax.f32 %v583_v23, %v584_v33 }
  0xf9   :  { %v701_v29 = vrot.slane %v700_v25, 4 }
  0xfb   :  { %v702_v32 = vmax.f32 %v700_v25, %v701_v29 }
  0xfd   :  { %v703_v36 = vrot.slane %v702_v32, 2 }
  0xff   :  { %v704_v38 = vmax.f32 %v702_v32, %v703_v36 }
 0x101   :  { %v705_v40 = vrot.slane %v704_v38, 1 }
 0x103   :  { %v706_v42 = vmax.f32 %v704_v38, %v705_v40 }
 0x105   :  { %v751_v45 = vsub.f32 %v583_v23, %v706_v42  ;;  %v752_v46 = vsub.f32 %v584_v33, %v706_v42 }
 0x107   :  { %v769_v26 = vmul.f32 1.442695, %v751_v45  ;;  %v771_v48 = vmul.f32 1.442695, %v752_v46 }
 0x109   :  { %2015 = vpow2.f32 %v769_v26 }
 0x10a   :  { %2017 = vpow2.f32 %v771_v48 }
 0x10f   :  { %v2474_v59 = vpop.eup %2015 }
 0x110   :  { %v2476_v60 = vpop.eup %2017 }
 0x111   :  { %v804_v63 = vadd.f32 %v2476_v60, %v2474_v59 }
 0x113   :  { %v805_v2 = vrot.slane %v804_v63, 4 }
 0x115   :  { %v806_v16 = vadd.f32 %v805_v2, %v804_v63 }
 0x117   :  { %v807_v10 = vrot.slane %v806_v16, 2 }
 0x119   :  { %v808_v23 = vadd.f32 %v807_v10, %v806_v16 }
 0x11b   :  { %v809_v32 = vrot.slane %v808_v23, 1 }
 0x11d   :  { %v810_v40 = vadd.f32 %v809_v32, %v808_v23 }
 0x11f   :  { %vm874_vm3 = vweird.f32 %v810_v40  ;;  %v880_v2 = vand.u32 2147483648, %v810_v40 }
 0x121   :  { %v881_v23 = vor.u32 1.1754944e-38, %v880_v2 }
 0x122   :  { %v539_v44 = vpop.xlane.xlu1 %538 }
 0x123   :  { %v572_v47 = vadd.f32 %v2441_v14, %v539_v44 }
 0x125   :  { %v588_v50 = vmul.f32 0.17677669, %v572_v47 }
 0x126   :  { %v536_v43 = vpop.xlane.xlu2 %535  ;;  %v530_v6 = vpop.xlane.xlu0 %529 }
 0x127   :  { %v571_v19 = vadd.f32 %v2441_v14, %v536_v43  ;;  %v569_v9 = vadd.f32 %v2441_v14, %v530_v6 }
 0x129   :  { %v587_v49 = vmul.f32 0.17677669, %v571_v19  ;;  %v2491_v33 = vmul.f32 0.17677669, %v569_v9  ;;  %v878_v9 = vand.u32 2147483647, %v810_v40 }
 0x12b   :  { %v714_v51 = vmax.f32 %v587_v49, %v588_v50  ;;  %vm879_vm6 = vcmp.eq.f32.partialorder %v878_v9, 8.507059e+37 }
 0x12c   :  { %v2472_v58 = vpop.xlane.xlu1 %544 }
 0x12d   :  { %v715_v54 = vrot.slane %v714_v51, 4 }
 0x12e   :  { %v2468_v55 = vpop.xlane.xlu2 %541 }
 0x12f   :  { %v716_v57 = vmax.f32 %v714_v51, %v715_v54 }
 0x131   :  { %v717_v62 = vrot.slane %v716_v57, 2 }
 0x132   :  { %v349_v22 = vpop.f32.mrf.mxu1 }
 0x133   :  { %v2450_v24 = vadd.f32 %v349_v22, %v2445_v18  ;;  %v718_v0 = vmax.f32 %v716_v57, %v717_v62 }
 0x134   :  { %v551_v22 = vpop.xlane.xlu1 %550 }
 0x135   :  { %v597_v28 = vmul.f32 %v2365_v27, %v2450_v24  ;;  %v719_v5 = vrot.slane %v718_v0, 1  ;;  %v576_v36 = vadd.f32 %v2441_v14, %v551_v22 }
 0x136   :  { %v548_v12 = vpop.xlane.xlu2 %547 }
 0x137   :  { %v613_v30 = vsel %vm515_vm2, %v597_v28, 0.0  ;;  %v720_v8 = vmax.f32 %v718_v0, %v719_v5  ;;  %v575_v29 = vadd.f32 %v2441_v14, %v548_v12  ;;  %v2509_v45 = vmul.f32 0.17677669, %v576_v36 }
 0x138   :  { %614 = vadd.xlane.f32.xlu2 %v613_v30 }
 0x139   :  { %v755_v20 = vsub.f32 %v587_v49, %v720_v8  ;;  %v756_v21 = vsub.f32 %v588_v50, %v720_v8  ;;  %v2507_v44 = vmul.f32 0.17677669, %v575_v29 }
 0x13a   :  { %v351_v35 = vpop.f32.mrf.mxu1 }
 0x13b   :  { %v2458_v37 = vadd.f32 %v351_v35, %v2455_v34  ;;  %v777_v25 = vmul.f32 1.442695, %v755_v20  ;;  %v779_v28 = vmul.f32 1.442695, %v756_v21  ;;  %v707_v35 = vmax.f32 %v2491_v33, %v2488_v11 }
 0x13c   :  { %v728_v48 = vmax.f32 %v2507_v44, %v2509_v45 }
 0x13d   :  { %v598_v39 = vmul.f32 %v2365_v27, %v2458_v37  ;;  %2019 = vpow2.f32 %v777_v25 }
 0x13e   :  { %2021 = vpow2.f32 %v779_v28  ;;  %v729_v0 = vrot.slane %v728_v48, 4 }
 0x13f   :  { %v616_v41 = vsel %vm515_vm2, %v598_v39, 0.0  ;;  %2023 = vrcp.f32 %v810_v40 }
 0x140   :  { %617 = vadd.xlane.f32.xlu0 %v616_v41  ;;  %v708_v41 = vrot.slane %v707_v35, 4  ;;  %v730_v21 = vmax.f32 %v728_v48, %v729_v0  ;;  %v566_v48 = vadd.f32 %v2441_v14, %v2443_v17 }
 0x142   :  { %v709_v47 = vmax.f32 %v707_v35, %v708_v41 }
 0x143   :  { %v2513_v26 = vpop.eup %2019 }
 0x144   :  { %v2517_v49 = vpop.eup %2021 }
 0x145   :  { %v818_v57 = vadd.f32 %v2517_v49, %v2513_v26 }
 0x147   :  { %v819_v16 = vrot.slane %v818_v57, 4 }
 0x148   :  { %v369_v52 = vpop.f32.mrf.mxu2 }
 0x149   :  { %v2466_v53 = vadd.f32 %v369_v52, %v2445_v18  ;;  %v710_v52 = vrot.slane %v709_v47, 2 }
 0x14b   :  { %v599_v56 = vmul.f32 %v2365_v27, %v2466_v53  ;;  %v711_v63 = vmax.f32 %v709_v47, %v710_v52  ;;  %v557_v52 = vpop.xlane.xlu1 %556 }
 0x14d   :  { %v619_v61 = vsel %vm515_vm2, %v599_v56, 0.0 }
 0x14e   :  { %620 = vadd.xlane.f32.xlu1 %v619_v61  ;;  %v2024_v61 = vpop.eup %2023 }
 0x14f   :  { %vm875_vm4 = vweird.f32 %v2024_v61 }
 0x150   :  { %v371_v1 = vpop.f32.mrf.mxu2  ;;  %vm2537_vm5 = vmor %vm874_vm3, %vm875_vm4 }
 0x151   :  { %v2483_v4 = vadd.f32 %v371_v1, %v2455_v34  ;;  %v870_v1 = vmul.f32 %v2024_v61, %v810_v40 }
 0x153   :  { %v600_v7 = vmul.f32 %v2365_v27, %v2483_v4  ;;  %v871_v8 = vsub.f32 1.0, %v870_v1 }
 0x155   :  { %v622_v15 = vsel %vm515_vm2, %v600_v7, 0.0  ;;  %v712_v7 = vrot.slane %v711_v63, 1  ;;  %v872_v22 = vmul.f32 %v2024_v61, %v871_v8 }
 0x156   :  { %623 = vadd.xlane.f32.xlu2 %v622_v15  ;;  %v820_v15 = vadd.f32 %v819_v16, %v818_v57 }
 0x157   :  { %v713_v20 = vmax.f32 %v711_v63, %v712_v7  ;;  %v873_v35 = vadd.f32 %v2024_v61, %v872_v22 }
 0x158   :  { %v389_v30 = vpop.f32.mrf.mxu3  ;;  %v429_v31 = vpop.f32.mrf.mxu2 }
 0x159   :  { %v2498_v38 = vadd.f32 %v389_v30, %v2445_v18  ;;  %v2501_v39 = vadd.f32 %v429_v31, %v2445_v18  ;;  %v821_v30 = vrot.slane %v820_v15, 2  ;;  %v753_v31 = vsub.f32 %v2491_v33, %v713_v20 }
 0x15a   :  { %v754_v32 = vsub.f32 %v2488_v11, %v713_v20  ;;  %v565_v11 = vadd.f32 %v2441_v14, %v2436_v13 }
 0x15b   :  { %v601_v42 = vmul.f32 %v2365_v27, %v2498_v38  ;;  %v605_v43 = vmul.f32 %v2365_v27, %v2501_v39  ;;  %v773_v1 = vmul.f32 1.442695, %v753_v31 }
 0x15d   :  { %v625_v46 = vsel %vm515_vm2, %v601_v42, 0.0  ;;  %v637_v19 = vsel %vm515_vm2, %v605_v43, 0.0  ;;  %v822_v43 = vadd.f32 %v821_v30, %v820_v15 }
 0x15e   :  { %626 = vadd.xlane.f32.xlu0 %v625_v46  ;;  %638 = vadd.xlane.f32.xlu1 %v637_v19  ;;  %v731_v46 = vrot.slane %v730_v21, 2  ;;  %v877_v19 = vsel %vm2537_vm5, %v2024_v61, %v873_v35 }
 0x15f   :  { %v882_v47 = vsel %vm879_vm6, %v881_v23, %v877_v19  ;;  %v823_v17 = vrot.slane %v822_v43, 1 }
 0x160   :  { %v391_v50 = vpop.f32.mrf.mxu3  ;;  %v431_v51 = vpop.f32.mrf.mxu2  ;;  %v2561_v57 = vmul.f32 %v2474_v59, %v882_v47  ;;  %v732_v0 = vmax.f32 %v730_v21, %v731_v46  ;;  %v578_v59 = vadd.f32 %v2441_v14, %v557_v52 }
 0x161   :  { %v2520_v54 = vadd.f32 %v391_v50, %v2455_v34  ;;  %v2523_v56 = vadd.f32 %v431_v51, %v2455_v34  ;;  %v554_v51 = vpop.xlane.xlu2 %553  ;;  %v824_v7 = vadd.f32 %v823_v17, %v822_v43 }
 0x162   :  { %v409_v62 = vpop.f32.mrf.mxu1  ;;  %v577_v2 = vadd.f32 %v2441_v14, %v554_v51  ;;  %v733_v21 = vrot.slane %v732_v0, 1  ;;  %v2589_v23 = vmul.f32 0.17677669, %v578_v59 }
 0x163   :  { %v606_v3 = vmul.f32 %v2365_v27, %v2523_v56  ;;  %v2530_v5 = vadd.f32 %v409_v62, %v2445_v18  ;;  %v602_v6 = vmul.f32 %v2365_v27, %v2520_v54  ;;  %v2564_v62 = vmul.f32 %v2476_v60, %v882_v47 }
 0x164   :  { %v2576_v60 = vmul.f32 0.17677669, %v566_v48  ;;  %2025 = vrcp.f32 %v824_v7  ;;  %v2587_v22 = vmul.f32 0.17677669, %v577_v2  ;;  %v912_v47 = vand.u32 2147483648, %v824_v7 }
 0x165   :  { %3547 = vst [vmem:[#allocation13_spill] sm:$0xff] %v2530_v5  ;;  %v640_v10 = vsel %vm515_vm2, %v606_v3, 0.0  ;;  %v628_v12 = vsel %vm515_vm2, %v602_v6, 0.0  ;;  %v603_v29 = vmul.f32 %v2365_v27, %v2530_v5  ;;  %v2574_v3 = vmul.f32 0.17677669, %v565_v11 }
 0x166   :  { %641 = vadd.xlane.f32.xlu2 %v640_v10  ;;  %629 = vadd.xlane.f32.xlu1 %v628_v12  ;;  %v775_v12 = vmul.f32 1.442695, %v754_v32  ;;  %2027 = vpow2.f32 %v773_v1  ;;  %vm906_vm7 = vweird.f32 %v824_v7  ;;  %v574_v1 = vadd.f32 %v2441_v14, %v2472_v58 }
 0x167   :  { %v631_v50 = vsel %vm515_vm2, %v603_v29, 0.0  ;;  %v693_v25 = vmax.f32 %v2574_v3, %v2576_v60 }
 0x168   :  { %v449_v28 = vpop.f32.mrf.mxu3  ;;  %2029 = vpow2.f32 %v775_v12 }
 0x169   :  { %v2546_v36 = vadd.f32 %v449_v28, %v2445_v18  ;;  %v489_v41 = vpop.f32.mrf.mxu2  ;;  %v694_v46 = vrot.slane %v693_v25, 4 }
 0x16a   :  { %v2549_v40 = vadd.f32 %v489_v41, %v2445_v18  ;;  %v411_v42 = vpop.f32.mrf.mxu1  ;;  %v734_v41 = vmax.f32 %v732_v0, %v733_v21  ;;  %v2026_v43 = vpop.eup %2025  ;;  %v573_v0 = vadd.f32 %v2441_v14, %v2468_v55 }
 0x16b   :  { %3550 = vst [vmem:[#allocation14_spill] sm:$0xff] %v2546_v36  ;;  %v607_v33 = vmul.f32 %v2365_v27, %v2546_v36  ;;  %v2567_v61 = vadd.f32 %v411_v42, %v2455_v34  ;;  %v735_v42 = vmax.f32 %v2587_v22, %v2589_v23  ;;  %v902_v11 = vmul.f32 %v2026_v43, %v824_v7 }
 0x16c   :  { %3551 = vst [vmem:[#allocation15_spill] sm:$0xff] %v2549_v40  ;;  %v611_v13 = vmul.f32 %v2365_v27, %v2549_v40  ;;  %v759_v19 = vsub.f32 %v2507_v44, %v734_v41  ;;  %vm907_vm8 = vweird.f32 %v2026_v43  ;;  %v695_v17 = vmax.f32 %v693_v25, %v694_v46 }
 0x16d   :  { %3552 = vst [vmem:[#allocation16_spill] sm:$0xff] %v2567_v61  ;;  %v643_v63 = vsel %vm515_vm2, %v607_v33, 0.0  ;;  %v604_v10 = vmul.f32 %v2365_v27, %v2567_v61  ;;  %v2607_v33 = vpop.eup %2027  ;;  %v736_v52 = vrot.slane %v735_v42, 4  ;;  %vm2626_vm9 = vmor %vm906_vm7, %vm907_vm8 }
 0x16e   :  { %644 = vadd.xlane.f32.xlu0 %v643_v63  ;;  %632 = vadd.xlane.f32.xlu2 %v631_v50  ;;  %v655_v6 = vsel %vm515_vm2, %v611_v13, 0.0  ;;  %v910_v50 = vand.u32 2147483647, %v824_v7  ;;  %v2611_v63 = vpop.eup %2029  ;;  %v903_v13 = vsub.f32 1.0, %v902_v11  ;;  %v2633_v7 = vmul.f32 0.17677669, %v573_v0 }
 0x16f   :  { %656 = vadd.xlane.f32.xlu1 %v655_v6  ;;  %v634_v31 = vsel %vm515_vm2, %v604_v10, 0.0  ;;  %v811_v2 = vadd.f32 %v2611_v63, %v2607_v33  ;;  %v913_v6 = vor.u32 1.1754944e-38, %v912_v47  ;;  %v737_v12 = vmax.f32 %v735_v42, %v736_v52 }
 0x170   :  { %v451_v16 = vpop.f32.mrf.mxu3  ;;  %v904_v59 = vmul.f32 %v2026_v43, %v903_v13  ;;  %vm911_vm10 = vcmp.eq.f32.partialorder %v910_v50, 8.507059e+37 }
 0x171   :  { %v2580_v8 = vadd.f32 %v451_v16, %v2455_v34  ;;  %v491_v9 = vpop.f32.mrf.mxu2  ;;  %v812_v10 = vrot.slane %v811_v2, 4  ;;  %v738_v25 = vrot.slane %v737_v12, 2 }
 0x172   :  { %v2585_v15 = vadd.f32 %v491_v9, %v2455_v34  ;;  %v469_v20 = vpop.f32.mrf.mxu1  ;;  %v905_v58 = vadd.f32 %v2026_v43, %v904_v59 }
 0x173   :  { %3553 = vst [vmem:[#allocation17_spill] sm:$0xff] %v2580_v8  ;;  %v608_v29 = vmul.f32 %v2365_v27, %v2580_v8  ;;  %v2598_v30 = vadd.f32 %v469_v20, %v2445_v18  ;;  %v760_v18 = vsub.f32 %v2509_v45, %v734_v41  ;;  %v785_v45 = vmul.f32 1.442695, %v759_v19 }
 0x174   :  { %3554 = vst [vmem:[#allocation18_spill] sm:$0xff] %v2585_v15  ;;  %v612_v28 = vmul.f32 %v2365_v27, %v2585_v15  ;;  %v813_v21 = vadd.f32 %v812_v10, %v811_v2 }
 0x175   :  { %3555 = vst [vmem:[#allocation19_spill] sm:$0xff] %v2598_v30  ;;  %v646_v35 = vsel %vm515_vm2, %v608_v29, 0.0  ;;  %v609_v48 = vmul.f32 %v2365_v27, %v2598_v30  ;;  %2031 = vpow2.f32 %v785_v45  ;;  %v787_v55 = vmul.f32 1.442695, %v760_v18 }
 0x176   :  { %635 = vadd.xlane.f32.xlu0 %v634_v31  ;;  %v658_v32 = vsel %vm515_vm2, %v612_v28, 0.0  ;;  %v2635_v28 = vmul.f32 0.17677669, %v574_v1  ;;  %v696_v29 = vrot.slane %v695_v17, 2 }
 0x177   :  { %659 = vadd.xlane.f32.xlu2 %v658_v32  ;;  %647 = vadd.xlane.f32.xlu1 %v646_v35  ;;  %v649_v16 = vsel %vm515_vm2, %v609_v48, 0.0  ;;  %2033 = vpow2.f32 %v787_v55  ;;  %v814_v32 = vrot.slane %v813_v21, 2  ;;  %v739_v35 = vmax.f32 %v737_v12, %v738_v25 }
 0x178   :  { %v697_v47 = vmax.f32 %v695_v17, %v696_v29 }
 0x179   :  { %v815_v19 = vadd.f32 %v814_v32, %v813_v21  ;;  %v740_v18 = vrot.slane %v739_v35, 1 }
 0x17a   :  { %v471_v51 = vpop.f32.mrf.mxu1  ;;  %v698_v0 = vrot.slane %v697_v47, 1 }
 0x17b   :  { %v2614_v44 = vadd.f32 %v471_v51, %v2455_v34  ;;  %v2643_v46 = vpop.eup %2031  ;;  %v816_v48 = vrot.slane %v815_v19, 1  ;;  %v741_v50 = vmax.f32 %v739_v35, %v740_v18 }
 0x17c   :  { %v699_v17 = vmax.f32 %v697_v47, %v698_v0 }
 0x17d   :  { %3556 = vst [vmem:[#allocation20_spill] sm:$0xff] %v2614_v44  ;;  %v610_v9 = vmul.f32 %v2365_v27, %v2614_v44  ;;  %v909_v27 = vsel %vm2626_vm9, %v2026_v43, %v905_v58  ;;  %v721_v43 = vmax.f32 %v2633_v7, %v2635_v28  ;;  %v2647_v11 = vpop.eup %2033  ;;  %v761_v52 = vsub.f32 %v2587_v22, %v741_v50  ;;  %v560_v22 = vpop.xlane.xlu2 %559 }
 0x17e   :  { %v914_v31 = vsel %vm911_vm10, %v913_v6, %v909_v27  ;;  %v832_v51 = vadd.f32 %v2647_v11, %v2643_v46  ;;  %v563_v58 = vpop.xlane.xlu1 %562  ;;  %v579_v32 = vadd.f32 %v2441_v14, %v560_v22 }
 0x17f   :  { %650 = vadd.xlane.f32.xlu2 %v649_v16  ;;  %v652_v20 = vsel %vm515_vm2, %v610_v9, 0.0  ;;  %v2638_v41 = vmul.f32 %v2513_v26, %v914_v31  ;;  %v2641_v42 = vmul.f32 %v2517_v49, %v914_v31  ;;  %v817_v26 = vadd.f32 %v816_v48, %v815_v19 }
 0x180   :  { %653 = vadd.xlane.f32.xlu0 %v652_v20  ;;  %v762_v49 = vsub.f32 %v2589_v23, %v741_v50  ;;  %v722_v13 = vrot.slane %v721_v43, 4  ;;  %v833_v45 = vrot.slane %v832_v51, 4  ;;  %v789_v2 = vmul.f32 1.442695, %v761_v52 }
 0x181   :  { %2035 = vrcp.f32 %v817_v26  ;;  %v749_v23 = vsub.f32 %v2574_v3, %v699_v17  ;;  %v750_v20 = vsub.f32 %v2576_v60, %v699_v17  ;;  %vm890_vm11 = vweird.f32 %v817_v26 }
 0x182   :  { %v834_v1 = vadd.f32 %v833_v45, %v832_v51  ;;  %v791_v59 = vmul.f32 1.442695, %v762_v49  ;;  %v723_v6 = vmax.f32 %v721_v43, %v722_v13  ;;  %2037 = vpow2.f32 %v789_v2 }
 0x183   :  { %v896_v21 = vand.u32 2147483648, %v817_v26  ;;  %v894_v27 = vand.u32 2147483647, %v817_v26  ;;  %v580_v35 = vadd.f32 %v2441_v14, %v563_v58  ;;  %v765_v3 = vmul.f32 1.442695, %v749_v23 }
 0x184   :  { %v835_v16 = vrot.slane %v834_v1, 2  ;;  %2039 = vpow2.f32 %v791_v59  ;;  %v724_v10 = vrot.slane %v723_v6, 2  ;;  %v767_v48 = vmul.f32 1.442695, %v750_v20 }
 0x185   :  { %v897_v60 = vor.u32 1.1754944e-38, %v896_v21  ;;  %vm895_vm14 = vcmp.eq.f32.partialorder %v894_v27, 8.507059e+37  ;;  %v2665_v52 = vmul.f32 0.17677669, %v580_v35 }
 0x186   :  { %v836_v9 = vadd.f32 %v835_v16, %v834_v1  ;;  %v725_v18 = vmax.f32 %v723_v6, %v724_v10 }
 0x187   :  { %v2036_v34 = vpop.eup %2035 }
 0x188   :  { %v886_v55 = vmul.f32 %v2036_v34, %v817_v26  ;;  %v837_v12 = vrot.slane %v836_v9, 1  ;;  %vm891_vm12 = vweird.f32 %v2036_v34  ;;  %v2655_v31 = vpop.eup %2037  ;;  %v2663_v26 = vmul.f32 0.17677669, %v579_v32 }
 0x189   :  { %vm892_vm13 = vmor %vm890_vm11, %vm891_vm12  ;;  %v726_v49 = vrot.slane %v725_v18, 1 }
 0x18a   :  { %v887_v25 = vsub.f32 1.0, %v886_v55  ;;  %v838_v29 = vadd.f32 %v837_v12, %v836_v9  ;;  %v2659_v19 = vpop.eup %2039  ;;  %v742_v17 = vmax.f32 %v2663_v26, %v2665_v52 }
 0x18b   :  { %v839_v47 = vadd.f32 %v2659_v19, %v2655_v31  ;;  %v727_v9 = vmax.f32 %v725_v18, %v726_v49 }
 0x18c   :  { %v888_v43 = vmul.f32 %v2036_v34, %v887_v25  ;;  %2041 = vrcp.f32 %v838_v29  ;;  %vm938_vm15 = vweird.f32 %v838_v29  ;;  %v944_v10 = vand.u32 2147483648, %v838_v29 }
 0x18d   :  { %v840_v51 = vrot.slane %v839_v47, 4  ;;  %2043 = vpow2.f32 %v765_v3  ;;  %v942_v55 = vand.u32 2147483647, %v838_v29  ;;  %v743_v23 = vrot.slane %v742_v17, 4 }
 0x18e   :  { %v889_v50 = vadd.f32 %v2036_v34, %v888_v43  ;;  %2045 = vpow2.f32 %v767_v48  ;;  %v757_v21 = vsub.f32 %v2633_v7, %v727_v9  ;;  %v758_v32 = vsub.f32 %v2635_v28, %v727_v9 }
 0x18f   :  { %v841_v0 = vadd.f32 %v840_v51, %v839_v47  ;;  %vm943_vm3 = vcmp.eq.f32.partialorder %v942_v55, 8.507059e+37  ;;  %v744_v18 = vmax.f32 %v742_v17, %v743_v23 }
 0x190   :  { %v893_v13 = vsel %vm892_vm13, %v2036_v34, %v889_v50  ;;  %v781_v3 = vmul.f32 1.442695, %v757_v21  ;;  %v783_v7 = vmul.f32 1.442695, %v758_v32 }
 0x191   :  { %v898_v45 = vsel %vm895_vm14, %v897_v60, %v893_v13  ;;  %v842_v16 = vrot.slane %v841_v0, 2  ;;  %v745_v50 = vrot.slane %v744_v18, 2 }
 0x192   :  { %v2042_v1 = vpop.eup %2041  ;;  %v2668_v2 = vmul.f32 %v2607_v33, %v898_v45  ;;  %v2671_v59 = vmul.f32 %v2611_v63, %v898_v45  ;;  %v945_v63 = vor.u32 1.1754944e-38, %v944_v10 }
 0x193   :  { %v934_v6 = vmul.f32 %v2042_v1, %v838_v29  ;;  %vm939_vm0 = vweird.f32 %v2042_v1  ;;  %v843_v12 = vadd.f32 %v842_v16, %v841_v0  ;;  %v2675_v22 = vpop.eup %2043  ;;  %v746_v45 = vmax.f32 %v744_v18, %v745_v50 }
 0x194   :  { %v2677_v20 = vpop.eup %2045  ;;  %vm940_vm1 = vmor %vm938_vm15, %vm939_vm0 }
 0x195   :  { %v935_v34 = vsub.f32 1.0, %v934_v6  ;;  %v844_v33 = vrot.slane %v843_v12, 1  ;;  %v797_v29 = vadd.f32 %v2677_v20, %v2675_v22 }
 0x197   :  { %v936_v58 = vmul.f32 %v2042_v1, %v935_v34  ;;  %v845_v27 = vadd.f32 %v844_v33, %v843_v12  ;;  %v798_v48 = vrot.slane %v797_v29, 4  ;;  %v747_v34 = vrot.slane %v746_v45, 1 }
 0x199   :  { %v937_v25 = vadd.f32 %v2042_v1, %v936_v58  ;;  %2047 = vrcp.f32 %v845_v27  ;;  %v799_v49 = vadd.f32 %v798_v48, %v797_v29  ;;  %v960_v13 = vand.u32 2147483648, %v845_v27 }
 0x19a   :  { %2049 = vpow2.f32 %v781_v3  ;;  %vm954_vm4 = vweird.f32 %v845_v27  ;;  %v748_v32 = vmax.f32 %v746_v45, %v747_v34 }
 0x19b   :  { %v941_v35 = vsel %vm940_vm1, %v2042_v1, %v937_v25  ;;  %2051 = vpow2.f32 %v783_v7  ;;  %v958_v1 = vand.u32 2147483647, %v845_v27  ;;  %v961_v17 = vor.u32 1.1754944e-38, %v960_v13 }
 0x19c   :  { %v946_v43 = vsel %vm943_vm3, %v945_v63, %v941_v35  ;;  %v763_v7 = vsub.f32 %v2663_v26, %v748_v32  ;;  %v764_v48 = vsub.f32 %v2665_v52, %v748_v32 }
 0x19d   :  { %v2684_v60 = vmul.f32 %v2643_v46, %v946_v43  ;;  %v2687_v47 = vmul.f32 %v2647_v11, %v946_v43  ;;  %v800_v11 = vrot.slane %v799_v49, 2  ;;  %vm959_vm7 = vcmp.eq.f32.partialorder %v958_v1, 8.507059e+37 }
 0x19e   :  { %v793_v13 = vmul.f32 1.442695, %v763_v7 }
 0x19f   :  { %v2048_v51 = vpop.eup %2047  ;;  %v801_v33 = vadd.f32 %v800_v11, %v799_v49 }
 0x1a0   :  { %v950_v28 = vmul.f32 %v2048_v51, %v845_v27  ;;  %vm955_vm5 = vweird.f32 %v2048_v51  ;;  %v2689_v16 = vpop.eup %2049 }
 0x1a1   :  { %vm956_vm6 = vmor %vm954_vm4, %vm955_vm5  ;;  %v2691_v9 = vpop.eup %2051  ;;  %v802_v18 = vrot.slane %v801_v33, 1 }
 0x1a2   :  { %v951_v0 = vsub.f32 1.0, %v950_v28  ;;  %v825_v23 = vadd.f32 %v2691_v9, %v2689_v16 }
 0x1a4   :  { %v952_v6 = vmul.f32 %v2048_v51, %v951_v0  ;;  %v826_v43 = vrot.slane %v825_v23, 4 }
 0x1a6   :  { %v953_v10 = vadd.f32 %v2048_v51, %v952_v6  ;;  %v827_v28 = vadd.f32 %v826_v43, %v825_v23 }
 0x1a8   :  { %v957_v12 = vsel %vm956_vm6, %v2048_v51, %v953_v10  ;;  %v803_v51 = vadd.f32 %v802_v18, %v801_v33 }
 0x1a9   :  { %v962_v63 = vsel %vm959_vm7, %v961_v17, %v957_v12 }
 0x1aa   :  { %v2698_v25 = vmul.f32 %v2655_v31, %v962_v63  ;;  %v2701_v27 = vmul.f32 %v2659_v19, %v962_v63  ;;  %v795_v31 = vmul.f32 1.442695, %v764_v48  ;;  %2053 = vrcp.f32 %v803_v51 }
 0x1ab   :  { %v615_v46 = vpop.xlane.xlu2 %614  ;;  %v828_v19 = vrot.slane %v827_v28, 2  ;;  %2055 = vpow2.f32 %v793_v13  ;;  %vm858_vm8 = vweird.f32 %v803_v51 }
 0x1ac   :  { %v661_v55 = vadd.f32 %v615_v46, %v2441_v14  ;;  %3559 = vst [vmem:[#allocation21_spill] sm:$0xff] %v2698_v25  ;;  %2057 = vpow2.f32 %v795_v31 }
 0x1ad   :  { %3560 = vst [vmem:[#allocation22_spill] sm:$0xff] %v2701_v27  ;;  %v829_v6 = vadd.f32 %v828_v19, %v827_v28 }
 0x1ae   :  { %v677_v35 = vmul.f32 0.17677669, %v661_v55 }
 0x1af   :  { %v830_v55 = vrot.slane %v829_v6, 1 }
 0x1b0   :  { %v2705_v17 = vpop.eup %2053 }
 0x1b1   :  { %v2707_v10 = vpop.eup %2055  ;;  %v854_v63 = vmul.f32 %v2705_v17, %v803_v51  ;;  %vm859_vm9 = vweird.f32 %v2705_v17 }
 0x1b2   :  { %v2709_v34 = vpop.eup %2057  ;;  %vm2730_vm10 = vmor %vm858_vm8, %vm859_vm9 }
 0x1b3   :  { %v618_v58 = vpop.xlane.xlu0 %617  ;;  %3561 = vst [vmem:[#allocation23_spill] sm:$0xff] %v2709_v34  ;;  %v846_v32 = vadd.f32 %v2709_v34, %v2707_v10  ;;  %v855_v43 = vsub.f32 1.0, %v854_v63 }
 0x1b4   :  { %v662_v21 = vadd.f32 %v618_v58, %v2441_v14 }
 0x1b5   :  { %v847_v7 = vrot.slane %v846_v32, 4  ;;  %v856_v13 = vmul.f32 %v2705_v17, %v855_v43 }
 0x1b6   :  { %v678_v29 = vmul.f32 0.17677669, %v662_v21 }
 0x1b7   :  { %v848_v19 = vadd.f32 %v847_v7, %v846_v32 }
 0x1b8   :  { %v981_v3 = vmax.f32 %v677_v35, %v678_v29 }
 0x1ba   :  { %v982_v50 = vrot.slane %v981_v3, 4 }
 0x1bc   :  { %v983_v49 = vmax.f32 %v981_v3, %v982_v50 }
 0x1be   :  { %v984_v0 = vrot.slane %v983_v49, 2 }
 0x1c0   :  { %v985_v1 = vmax.f32 %v983_v49, %v984_v0 }
 0x1c1   :  { %v621_v11 = vpop.xlane.xlu1 %620 }
 0x1c2   :  { %v986_v45 = vrot.slane %v985_v1, 1  ;;  %v663_v33 = vadd.f32 %v621_v11, %v2441_v14 }
 0x1c4   :  { %v987_v46 = vmax.f32 %v985_v1, %v986_v45 }
 0x1c6   :  { %v1037_v26 = vsub.f32 %v677_v35, %v987_v46  ;;  %v1038_v52 = vsub.f32 %v678_v29, %v987_v46  ;;  %v2716_v29 = vadd.f32 %v830_v55, %v829_v6  ;;  %v679_v35 = vmul.f32 0.17677669, %v663_v33 }
 0x1c7   :  { %v862_v6 = vand.u32 2147483647, %v803_v51  ;;  %v864_v46 = vand.u32 2147483648, %v803_v51  ;;  %v849_v33 = vrot.slane %v848_v19, 2 }
 0x1c8   :  { %v1053_v12 = vmul.f32 1.442695, %v1037_v26  ;;  %v1055_v58 = vmul.f32 1.442695, %v1038_v52  ;;  %v857_v26 = vadd.f32 %v2705_v17, %v856_v13  ;;  %vm922_vm12 = vweird.f32 %v2716_v29 }
 0x1c9   :  { %v624_v23 = vpop.xlane.xlu2 %623  ;;  %vm2735_vm11 = vcmp.eq.f32.partialorder %v862_v6, 8.507059e+37  ;;  %v865_v51 = vor.u32 1.1754944e-38, %v864_v46 }
 0x1ca   :  { %2059 = vpow2.f32 %v1053_v12  ;;  %v664_v21 = vadd.f32 %v624_v23, %v2441_v14 }
 0x1cb   :  { %2061 = vpow2.f32 %v1055_v58 }
 0x1cc   :  { %v680_v18 = vmul.f32 0.17677669, %v664_v21  ;;  %2063 = vrcp.f32 %v2716_v29 }
 0x1ce   :  { %v988_v3 = vmax.f32 %v679_v35, %v680_v18 }
 0x1d0   :  { %v2718_v48 = vpop.eup %2059  ;;  %v989_v50 = vrot.slane %v988_v3, 4 }
 0x1d1   :  { %v2721_v28 = vpop.eup %2061  ;;  %v639_v49 = vpop.xlane.xlu1 %638 }
 0x1d2   :  { %v1085_v31 = vadd.f32 %v2721_v28, %v2718_v48  ;;  %v990_v0 = vmax.f32 %v988_v3, %v989_v50  ;;  %v2727_v11 = vpop.eup %2063  ;;  %v627_v12 = vpop.xlane.xlu0 %626  ;;  %v669_v23 = vadd.f32 %v639_v49, %v2441_v14  ;;  %v861_v50 = vsel %vm2730_vm10, %v2705_v17, %v857_v26 }
 0x1d3   :  { %v918_v43 = vmul.f32 %v2727_v11, %v2716_v29  ;;  %v665_v3 = vadd.f32 %v627_v12, %v2441_v14  ;;  %v866_v12 = vsel %vm2735_vm11, %v865_v51, %v861_v50  ;;  %vm923_vm13 = vweird.f32 %v2727_v11 }
 0x1d4   :  { %v1086_v1 = vrot.slane %v1085_v31, 4  ;;  %v991_v45 = vrot.slane %v990_v0, 2  ;;  %vm2838_vm4 = vmor %vm922_vm12, %vm923_vm13 }
 0x1d5   :  { %v919_v58 = vsub.f32 1.0, %v918_v43  ;;  %v2753_v17 = vmul.f32 0.17677669, %v665_v3 }
 0x1d6   :  { %v1087_v52 = vadd.f32 %v1086_v1, %v1085_v31  ;;  %v992_v55 = vmax.f32 %v990_v0, %v991_v45  ;;  %v850_v1 = vadd.f32 %v849_v33, %v848_v19  ;;  %v2746_v45 = vmul.f32 0.17677669, %v669_v23 }
 0x1d8   :  { %v1088_v63 = vrot.slane %v1087_v52, 2  ;;  %v993_v21 = vrot.slane %v992_v55, 1  ;;  %v851_v23 = vrot.slane %v850_v1, 1 }
 0x1d9   :  { %v642_v7 = vpop.xlane.xlu2 %641  ;;  %v630_v0 = vpop.xlane.xlu1 %629 }
 0x1da   :  { %v1089_v13 = vadd.f32 %v1088_v63, %v1087_v52  ;;  %v994_v31 = vmax.f32 %v992_v55, %v993_v21  ;;  %v670_v49 = vadd.f32 %v642_v7, %v2441_v14  ;;  %v666_v6 = vadd.f32 %v630_v0, %v2441_v14  ;;  %v2144_v0 = vld [vmem:[#allocation3] sm:$0xff] }
 0x1db   :  { %v867_v63 = vmul.f32 %v2675_v22, %v866_v12  ;;  %v2768_v3 = vadd.f32 %v851_v23, %v850_v1  ;;  %v926_v22 = vand.u32 2147483647, %v2716_v29 }
 0x1dc   :  { %v1090_v46 = vrot.slane %v1089_v13, 1  ;;  %v1039_v44 = vsub.f32 %v679_v35, %v994_v31  ;;  %v1040_v30 = vsub.f32 %v680_v18, %v994_v31  ;;  %v2749_v27 = vmul.f32 0.17677669, %v670_v49 }
 0x1dd   :  { %v2755_v26 = vmul.f32 0.17677669, %v666_v6  ;;  %v928_v18 = vand.u32 2147483648, %v2716_v29  ;;  %v2775_v6 = vmul.f32 %v2144_v0, %v867_v63  ;;  %vm2817_vm1 = vcmp.eq.f32.partialorder %v926_v22, 8.507059e+37 }
 0x1de   :  { %v2757_v52 = vadd.f32 %v1090_v46, %v1089_v13  ;;  %v1057_v19 = vmul.f32 1.442695, %v1039_v44  ;;  %v1059_v55 = vmul.f32 1.442695, %v1040_v30  ;;  %v1009_v33 = vmax.f32 %v2746_v45, %v2749_v27  ;;  %v2143_v13 = vld [vmem:[#allocation3 + $0x10] sm:$0xff] }
 0x1df   :  { %v995_v35 = vmax.f32 %v2753_v17, %v2755_v26  ;;  %v868_v30 = vmul.f32 %v2677_v20, %v866_v12  ;;  %v920_v44 = vmul.f32 %v2727_v11, %v919_v58  ;;  %v2771_v31 = vmul.f32 %v2143_v13, %v2561_v57 }
 0x1e0   :  { %2065 = vrcp.f32 %v2757_v52  ;;  %v1010_v21 = vrot.slane %v1009_v33, 4  ;;  %v1150_v49 = vand.u32 2147483647, %v2757_v52  ;;  %v2777_v46 = vor.u32 1.1754944e-38, %v928_v18 }
 0x1e1   :  { %2067 = vpow2.f32 %v1057_v19  ;;  %v996_v32 = vrot.slane %v995_v35, 4  ;;  %v645_v51 = vpop.xlane.xlu0 %644  ;;  %v633_v43 = vpop.xlane.xlu2 %632  ;;  %v2145_v19 = vld [vmem:[#allocation3 + $0x8] sm:$0xff]  ;;  %v1152_v57 = vand.u32 2147483648, %v2757_v52  ;;  %vm1146_vm14 = vweird.f32 %v2757_v52 }
 0x1e2   :  { %2069 = vpow2.f32 %v1059_v55  ;;  %v1011_v7 = vmax.f32 %v1009_v33, %v1010_v21  ;;  %v657_v58 = vpop.xlane.xlu1 %656  ;;  %v2779_v55 = vmul.f32 %v2145_v19, %v868_v30  ;;  %v2782_v33 = vadd.f32 %v2727_v11, %v920_v44 }
 0x1e3   :  { %v997_v50 = vmax.f32 %v995_v35, %v996_v32  ;;  %v671_v23 = vadd.f32 %v645_v51, %v2441_v14  ;;  %2071 = vrcp.f32 %v2768_v3  ;;  %vm2795_vm15 = vcmp.eq.f32.partialorder %v1150_v49, 8.507059e+37 }
 0x1e4   :  { %v1012_v20 = vrot.slane %v1011_v7, 2  ;;  %v667_v51 = vadd.f32 %v633_v43, %v2441_v14  ;;  %v675_v44 = vadd.f32 %v657_v58, %v2441_v14  ;;  %vm970_vm9 = vweird.f32 %v2768_v3 }
 0x1e5   :  { %v998_v12 = vrot.slane %v997_v50, 2 }
 0x1e6   :  { %v2066_v1 = vpop.eup %2065  ;;  %v1013_v63 = vmax.f32 %v1011_v7, %v1012_v20  ;;  %v2803_v20 = vmul.f32 0.17677669, %v671_v23  ;;  %v2806_v40 = vmul.f32 0.17677669, %v667_v51  ;;  %v2808_v58 = vmul.f32 0.17677669, %v675_v44 }
 0x1e7   :  { %v2786_v35 = vpop.eup %2067  ;;  %v1142_v18 = vmul.f32 %v2066_v1, %v2757_v52  ;;  %v999_v21 = vmax.f32 %v997_v50, %v998_v12  ;;  %vm1147_vm0 = vweird.f32 %v2066_v1  ;;  %v1153_v50 = vor.u32 1.1754944e-38, %v1152_v57 }
 0x1e8   :  { %v2792_v32 = vpop.eup %2069  ;;  %v1014_v19 = vrot.slane %v1013_v63, 1  ;;  %vm1148_vm3 = vmor %vm1146_vm14, %vm1147_vm0 }
 0x1e9   :  { %v1143_v13 = vsub.f32 1.0, %v1142_v18  ;;  %v1092_v0 = vadd.f32 %v2792_v32, %v2786_v35  ;;  %v1000_v25 = vrot.slane %v999_v21, 1  ;;  %v636_v7 = vpop.xlane.xlu0 %635  ;;  %v2813_v61 = vpop.eup %2071 }
 0x1ea   :  { %v668_v49 = vadd.f32 %v636_v7, %v2441_v14  ;;  %v660_v12 = vpop.xlane.xlu2 %659  ;;  %v1015_v15 = vmax.f32 %v1013_v63, %v1014_v19  ;;  %v648_v22 = vpop.xlane.xlu1 %647  ;;  %vm971_vm10 = vweird.f32 %v2813_v61 }
 0x1eb   :  { %v1144_v8 = vmul.f32 %v2066_v1, %v1143_v13  ;;  %v1093_v36 = vrot.slane %v1092_v0, 4  ;;  %v1001_v43 = vmax.f32 %v999_v21, %v1000_v25  ;;  %v676_v34 = vadd.f32 %v660_v12, %v2441_v14 }
 0x1ec   :  { %v2810_v18 = vmul.f32 0.17677669, %v668_v49  ;;  %v1045_v5 = vsub.f32 %v2746_v45, %v1015_v15  ;;  %v1046_v7 = vsub.f32 %v2749_v27, %v1015_v15  ;;  %v672_v30 = vadd.f32 %v648_v22, %v2441_v14 }
 0x1ed   :  { %v1145_v57 = vadd.f32 %v2066_v1, %v1144_v8  ;;  %v1094_v23 = vadd.f32 %v1093_v36, %v1092_v0  ;;  %v1041_v25 = vsub.f32 %v2753_v17, %v1001_v43  ;;  %v1042_v63 = vsub.f32 %v2755_v26, %v1001_v43 }
 0x1ee   :  { %v1002_v8 = vmax.f32 %v2806_v40, %v2810_v18  ;;  %v2828_v36 = vmul.f32 0.17677669, %v676_v34  ;;  %v1069_v15 = vmul.f32 1.442695, %v1045_v5  ;;  %v1071_v27 = vmul.f32 1.442695, %v1046_v7 }
 0x1ef   :  { %v1149_v45 = vsel %vm1148_vm3, %v2066_v1, %v1145_v57  ;;  %v1095_v21 = vrot.slane %v1094_v23, 2  ;;  %v1061_v44 = vmul.f32 1.442695, %v1041_v25  ;;  %v1063_v52 = vmul.f32 1.442695, %v1042_v63 }
 0x1f0   :  { %v1154_v51 = vsel %vm2795_vm15, %v1153_v50, %v1149_v45  ;;  %v1003_v0 = vrot.slane %v1002_v8, 4  ;;  %2073 = vpow2.f32 %v1069_v15  ;;  %v1030_v1 = vmax.f32 %v2808_v58, %v2828_v36  ;;  %v2146_v15 = vld [vmem:[#allocation3 + $0x18] sm:$0xff]  ;;  %vm3010_vm15 = vmor %vm970_vm9, %vm971_vm10 }
 0x1f1   :  { %v1155_v17 = vmul.f32 %v2718_v48, %v1154_v51  ;;  %v1156_v26 = vmul.f32 %v2721_v28, %v1154_v51  ;;  %v1096_v19 = vadd.f32 %v1095_v21, %v1094_v23  ;;  %2075 = vpow2.f32 %v1071_v27 }
 0x1f2   :  { %v1004_v34 = vmax.f32 %v1002_v8, %v1003_v0  ;;  %2077 = vpow2.f32 %v1061_v44  ;;  %v1031_v29 = vrot.slane %v1030_v1, 4  ;;  %v2847_v12 = vmul.f32 0.17677669, %v672_v30  ;;  %v651_v43 = vpop.xlane.xlu2 %650 }
 0x1f3   :  { %v1285_v48 = vmul.f32 %v1155_v17, %v2450_v24  ;;  %v1286_v28 = vmul.f32 %v1156_v26, %v2458_v37  ;;  %v1097_v50 = vrot.slane %v1096_v19, 1  ;;  %2079 = vpow2.f32 %v1063_v52  ;;  %v654_v57 = vpop.xlane.xlu0 %653 }
 0x1f4   :  { %v1005_v49 = vrot.slane %v1004_v34, 2  ;;  %v925_v23 = vsel %vm2838_vm4, %v2727_v11, %v2782_v33  ;;  %v2855_v7 = vmul.f32 %v2813_v61, %v2768_v3  ;;  %v1032_v8 = vmax.f32 %v1030_v1, %v1031_v29  ;;  %v2147_v33 = vld [vmem:[#allocation3 + $0x30] sm:$0xff] }
 0x1f5   :  { %v1302_v24 = vadd.f32 %v1286_v28, %v2779_v55  ;;  %v2858_v37 = vadd.f32 %v1097_v50, %v1096_v19  ;;  %v1301_v25 = vadd.f32 %v1285_v48, %v2775_v6  ;;  %v1016_v45 = vmax.f32 %v2803_v20, %v2847_v12 }
 0x1f6   :  { %v1006_v63 = vmax.f32 %v1004_v34, %v1005_v49  ;;  %v2863_v21 = vpop.eup %2073  ;;  %v2866_v11 = vmul.f32 %v2146_v15, %v2564_v62  ;;  %v2869_v27 = vmul.f32 %v2147_v33, %v2638_v41  ;;  %v673_v55 = vadd.f32 %v651_v43, %v2441_v14  ;;  %v2896_v49 = vld [vmem:[#allocation8 + $0x18] sm:$0xff] }
 0x1f7   :  { %v674_v22 = vadd.f32 %v654_v57, %v2441_v14  ;;  %v2873_v6 = vpop.eup %2075  ;;  %2081 = vtanh.f32 %v1302_v24  ;;  %v1033_v44 = vrot.slane %v1032_v8, 2  ;;  %v1017_v52 = vrot.slane %v1016_v45, 4 }
 0x1f8   :  { %v1007_v51 = vrot.slane %v1006_v63, 1  ;;  %v2875_v0 = vpop.eup %2077  ;;  %v2880_v62 = vsel %vm2817_vm1, %v2777_v46, %v925_v23  ;;  %2083 = vrcp.f32 %v2858_v37  ;;  %v1113_v14 = vadd.f32 %v2873_v6, %v2863_v21 }
 0x1f9   :  { %v2886_v17 = vpop.eup %2079  ;;  %2085 = vtanh.f32 %v1301_v25  ;;  %v1034_v19 = vmax.f32 %v1032_v8, %v1033_v44  ;;  %v1018_v5 = vmax.f32 %v1016_v45, %v1017_v52  ;;  %v2890_v13 = vmul.f32 0.17677669, %v673_v55 }
 0x1fa   :  { %v1008_v26 = vmax.f32 %v1006_v63, %v1007_v51  ;;  %v1114_v34 = vrot.slane %v1113_v14, 4  ;;  %v1099_v1 = vadd.f32 %v2886_v17, %v2875_v0  ;;  %v2892_v46 = vmul.f32 0.17677669, %v674_v22 }
 0x1fb   :  { %v1035_v28 = vrot.slane %v1034_v19, 1  ;;  %v1019_v50 = vrot.slane %v1018_v5, 2  ;;  %v1166_v29 = vand.u32 2147483647, %v2858_v37  ;;  %v1168_v44 = vand.u32 2147483648, %v2858_v37 }
 0x1fc   :  { %v1043_v30 = vsub.f32 %v2806_v40, %v1008_v26  ;;  %v1044_v48 = vsub.f32 %v2810_v18, %v1008_v26  ;;  %v1115_v43 = vadd.f32 %v1114_v34, %v1113_v14  ;;  %v1100_v57 = vrot.slane %v1099_v1, 4 }
 0x1fd   :  { %v1023_v23 = vmax.f32 %v2890_v13, %v2892_v46  ;;  %v2901_v24 = vpop.eup %2081  ;;  %v1036_v8 = vmax.f32 %v1034_v19, %v1035_v28  ;;  %v1020_v45 = vmax.f32 %v1018_v5, %v1019_v50  ;;  %vm1162_vm6 = vweird.f32 %v2858_v37 }
 0x1fe   :  { %v1065_v25 = vmul.f32 1.442695, %v1043_v30  ;;  %v1067_v63 = vmul.f32 1.442695, %v1044_v48  ;;  %v2084_v40 = vpop.eup %2083  ;;  %v1116_v15 = vrot.slane %v1115_v43, 2  ;;  %v1101_v18 = vadd.f32 %v1100_v57, %v1099_v1 }
 0x1ff   :  { %v1024_v33 = vrot.slane %v1023_v23, 4  ;;  %v1469_v55 = vmul.f32 %v2901_v24, %v2896_v49  ;;  %v2905_v22 = vpop.eup %2085  ;;  %v1158_v51 = vmul.f32 %v2084_v40, %v2858_v37  ;;  %v1051_v52 = vsub.f32 %v2808_v58, %v1036_v8 }
 0x200   :  { %2087 = vpow2.f32 %v1065_v25  ;;  %v1117_v14 = vadd.f32 %v1116_v15, %v1115_v43  ;;  %v1102_v26 = vrot.slane %v1101_v18, 2  ;;  %v1052_v19 = vsub.f32 %v2828_v36, %v1036_v8 }
 0x201   :  { %2089 = vpow2.f32 %v1067_v63  ;;  %v1159_v5 = vsub.f32 1.0, %v1158_v51  ;;  %v1081_v34 = vmul.f32 1.442695, %v1051_v52  ;;  %v1021_v1 = vrot.slane %v1020_v45, 1 }
 0x202   :  { %v1025_v30 = vmax.f32 %v1023_v23, %v1024_v33  ;;  %v1118_v48 = vrot.slane %v1117_v14, 1  ;;  %v1103_v28 = vadd.f32 %v1102_v26, %v1101_v18  ;;  %v1083_v50 = vmul.f32 1.442695, %v1052_v19 }
 0x203   :  { %v1487_v57 = vsel %vm515_vm2, %v1469_v55, 0.0  ;;  %v1160_v41 = vmul.f32 %v2084_v40, %v1159_v5  ;;  %vm1163_vm5 = vweird.f32 %v2084_v40  ;;  %2091 = vpow2.f32 %v1081_v34 }
 0x204   :  { %v1022_v25 = vmax.f32 %v1020_v45, %v1021_v1  ;;  %1488 = vadd.xlane.f32.xlu2 %v1487_v57  ;;  %v2912_v58 = vadd.f32 %v1118_v48, %v1117_v14  ;;  %v1104_v43 = vrot.slane %v1103_v28, 1  ;;  %2093 = vpow2.f32 %v1083_v50  ;;  %vm1164_vm7 = vmor %vm1162_vm6, %vm1163_vm5 }
 0x205   :  { %v1026_v63 = vrot.slane %v1025_v30, 2  ;;  %v1161_v8 = vadd.f32 %v2084_v40, %v1160_v41  ;;  %v931_v45 = vmul.f32 %v2689_v16, %v2880_v62  ;;  %vm1167_vm8 = vcmp.eq.f32.partialorder %v1166_v29, 8.507059e+37  ;;  %v2929_v41 = vld [vmem:[#allocation8 + $0x8] sm:$0xff] }
 0x206   :  { %v2914_v36 = vpop.eup %2087  ;;  %v1047_v23 = vsub.f32 %v2803_v20, %v1022_v25  ;;  %v1048_v15 = vsub.f32 %v2847_v12, %v1022_v25  ;;  %v1169_v33 = vor.u32 1.1754944e-38, %v1168_v44  ;;  %2095 = vrcp.f32 %v2912_v58  ;;  %v2148_v12 = vld [vmem:[#allocation3 + $0x38] sm:$0xff]  ;;  %v2960_v25 = vld [vmem:[#allocation8] sm:$0xff] }
 0x207   :  { %v2919_v18 = vpop.eup %2089  ;;  %v1165_v55 = vsel %vm1164_vm7, %v2084_v40, %v1161_v8  ;;  %v2925_v51 = vadd.f32 %v1104_v43, %v1103_v28  ;;  %v2932_v52 = vmul.f32 %v2148_v12, %v2641_v42  ;;  %v1027_v26 = vmax.f32 %v1025_v30, %v1026_v63  ;;  %v2149_v42 = vld [vmem:[#allocation3 + $0x40] sm:$0xff] }
 0x208   :  { %v1106_v37 = vadd.f32 %v2919_v18, %v2914_v36  ;;  %v1073_v20 = vmul.f32 1.442695, %v1047_v23  ;;  %v1170_v16 = vsel %vm1167_vm8, %v1169_v33, %v1165_v55  ;;  %v1075_v14 = vmul.f32 1.442695, %v1048_v15  ;;  %v2969_v15 = vld [vmem:[#allocation8 + $0x20] sm:$0xff] }
 0x209   :  { %v2934_v29 = vpop.eup %2091  ;;  %v2938_v40 = vmul.f32 %v2691_v9, %v2880_v62  ;;  %v3572_v44 = vsub.f32 1.0, %v2855_v7  ;;  %v1171_v5 = vmul.f32 %v2786_v35, %v1170_v16  ;;  %2097 = vrcp.f32 %v2925_v51 }
 0x20a   :  { %v2945_v34 = vpop.eup %2093  ;;  %v2947_v1 = vmul.f32 %v2149_v42, %v931_v45  ;;  %v1107_v30 = vrot.slane %v1106_v37, 4  ;;  %2099 = vpow2.f32 %v1073_v20  ;;  %v1336_v48 = vmul.f32 %v2901_v24, %v2929_v41 }
 0x20b   :  { %v968_v19 = vmul.f32 %v2813_v61, %v3572_v44  ;;  %v974_v9 = vand.u32 2147483647, %v2768_v3  ;;  %v976_v7 = vand.u32 2147483648, %v2768_v3  ;;  %v1134_v35 = vadd.f32 %v2945_v34, %v2934_v29 }
 0x20c   :  { %2101 = vpow2.f32 %v1075_v14  ;;  %v2956_v62 = vpop.eup %2095  ;;  %v1287_v28 = vmul.f32 %v1171_v5, %v2466_v53  ;;  %v1108_v50 = vadd.f32 %v1107_v30, %v1106_v37  ;;  %v1028_v57 = vrot.slane %v1027_v26, 1 }
 0x20d   :  { %v2963_v43 = vadd.f32 %v2813_v61, %v968_v19  ;;  %v1172_v63 = vmul.f32 %v2792_v32, %v1170_v16  ;;  %v1206_v8 = vmul.f32 %v2956_v62, %v2912_v58  ;;  %v1216_v23 = vand.u32 2147483648, %v2912_v58 }
 0x20e   :  { %v1109_v45 = vrot.slane %v1108_v50, 2  ;;  %v1135_v33 = vrot.slane %v1134_v35, 4  ;;  %v1029_v55 = vmax.f32 %v1027_v26, %v1028_v57  ;;  %v1354_v53 = vsel %vm515_vm2, %v1336_v48, 0.0 }
 0x20f   :  { %v2972_v37 = vpop.eup %2097  ;;  %v1207_v20 = vsub.f32 1.0, %v1206_v8  ;;  %vm1178_vm11 = vweird.f32 %v2925_v51  ;;  %v1184_v12 = vand.u32 2147483648, %v2925_v51  ;;  %1355 = vadd.xlane.f32.xlu1 %v1354_v53  ;;  %v1335_v32 = vmul.f32 %v2905_v22, %v2960_v25 }
 0x210   :  { %v2978_v16 = vpop.eup %2099  ;;  %v1303_v14 = vadd.f32 %v1287_v28, %v2771_v31  ;;  %v1174_v26 = vmul.f32 %v2972_v37, %v2925_v51  ;;  %v1110_v44 = vadd.f32 %v1109_v45, %v1108_v50  ;;  %v1601_v19 = vmul.f32 %v2905_v22, %v2969_v15 }
 0x211   :  { %v1208_v42 = vmul.f32 %v2956_v62, %v1207_v20  ;;  %v1136_v30 = vadd.f32 %v1135_v33, %v1134_v35  ;;  %v1049_v48 = vsub.f32 %v2890_v13, %v1029_v55  ;;  %v1050_v57 = vsub.f32 %v2892_v46, %v1029_v55 }
 0x212   :  { %v2985_v5 = vpop.eup %2101  ;;  %v1175_v8 = vsub.f32 1.0, %v1174_v26  ;;  %v1111_v53 = vrot.slane %v1110_v44, 1  ;;  %v1351_v28 = vsel %vm515_vm2, %v1335_v32, 0.0  ;;  %vm2993_vm12 = vcmp.eq.f32.partialorder %v974_v9, 8.507059e+37  ;;  %v3002_v26 = vld [vmem:[#allocation8 + $0x10] sm:$0xff] }
 0x213   :  { %v1120_v31 = vadd.f32 %v2985_v5, %v2978_v16  ;;  %vm1179_vm13 = vweird.f32 %v2972_v37  ;;  %v1137_v45 = vrot.slane %v1136_v30, 2  ;;  %v1077_v20 = vmul.f32 1.442695, %v1049_v48  ;;  %1352 = vadd.xlane.f32.xlu0 %v1351_v28  ;;  %v2154_v48 = vld [vmem:[#allocation3 + $0x58] sm:$0xff] }
 0x214   :  { %v1079_v35 = vmul.f32 1.442695, %v1050_v57  ;;  %v1176_v13 = vmul.f32 %v2972_v37, %v1175_v8  ;;  %v2999_v46 = vadd.f32 %v1111_v53, %v1110_v44  ;;  %v1617_v55 = vsel %vm515_vm2, %v1601_v19, 0.0  ;;  %vm3024_vm1 = vmor %vm1178_vm11, %vm1179_vm13 }
 0x215   :  { %v1121_v33 = vrot.slane %v1120_v31, 4  ;;  %v1209_v9 = vadd.f32 %v2956_v62, %v1208_v42  ;;  %vm1211_vm14 = vweird.f32 %v2956_v62  ;;  %v1138_v32 = vadd.f32 %v1137_v45, %v1136_v30  ;;  %1618 = vadd.xlane.f32.xlu2 %v1617_v55 }
 0x216   :  { %2103 = vpow2.f32 %v1077_v20  ;;  %v1288_v44 = vmul.f32 %v1172_v63, %v2483_v4  ;;  %v1177_v19 = vadd.f32 %v2972_v37, %v1176_v13  ;;  %v1182_v57 = vand.u32 2147483647, %v2925_v51 }
 0x217   :  { %2105 = vrcp.f32 %v2999_v46  ;;  %v977_v42 = vor.u32 1.1754944e-38, %v976_v7  ;;  %vm1210_vm0 = vweird.f32 %v2912_v58  ;;  %v1214_v30 = vand.u32 2147483647, %v2912_v58 }
 0x218   :  { %v1468_v4 = vmul.f32 %v2905_v22, %v3002_v26  ;;  %vm3030_vm3 = vmor %vm1210_vm0, %vm1211_vm14  ;;  %v1181_v7 = vsel %vm3024_vm1, %v2972_v37, %v1177_v19  ;;  %v1139_v58 = vrot.slane %v1138_v32, 1  ;;  %v1122_v8 = vadd.f32 %v1121_v33, %v1120_v31  ;;  %v3066_v19 = vld [vmem:[#allocation8 + $0x28] sm:$0xff] }
 0x219   :  { %2107 = vpow2.f32 %v1079_v35  ;;  %v973_v51 = vsel %vm3010_vm15, %v2813_v61, %v2963_v43  ;;  %v1213_v53 = vsel %vm3030_vm3, %v2956_v62, %v1209_v9  ;;  %v1185_v28 = vor.u32 1.1754944e-38, %v1184_v12  ;;  %v2150_v43 = vld [vmem:[#allocation3 + $0x48] sm:$0xff]  ;;  %v2151_v62 = vld [vmem:[#allocation3 + $0x20] sm:$0xff]  ;;  %v2153_v9 = vld [vmem:[#allocation3 + $0x50] sm:$0xff] }
 0x21a   :  { %2109 = vtanh.f32 %v1303_v14  ;;  %v1304_v45 = vadd.f32 %v1288_v44, %v2866_v11  ;;  %v1217_v20 = vor.u32 1.1754944e-38, %v1216_v23  ;;  %vm1183_vm4 = vcmp.eq.f32.partialorder %v1182_v57, 8.507059e+37  ;;  %v2152_v12 = vld [vmem:[#allocation3 + $0x28] sm:$0xff] }
 0x21b   :  { %v3045_v13 = vadd.f32 %v1139_v58, %v1138_v32  ;;  %vm1215_vm5 = vcmp.eq.f32.partialorder %v1214_v30, 8.507059e+37  ;;  %v1186_v31 = vsel %vm1183_vm4, %v1185_v28, %v1181_v7  ;;  %v1123_v35 = vrot.slane %v1122_v8, 2 }
 0x21c   :  { %v3047_v37 = vpop.eup %2103  ;;  %v1484_v33 = vsel %vm515_vm2, %v1468_v4, 0.0  ;;  %v3053_v14 = vmul.f32 %v2150_v43, %v2938_v40  ;;  %v1273_v11 = vmul.f32 %v2151_v62, %v2668_v2  ;;  %v1218_v23 = vsel %vm1215_vm5, %v1217_v20, %v1213_v53  ;;  %v3068_v2 = vld [vmem:[#allocation8 + $0x38] sm:$0xff] }
 0x21d   :  { %v3050_v61 = vpop.eup %2105  ;;  %2111 = vrcp.f32 %v3045_v13  ;;  %1485 = vadd.xlane.f32.xlu1 %v1484_v33  ;;  %v1274_v55 = vmul.f32 %v2152_v12, %v2671_v59  ;;  %v3059_v32 = vmul.f32 %v2153_v9, %v2684_v60  ;;  %v3062_v44 = vmul.f32 %v2154_v48, %v2687_v47  ;;  %v3106_v33 = vld [vmem:[#allocation8 + $0x30] sm:$0xff] }
 0x21e   :  { %v1190_v40 = vmul.f32 %v3050_v61, %v2999_v46  ;;  %v3074_v59 = vsel %vm2993_vm12, %v977_v42, %v973_v51  ;;  %2113 = vtanh.f32 %v1304_v45  ;;  %v1187_v60 = vmul.f32 %v2875_v0, %v1186_v31 }
 0x21f   :  { %v3070_v57 = vpop.eup %2107  ;;  %vm1194_vm6 = vweird.f32 %v2999_v46  ;;  %v3081_v30 = vmul.f32 %v2863_v21, %v1218_v23  ;;  %v1124_v4 = vadd.f32 %v1123_v35, %v1122_v8  ;;  %v1188_v7 = vmul.f32 %v2886_v17, %v1186_v31 }
 0x220   :  { %v3078_v47 = vpop.eup %2109  ;;  %v1191_v3 = vsub.f32 1.0, %v1190_v40  ;;  %v1127_v63 = vadd.f32 %v3070_v57, %v3047_v37  ;;  %v1200_v50 = vand.u32 2147483648, %v2999_v46  ;;  %v1602_v42 = vmul.f32 %v2901_v24, %v3066_v19 }
 0x221   :  { %v1735_v0 = vmul.f32 %v2901_v24, %v3068_v2  ;;  %vm1195_vm7 = vweird.f32 %v3050_v61  ;;  %v1125_v21 = vrot.slane %v1124_v4, 1  ;;  %v1289_v53 = vmul.f32 %v1187_v60, %v2498_v38 }
 0x222   :  { %v1192_v58 = vmul.f32 %v3050_v61, %v1191_v3  ;;  %v1128_v51 = vrot.slane %v1127_v63, 4  ;;  %v1198_v17 = vand.u32 2147483647, %v2999_v46  ;;  %v1620_v28 = vsel %vm515_vm2, %v1602_v42, 0.0  ;;  %vm1196_vm8 = vmor %vm1194_vm6, %vm1195_vm7 }
 0x223   :  { %v3093_v8 = vpop.eup %2111  ;;  %v1337_v45 = vmul.f32 %v3078_v47, %v2960_v25  ;;  %v3103_v31 = vadd.f32 %v1125_v21, %v1124_v4  ;;  %1621 = vadd.xlane.f32.xlu0 %v1620_v28  ;;  %v1753_v35 = vsel %vm515_vm2, %v1735_v0, 0.0  ;;  %v1220_v43 = vmul.f32 %v2873_v6, %v1218_v23 }
 0x224   :  { %v1193_v20 = vadd.f32 %v3050_v61, %v1192_v58  ;;  %v1254_v24 = vmul.f32 %v3093_v8, %v3045_v13  ;;  %v3108_v38 = vpop.eup %2113  ;;  %v1201_v62 = vor.u32 1.1754944e-38, %v1200_v50  ;;  %v1129_v12 = vadd.f32 %v1128_v51, %v1127_v63 }
 0x225   :  { %1754 = vadd.xlane.f32.xlu1 %v1753_v35  ;;  %v1357_v9 = vsel %vm515_vm2, %v1337_v45, 0.0  ;;  %v1290_v48 = vmul.f32 %v1188_v7, %v2520_v54  ;;  %2115 = vrcp.f32 %v3103_v31  ;;  %v1305_v3 = vadd.f32 %v1289_v53, %v1273_v11 }
 0x226   :  { %v1197_v40 = vsel %vm1196_vm8, %v3050_v61, %v1193_v20  ;;  %v1255_v60 = vsub.f32 1.0, %v1254_v24  ;;  %1358 = vadd.xlane.f32.xlu2 %v1357_v9  ;;  %vm1199_vm9 = vcmp.eq.f32.partialorder %v1198_v17, 8.507059e+37  ;;  %v1130_v6 = vrot.slane %v1129_v12, 2 }
 0x227   :  { %v1734_v46 = vmul.f32 %v2905_v22, %v3106_v33  ;;  %v1202_v23 = vsel %vm1199_vm9, %v1201_v62, %v1197_v40  ;;  %vm1259_vm10 = vweird.f32 %v3093_v8  ;;  %v1471_v54 = vmul.f32 %v3108_v38, %v2896_v49 }
 0x228   :  { %v1256_v4 = vmul.f32 %v3093_v8, %v1255_v60  ;;  %v1294_v61 = vmul.f32 %v1220_v43, %v2523_v56  ;;  %vm1258_vm11 = vweird.f32 %v3045_v13  ;;  %v1264_v63 = vand.u32 2147483648, %v3045_v13 }
 0x229   :  { %v1131_v11 = vadd.f32 %v1130_v6, %v1129_v12  ;;  %v1306_v7 = vadd.f32 %v1290_v48, %v1274_v55  ;;  %v1262_v22 = vand.u32 2147483647, %v3045_v13  ;;  %v1604_v42 = vmul.f32 %v3108_v38, %v3066_v19  ;;  %vm3135_vm12 = vmor %vm1258_vm11, %vm1259_vm10  ;;  %v3584_v12 = vld [vmem:[#allocation16_spill] sm:$0xff] }
 0x22a   :  { %v1257_v50 = vadd.f32 %v3093_v8, %v1256_v4  ;;  %v979_v0 = vmul.f32 %v2707_v10, %v3074_v59  ;;  %v1203_v58 = vmul.f32 %v2914_v36, %v1202_v23  ;;  %v1750_v51 = vsel %vm515_vm2, %v1734_v46, 0.0 }
 0x22b   :  { %v1132_v21 = vrot.slane %v1131_v11, 1  ;;  %v2116_v55 = vpop.eup %2115  ;;  %2117 = vtanh.f32 %v1305_v3  ;;  %v1204_v53 = vmul.f32 %v2919_v18, %v1202_v23  ;;  %1751 = vadd.xlane.f32.xlu0 %v1750_v51  ;;  %v1493_v10 = vsel %vm515_vm2, %v1471_v54, 0.0  ;;  %v3585_v3 = vld [vmem:[#allocation23_spill] sm:$0xff] }
 0x22c   :  { %v1261_v13 = vsel %vm3135_vm12, %v3093_v8, %v1257_v50  ;;  %v1265_v17 = vor.u32 1.1754944e-38, %v1264_v63  ;;  %v1222_v36 = vmul.f32 %v2116_v55, %v3103_v31  ;;  %v1626_v45 = vsel %vm515_vm2, %v1604_v42, 0.0  ;;  %v3583_v8 = vld [vmem:[#allocation13_spill] sm:$0xff]  ;;  %v3586_v42 = vld [vmem:[#allocation15_spill] sm:$0xff] }
 0x22d   :  { %v3146_v28 = vadd.f32 %v1132_v21, %v1131_v11  ;;  %1494 = vadd.xlane.f32.xlu1 %v1493_v10  ;;  %v1293_v20 = vmul.f32 %v3081_v30, %v2501_v39  ;;  %v1310_v18 = vadd.f32 %v1294_v61, %v3053_v14  ;;  %2119 = vtanh.f32 %v1306_v7 }
 0x22e   :  { %vm1263_vm13 = vcmp.eq.f32.partialorder %v1262_v22, 8.507059e+37  ;;  %1627 = vadd.xlane.f32.xlu2 %v1626_v45  ;;  %v1291_v24 = vmul.f32 %v1203_v58, %v3583_v8  ;;  %v1223_v43 = vsub.f32 1.0, %v1222_v36  ;;  %v1338_v62 = vmul.f32 %v3108_v38, %v2929_v41  ;;  %v3588_v36 = vld [vmem:[#allocation14_spill] sm:$0xff]  ;;  %v3589_v45 = vld [vmem:[#allocation17_spill] sm:$0xff] }
 0x22f   :  { %v1266_v35 = vsel %vm1263_vm13, %v1265_v17, %v1261_v13  ;;  %v1292_v9 = vmul.f32 %v1204_v53, %v3584_v12  ;;  %v1232_v48 = vand.u32 2147483648, %v3103_v31  ;;  %2121 = vrcp.f32 %v3146_v28  ;;  %v3587_v13 = vld [vmem:[#allocation18_spill] sm:$0xff] }
 0x230   :  { %v1603_v39 = vmul.f32 %v3078_v47, %v2969_v15  ;;  %v1224_v14 = vmul.f32 %v2116_v55, %v1223_v43  ;;  %vm1227_vm14 = vweird.f32 %v2116_v55  ;;  %v1230_v30 = vand.u32 2147483647, %v3103_v31 }
 0x231   :  { %v1736_v40 = vmul.f32 %v3078_v47, %v3106_v33  ;;  %v3163_v60 = vpop.eup %2117  ;;  %v980_v6 = vmul.f32 %v3585_v3, %v3074_v59  ;;  %v1309_v46 = vadd.f32 %v1293_v20, %v2947_v1  ;;  %2123 = vtanh.f32 %v1310_v18 }
 0x232   :  { %v1267_v23 = vmul.f32 %v2934_v29, %v1266_v35  ;;  %v1307_v4 = vadd.f32 %v1291_v24, %v2869_v27  ;;  %v1225_v54 = vadd.f32 %v2116_v55, %v1224_v14  ;;  %vm1226_vm15 = vweird.f32 %v3103_v31  ;;  %v2155_v29 = vld [vmem:[#allocation3 + $0x70] sm:$0xff] }
 0x233   :  { %v1360_v61 = vsel %vm515_vm2, %v1338_v62, 0.0  ;;  %v3172_v63 = vpop.eup %2119  ;;  %v1308_v11 = vadd.f32 %v1292_v9, %v2932_v52  ;;  %v1268_v7 = vmul.f32 %v2945_v34, %v1266_v35  ;;  %vm1228_vm0 = vmor %vm1226_vm15, %vm1227_vm14  ;;  %v1233_v59 = vor.u32 1.1754944e-38, %v1232_v48 }
 0x234   :  { %1361 = vadd.xlane.f32.xlu0 %v1360_v61  ;;  %v1623_v1 = vsel %vm515_vm2, %v1603_v39, 0.0  ;;  %v1283_v50 = vmul.f32 %v2155_v29, %v979_v0  ;;  %v1229_v27 = vsel %vm1228_vm0, %v2116_v55, %v1225_v54  ;;  %vm1231_vm1 = vcmp.eq.f32.partialorder %v1230_v30, 8.507059e+37  ;;  %v2156_v55 = vld [vmem:[#allocation3 + $0x78] sm:$0xff] }
 0x235   :  { %1624 = vadd.xlane.f32.xlu1 %v1623_v1  ;;  %v1756_v31 = vsel %vm515_vm2, %v1736_v40, 0.0  ;;  %v2122_v22 = vpop.eup %2121  ;;  %2125 = vtanh.f32 %v1309_v46  ;;  %v1299_v58 = vmul.f32 %v1267_v23, %v3586_v42  ;;  %v1234_v52 = vsel %vm1231_vm1, %v1233_v59, %v1229_v27  ;;  %v2157_v1 = vld [vmem:[#allocation3 + $0x60] sm:$0xff]  ;;  %v3591_v27 = vld [vmem:[#allocation22_spill] sm:$0xff] }
 0x236   :  { %v1470_v34 = vmul.f32 %v3078_v47, %v3002_v26  ;;  %1757 = vadd.xlane.f32.xlu2 %v1756_v31  ;;  %2127 = vtanh.f32 %v1307_v4  ;;  %v1235_v56 = vmul.f32 %v2978_v16, %v1234_v52  ;;  %v1236_v21 = vmul.f32 %v2985_v5, %v1234_v52 }
 0x237   :  { %v1238_v0 = vmul.f32 %v2122_v22, %v3146_v28  ;;  %v3185_v51 = vpop.eup %2123  ;;  %v1284_v53 = vmul.f32 %v2156_v55, %v980_v6  ;;  %2129 = vtanh.f32 %v1308_v11  ;;  %v1300_v10 = vmul.f32 %v1268_v7, %v3587_v13 }
 0x238   :  { %v1339_v17 = vmul.f32 %v3163_v60, %v2960_v25  ;;  %v1295_v47 = vmul.f32 %v1235_v56, %v3588_v36  ;;  %v1296_v20 = vmul.f32 %v1236_v21, %v3589_v45  ;;  %v1340_v16 = vmul.f32 %v3172_v63, %v2929_v41 }
 0x239   :  { %v1239_v18 = vsub.f32 1.0, %v1238_v0  ;;  %v1315_v5 = vadd.f32 %v1299_v58, %v1283_v50  ;;  %v1246_v8 = vand.u32 2147483647, %v3146_v28  ;;  %v1248_v24 = vand.u32 2147483648, %v3146_v28  ;;  %v2158_v50 = vld [vmem:[#allocation3 + $0x68] sm:$0xff]  ;;  %v3592_v58 = vld [vmem:[#allocation19_spill] sm:$0xff] }
 0x23a   :  { %v1490_v35 = vsel %vm515_vm2, %v1470_v34, 0.0  ;;  %v1311_v43 = vadd.f32 %v1295_v47, %v3059_v32  ;;  %v1312_v62 = vadd.f32 %v1296_v20, %v3062_v44  ;;  %vm1243_vm3 = vweird.f32 %v2122_v22  ;;  %v3593_v34 = vld [vmem:[#allocation20_spill] sm:$0xff] }
 0x23b   :  { %v1240_v12 = vmul.f32 %v2122_v22, %v1239_v18  ;;  %v3199_v9 = vpop.eup %2125  ;;  %v1316_v48 = vadd.f32 %v1300_v10, %v1284_v53  ;;  %vm1242_vm4 = vweird.f32 %v3146_v28  ;;  %v1363_v39 = vsel %vm515_vm2, %v1339_v17, 0.0 }
 0x23c   :  { %1491 = vadd.xlane.f32.xlu0 %v1490_v35  ;;  %v3205_v14 = vmul.f32 %v3163_v60, %v2969_v15  ;;  %v2128_v30 = vpop.eup %2127  ;;  %2131 = vtanh.f32 %v1311_v43  ;;  %v1366_v32 = vsel %vm515_vm2, %v1340_v16, 0.0  ;;  %v3210_v44 = vmul.f32 %v3185_v51, %v3068_v2  ;;  %vm1244_vm5 = vmor %vm1242_vm4, %vm1243_vm3 }
 0x23d   :  { %v1241_v40 = vadd.f32 %v2122_v22, %v1240_v12  ;;  %1364 = vadd.xlane.f32.xlu1 %v1363_v39  ;;  %v3212_v3 = vpop.eup %2129  ;;  %2133 = vtanh.f32 %v1315_v5  ;;  %v1249_v28 = vor.u32 1.1754944e-38, %v1248_v24  ;;  %vm1247_vm6 = vcmp.eq.f32.partialorder %v1246_v8, 8.507059e+37 }
 0x23e   :  { %1367 = vadd.xlane.f32.xlu2 %v1366_v32  ;;  %2135 = vtanh.f32 %v1312_v62  ;;  %v1737_v46 = vmul.f32 %v3108_v38, %v3068_v2  ;;  %v1477_v4 = vmul.f32 %v3185_v51, %v2896_v49  ;;  %v3220_v54 = vmul.f32 %v2128_v30, %v2960_v25  ;;  %v3590_v38 = vld [vmem:[#allocation21_spill] sm:$0xff] }
 0x23f   :  { %v1245_v6 = vsel %vm1244_vm5, %v2122_v22, %v1241_v40  ;;  %v3223_v61 = vmul.f32 %v2128_v30, %v3002_v26  ;;  %2137 = vtanh.f32 %v1316_v48  ;;  %v1343_v59 = vmul.f32 %v3199_v9, %v2960_v25 }
 0x240   :  { %v1250_v23 = vsel %vm1247_vm6, %v1249_v28, %v1245_v6  ;;  %v1281_v29 = vmul.f32 %v2157_v1, %v3590_v38  ;;  %v1282_v31 = vmul.f32 %v2158_v50, %v3591_v27  ;;  %v3233_v22 = vmul.f32 %v3212_v3, %v3066_v19 }
 0x241   :  { %v1251_v11 = vmul.f32 %v3047_v37, %v1250_v23  ;;  %v1252_v7 = vmul.f32 %v3070_v57, %v1250_v23  ;;  %v1759_v57 = vsel %vm515_vm2, %v1737_v46, 0.0  ;;  %v3240_v56 = vmul.f32 %v3212_v3, %v3068_v2 }
 0x242   :  { %v2132_v42 = vpop.eup %2131  ;;  %v1511_v0 = vsel %vm515_vm2, %v1477_v4, 0.0  ;;  %v3244_v55 = vmul.f32 %v2128_v30, %v2969_v15  ;;  %v3247_v53 = vmul.f32 %v2128_v30, %v3106_v33  ;;  %v1375_v47 = vsel %vm515_vm2, %v1343_v59, 0.0 }
 0x243   :  { %v1297_v52 = vmul.f32 %v1251_v11, %v3592_v58  ;;  %v1298_v37 = vmul.f32 %v1252_v7, %v3593_v34  ;;  %v2134_v21 = vpop.eup %2133  ;;  %v3250_v13 = vmul.f32 %v2132_v42, %v2960_v25  ;;  %v1344_v20 = vmul.f32 %v3185_v51, %v2929_v41 }
 0x244   :  { %1760 = vadd.xlane.f32.xlu0 %v1759_v57  ;;  %v3252_v10 = vpop.eup %2135  ;;  %v3260_v18 = vmul.f32 %v2134_v21, %v2960_v25  ;;  %v1606_v16 = vmul.f32 %v3172_v63, %v3066_v19  ;;  %v1472_v8 = vmul.f32 %v3163_v60, %v3002_v26  ;;  %v3271_v24 = vmul.f32 %v2132_v42, %v3002_v26 }
 0x245   :  { %v1313_v17 = vadd.f32 %v1297_v52, %v1281_v29  ;;  %v1314_v36 = vadd.f32 %v1298_v37, %v1282_v31  ;;  %1512 = vadd.xlane.f32.xlu1 %v1511_v0  ;;  %v3255_v45 = vpop.eup %2137  ;;  %v3266_v5 = vmul.f32 %v3252_v10, %v3066_v19  ;;  %v3274_v35 = vmul.f32 %v2134_v21, %v3002_v26 }
 0x246   :  { %1376 = vadd.xlane.f32.xlu2 %v1375_v47  ;;  %v3277_v43 = vmul.f32 %v2134_v21, %v2969_v15  ;;  %v3281_v62 = vmul.f32 %v3255_v45, %v3066_v19  ;;  %v1378_v12 = vsel %vm515_vm2, %v1344_v20, 0.0  ;;  %v3285_v48 = vmul.f32 %v2132_v42, %v2969_v15 }
 0x247   :  { %2139 = vtanh.f32 %v1313_v17  ;;  %v3288_v39 = vmul.f32 %v2132_v42, %v3106_v33  ;;  %v1632_v30 = vsel %vm515_vm2, %v1606_v16, 0.0  ;;  %v3293_v40 = vmul.f32 %v3252_v10, %v3068_v2 }
 0x248   :  { %2141 = vtanh.f32 %v1314_v36  ;;  %v3296_v32 = vmul.f32 %v2134_v21, %v3106_v33  ;;  %v1496_v6 = vsel %vm515_vm2, %v1472_v8, 0.0  ;;  %v3301_v46 = vmul.f32 %v3255_v45, %v3068_v2 }
 0x249   :  { %v1473_v59 = vmul.f32 %v3172_v63, %v2896_v49  ;;  %v1610_v50 = vmul.f32 %v3185_v51, %v3066_v19  ;;  %v1476_v58 = vmul.f32 %v3199_v9, %v3002_v26  ;;  %v1739_v52 = vmul.f32 %v3172_v63, %v3068_v2 }
 0x24a   :  { %v1342_v37 = vmul.f32 %v3212_v3, %v2929_v41  ;;  %v1475_v57 = vmul.f32 %v3212_v3, %v2896_v49  ;;  %v1777_v21 = vsel %vm515_vm2, %v3210_v44, 0.0  ;;  %v1771_v0 = vsel %vm515_vm2, %v3240_v56, 0.0 }
 0x24b   :  { %v1499_v27 = vsel %vm515_vm2, %v1473_v59, 0.0  ;;  %v1644_v42 = vsel %vm515_vm2, %v1610_v50, 0.0  ;;  %v1765_v34 = vsel %vm515_vm2, %v1739_v52, 0.0  ;;  %v1635_v3 = vsel %vm515_vm2, %v3244_v55, 0.0 }
 0x24c   :  { %1379 = vadd.xlane.f32.xlu0 %v1378_v12  ;;  %v1346_v44 = vmul.f32 %v3252_v10, %v2929_v41  ;;  %v1381_v17 = vsel %vm515_vm2, %v3250_v13, 0.0  ;;  %v1483_v56 = vmul.f32 %v3255_v45, %v2896_v49  ;;  %v1768_v55 = vsel %vm515_vm2, %v3247_v53, 0.0 }
 0x24d   :  { %v2140_v28 = vpop.eup %2139  ;;  %1633 = vadd.xlane.f32.xlu1 %v1632_v30  ;;  %v1350_v13 = vmul.f32 %v3255_v45, %v2929_v41  ;;  %v1650_v53 = vsel %vm515_vm2, %v3266_v5, 0.0  ;;  %v1514_v12 = vsel %vm515_vm2, %v3271_v24, 0.0  ;;  %v1659_v5 = vsel %vm515_vm2, %v3277_v43, 0.0 }
 0x24e   :  { %v3303_v23 = vpop.eup %2141  ;;  %1497 = vadd.xlane.f32.xlu2 %v1496_v6  ;;  %v3306_v4 = vmul.f32 %v2140_v28, %v2960_v25  ;;  %v3309_v11 = vmul.f32 %v2140_v28, %v3002_v26  ;;  %v3312_v7 = vmul.f32 %v2140_v28, %v2969_v15  ;;  %v3321_v38 = vmul.f32 %v2140_v28, %v3106_v33 }
 0x24f   :  { %v3318_v1 = vmul.f32 %v3303_v23, %v3066_v19  ;;  %v1609_v25 = vmul.f32 %v3199_v9, %v2969_v15  ;;  %v3327_v29 = vmul.f32 %v3303_v23, %v3068_v2  ;;  %v1738_v15 = vmul.f32 %v3163_v60, %v3106_v33 }
 0x250   :  { %v1508_v19 = vsel %vm515_vm2, %v1476_v58, 0.0  ;;  %v1742_v26 = vmul.f32 %v3199_v9, %v3106_v33  ;;  %v1629_v60 = vsel %vm515_vm2, %v3205_v14, 0.0  ;;  %v1372_v2 = vsel %vm515_vm2, %v1342_v37, 0.0 }
 0x251   :  { %v1641_v31 = vsel %vm515_vm2, %v1609_v25, 0.0  ;;  %v1762_v51 = vsel %vm515_vm2, %v1738_v15, 0.0  ;;  %v1502_v33 = vsel %vm515_vm2, %v3223_v61, 0.0  ;;  %v1505_v9 = vsel %vm515_vm2, %v1475_v57, 0.0 }
 0x252   :  { %v1774_v63 = vsel %vm515_vm2, %v1742_v26, 0.0  ;;  %v1369_v14 = vsel %vm515_vm2, %v3220_v54, 0.0  ;;  %v1638_v61 = vsel %vm515_vm2, %v3233_v22, 0.0  ;;  %v1384_v54 = vsel %vm515_vm2, %v1346_v44, 0.0 }
 0x253   :  { %v1529_v36 = vsel %vm515_vm2, %v1483_v56, 0.0  ;;  %v1393_v22 = vsel %vm515_vm2, %v3260_v18, 0.0  ;;  %v1396_v16 = vsel %vm515_vm2, %v1350_v13, 0.0  ;;  %v1479_v18 = vmul.f32 %v3252_v10, %v2896_v49 }
 0x254   :  { %1500 = vadd.xlane.f32.xlu0 %v1499_v27  ;;  %v1662_v24 = vsel %vm515_vm2, %v3281_v62, 0.0  ;;  %v1780_v43 = vsel %vm515_vm2, %v3288_v39, 0.0  ;;  %v1783_v62 = vsel %vm515_vm2, %v3293_v40, 0.0  ;;  %v1481_v39 = vmul.f32 %v3303_v23, %v2896_v49 }
 0x255   :  { %1642 = vadd.xlane.f32.xlu1 %v1641_v31  ;;  %v1517_v25 = vsel %vm515_vm2, %v1479_v18, 0.0  ;;  %v1647_v44 = vsel %vm515_vm2, %v3285_v48, 0.0  ;;  %v3405_v56 = vstv %s1975_s7  ;;  %v3408_v49 = vstv %s1455_s1 }
 0x256   :  { %1645 = vadd.xlane.f32.xlu2 %v1644_v42  ;;  %vm1864_vm7 = vcmask 7168   ;;  %vm1873_vm8 = vcmask 15360   ;;  %vm1882_vm9 = vcmask 23552   ;;  %vm1891_vm10 = vcmask 24576  }
 0x25c   :  { %1509 = vadd.xlane.f32.xlu0 %v1508_v19 }
 0x25d   :  { %1763 = vadd.xlane.f32.xlu1 %v1762_v51 }
 0x25e   :  { %1766 = vadd.xlane.f32.xlu2 %v1765_v34  ;;  %v1526_v34 = vsel %vm515_vm2, %v3274_v35, 0.0 }
 0x264   :  { %1630 = vadd.xlane.f32.xlu0 %v1629_v60 }
 0x265   :  { %1373 = vadd.xlane.f32.xlu1 %v1372_v2 }
 0x266   :  { %1775 = vadd.xlane.f32.xlu2 %v1774_v63 }
 0x26c   :  { %1778 = vadd.xlane.f32.xlu0 %v1777_v21 }
 0x26d   :  { %1503 = vadd.xlane.f32.xlu1 %v1502_v33 }
 0x26e   :  { %1506 = vadd.xlane.f32.xlu2 %v1505_v9  ;;  %v1348_v9 = vmul.f32 %v3303_v23, %v2929_v41  ;;  %v1523_v41 = vsel %vm515_vm2, %v1481_v39, 0.0 }
 0x274   :  { %1370 = vadd.xlane.f32.xlu0 %v1369_v14 }
 0x275   :  { %1772 = vadd.xlane.f32.xlu1 %v1771_v0 }
 0x276   :  { %1636 = vadd.xlane.f32.xlu2 %v1635_v3 }
 0x277   :  { %v1489_v20 = vpop.xlane.xlu2 %1488 }
 0x27c   :  { %1639 = vadd.xlane.f32.xlu0 %v1638_v61 }
 0x27d   :  { %1382 = vadd.xlane.f32.xlu1 %v1381_v17 }
 0x27e   :  { %1385 = vadd.xlane.f32.xlu2 %v1384_v54  ;;  %v1390_v54 = vsel %vm515_vm2, %v1348_v9, 0.0 }
 0x282   :  { %v1356_v47 = vpop.xlane.xlu1 %1355 }
 0x284   :  { %1769 = vadd.xlane.f32.xlu0 %v1768_v55 }
 0x285   :  { %1530 = vadd.xlane.f32.xlu1 %v1529_v36 }
 0x286   :  { %1394 = vadd.xlane.f32.xlu2 %v1393_v22  ;;  %v1353_v8 = vpop.xlane.xlu0 %1352 }
 0x287   :  { %v1399_v30 = vadd.f32 %v1356_v47, %v1353_v8  ;;  %v3410_v47 = vstv %s1976_s27 }
 0x288   :  { %v1619_v6 = vpop.xlane.xlu2 %1618 }
 0x289   :  { %v1400_v59 = vrot.slane %v1399_v30, 4 }
 0x28b   :  { %v1401_v31 = vadd.f32 %v1400_v59, %v1399_v30 }
 0x28c   :  { %1397 = vadd.xlane.f32.xlu0 %v1396_v16 }
 0x28d   :  { %1651 = vadd.xlane.f32.xlu1 %v1650_v53  ;;  %v1402_v19 = vrot.slane %v1401_v31, 2 }
 0x28e   :  { %1515 = vadd.xlane.f32.xlu2 %v1514_v12 }
 0x28f   :  { %v1403_v60 = vadd.f32 %v1402_v19, %v1401_v31 }
 0x290   :  { %v1486_v28 = vpop.xlane.xlu1 %1485 }
 0x291   :  { %v1532_v45 = vadd.f32 %v1489_v20, %v1486_v28  ;;  %v1404_v0 = vrot.slane %v1403_v60, 1 }
 0x293   :  { %v1533_v50 = vrot.slane %v1532_v45, 4  ;;  %v1405_v55 = vadd.f32 %v1404_v0, %v1403_v60 }
 0x294   :  { %1518 = vadd.xlane.f32.xlu0 %v1517_v25 }
 0x295   :  { %v1534_v27 = vadd.f32 %v1533_v50, %v1532_v45  ;;  %1660 = vadd.xlane.f32.xlu1 %v1659_v5  ;;  %v1457_v12 = vadd.f32 %v3408_v49, %v1405_v55  ;;  %v1387_v45 = vsel %vm515_vm2, %v3306_v4, 0.0  ;;  %v1520_v5 = vsel %vm515_vm2, %v3309_v11, 0.0 }
 0x296   :  { %1663 = vadd.xlane.f32.xlu2 %v1662_v24  ;;  %v1622_v42 = vpop.xlane.xlu0 %1621 }
 0x297   :  { %v1665_v10 = vadd.f32 %v1622_v42, %v1619_v6  ;;  %v1535_v58 = vrot.slane %v1534_v27, 2  ;;  %v3415_v6 = vstv %s1977_s28 }
 0x298   :  { %v1755_v15 = vpop.xlane.xlu1 %1754 }
 0x299   :  { %v1359_v52 = vpop.xlane.xlu2 %1358  ;;  %v1666_v51 = vrot.slane %v1665_v10, 4  ;;  %v1536_v26 = vadd.f32 %v1535_v58, %v1534_v27  ;;  %v1653_v27 = vsel %vm515_vm2, %v3312_v7, 0.0 }
 0x29b   :  { %v1667_v37 = vadd.f32 %v1666_v51, %v1665_v10  ;;  %v1537_v21 = vrot.slane %v1536_v26, 1 }
 0x29c   :  { %1527 = vadd.xlane.f32.xlu0 %v1526_v34  ;;  %v1656_v34 = vsel %vm515_vm2, %v3318_v1, 0.0 }
 0x29d   :  { %1781 = vadd.xlane.f32.xlu1 %v1780_v43  ;;  %v1668_v2 = vrot.slane %v1667_v37, 2  ;;  %v1538_v61 = vadd.f32 %v1537_v21, %v1536_v26  ;;  %v1789_v26 = vsel %vm515_vm2, %v3327_v29, 0.0  ;;  %v1792_v43 = vsel %vm515_vm2, %v3296_v32, 0.0 }
 0x29e   :  { %1784 = vadd.xlane.f32.xlu2 %v1783_v62  ;;  %v1752_v63 = vpop.xlane.xlu0 %1751  ;;  %v1786_v29 = vsel %vm515_vm2, %v3321_v38, 0.0  ;;  %v1795_v38 = vsel %vm515_vm2, %v3301_v46, 0.0 }
 0x29f   :  { %v1669_v57 = vadd.f32 %v1668_v2, %v1667_v37  ;;  %v1798_v35 = vadd.f32 %v1755_v15, %v1752_v63  ;;  %v1590_v48 = vadd.f32 %v3405_v56, %v1538_v61 }
 0x2a0   :  { %v1495_v33 = vpop.xlane.xlu1 %1494 }
 0x2a1   :  { %v1628_v14 = vpop.xlane.xlu2 %1627  ;;  %v1799_v3 = vrot.slane %v1798_v35, 4  ;;  %v1670_v40 = vrot.slane %v1669_v57, 1  ;;  %v1865_v25 = vsel %vm1864_vm7, %v1457_v12, %v1590_v48 }
 0x2a3   :  { %v1800_v17 = vadd.f32 %v1799_v3, %v1798_v35  ;;  %v1671_v23 = vadd.f32 %v1670_v40, %v1669_v57 }
 0x2a4   :  { %1648 = vadd.xlane.f32.xlu0 %v1647_v44 }
 0x2a5   :  { %1391 = vadd.xlane.f32.xlu1 %v1390_v54  ;;  %v1801_v36 = vrot.slane %v1800_v17, 2  ;;  %v1723_v28 = vadd.f32 %v3410_v47, %v1671_v23 }
 0x2a6   :  { %1524 = vadd.xlane.f32.xlu2 %v1523_v41 }
 0x2a7   :  { %v1362_v22 = vpop.xlane.xlu0 %1361  ;;  %v1802_v13 = vadd.f32 %v1801_v36, %v1800_v17  ;;  %v1874_v4 = vsel %vm1873_vm8, %v1865_v25, %v1723_v28 }
 0x2a8   :  { %v1406_v20 = vadd.f32 %v1362_v22, %v1359_v52  ;;  %v1625_v16 = vpop.xlane.xlu1 %1624 }
 0x2a9   :  { %v1672_v8 = vadd.f32 %v1628_v14, %v1625_v16  ;;  %v1758_v53 = vpop.xlane.xlu2 %1757  ;;  %v1803_v30 = vrot.slane %v1802_v13, 1 }
 0x2aa   :  { %v1407_v18 = vrot.slane %v1406_v20, 4 }
 0x2ab   :  { %v1673_v59 = vrot.slane %v1672_v8, 4  ;;  %v1804_v50 = vadd.f32 %v1803_v30, %v1802_v13 }
 0x2ac   :  { %1388 = vadd.xlane.f32.xlu0 %v1387_v45  ;;  %v1408_v31 = vadd.f32 %v1407_v18, %v1406_v20 }
 0x2ad   :  { %1521 = vadd.xlane.f32.xlu1 %v1520_v5  ;;  %v1856_v24 = vadd.f32 %v3415_v6, %v1804_v50  ;;  %v1674_v10 = vadd.f32 %v1673_v59, %v1672_v8 }
 0x2ae   :  { %1654 = vadd.xlane.f32.xlu2 %v1653_v27  ;;  %v1409_v7 = vrot.slane %v1408_v31, 2 }
 0x2af   :  { %v1492_v42 = vpop.xlane.xlu0 %1491  ;;  %v1883_v58 = vsel %vm1882_vm9, %v1874_v4, %v1856_v24  ;;  %v1675_v51 = vrot.slane %v1674_v10, 2 }
 0x2b0   :  { %v1539_v15 = vadd.f32 %v1495_v33, %v1492_v42  ;;  %v1365_v52 = vpop.xlane.xlu1 %1364  ;;  %1892 = vst.msk [vmem:[%s3537_s10] sm:$0x1] %vm1891_vm10, %v1883_v58  ;;  %v1410_v62 = vadd.f32 %v1409_v7, %v1408_v31 }
 0x2b1   :  { %v1368_v11 = vpop.xlane.xlu2 %1367  ;;  %v1676_v2 = vadd.f32 %v1675_v51, %v1674_v10 }
 0x2b2   :  { %v1540_v19 = vrot.slane %v1539_v15, 4  ;;  %v1411_v9 = vrot.slane %v1410_v62, 1  ;;  %v1413_v18 = vadd.f32 %v1368_v11, %v1365_v52 }
 0x2b3   :  { %v1677_v39 = vrot.slane %v1676_v2, 1 }
 0x2b4   :  { %v1541_v37 = vadd.f32 %v1540_v19, %v1539_v15  ;;  %1657 = vadd.xlane.f32.xlu0 %v1656_v34  ;;  %v1412_v32 = vadd.f32 %v1411_v9, %v1410_v62  ;;  %v1414_v45 = vrot.slane %v1413_v18, 4 }
 0x2b5   :  { %1790 = vadd.xlane.f32.xlu1 %v1789_v26  ;;  %v1678_v44 = vadd.f32 %v1677_v39, %v1676_v2 }
 0x2b6   :  { %v1542_v60 = vrot.slane %v1541_v37, 2  ;;  %1793 = vadd.xlane.f32.xlu2 %v1792_v43  ;;  %v1458_v36 = vadd.f32 %v3408_v49, %v1412_v32  ;;  %v1415_v31 = vadd.f32 %v1414_v45, %v1413_v18 }
 0x2b7   :  { %v1761_v63 = vpop.xlane.xlu0 %1760  ;;  %v1724_v22 = vadd.f32 %v3410_v47, %v1678_v44 }
 0x2b8   :  { %v1543_v57 = vadd.f32 %v1542_v60, %v1541_v37  ;;  %v1805_v21 = vadd.f32 %v1761_v63, %v1758_v53  ;;  %v1513_v35 = vpop.xlane.xlu1 %1512  ;;  %v1416_v51 = vrot.slane %v1415_v31, 2 }
 0x2b9   :  { %v1377_v33 = vpop.xlane.xlu2 %1376 }
 0x2ba   :  { %v1544_v1 = vrot.slane %v1543_v57, 1  ;;  %v1806_v14 = vrot.slane %v1805_v21, 4  ;;  %v1417_v2 = vadd.f32 %v1416_v51, %v1415_v31 }
 0x2bc   :  { %v1545_v0 = vadd.f32 %v1544_v1, %v1543_v57  ;;  %v1807_v3 = vadd.f32 %v1806_v14, %v1805_v21  ;;  %1787 = vadd.xlane.f32.xlu0 %v1786_v29  ;;  %v1418_v29 = vrot.slane %v1417_v2, 1 }
 0x2be   :  { %v1808_v40 = vrot.slane %v1807_v3, 2  ;;  %v1591_v17 = vadd.f32 %v3405_v56, %v1545_v0 }
 0x2bf   :  { %v1380_v61 = vpop.xlane.xlu0 %1379 }
 0x2c0   :  { %v1809_v54 = vadd.f32 %v1808_v40, %v1807_v3  ;;  %v1634_v41 = vpop.xlane.xlu1 %1633  ;;  %v1866_v48 = vsel %vm1864_vm7, %v1458_v36, %v1591_v17  ;;  %v1427_v59 = vadd.f32 %v1380_v61, %v1377_v33  ;;  %v1419_v36 = vadd.f32 %v1418_v29, %v1417_v2 }
 0x2c1   :  { %v1498_v55 = vpop.xlane.xlu2 %1497  ;;  %v1875_v16 = vsel %vm1873_vm8, %v1866_v48, %v1724_v22 }
 0x2c2   :  { %v1810_v23 = vrot.slane %v1809_v54, 1  ;;  %v1428_v58 = vrot.slane %v1427_v59, 4  ;;  %v1459_v18 = vadd.f32 %v3408_v49, %v1419_v36 }
 0x2c4   :  { %v1811_v13 = vadd.f32 %v1810_v23, %v1809_v54  ;;  %1796 = vadd.xlane.f32.xlu0 %v1795_v38  ;;  %v1429_v11 = vadd.f32 %v1428_v58, %v1427_v59 }
 0x2c6   :  { %v1857_v20 = vadd.f32 %v3415_v6, %v1811_v13  ;;  %v1430_v33 = vrot.slane %v1429_v11, 2 }
 0x2c7   :  { %v1501_v8 = vpop.xlane.xlu0 %1500 }
 0x2c8   :  { %v1884_v53 = vsel %vm1882_vm9, %v1875_v16, %v1857_v20  ;;  %v1546_v12 = vadd.f32 %v1501_v8, %v1498_v55  ;;  %v1643_v30 = vpop.xlane.xlu1 %1642  ;;  %v1431_v40 = vadd.f32 %v1430_v33, %v1429_v11 }
 0x2c9   :  { %1893 = vst.msk [vmem:[%s3537_s10 + $0x1] sm:$0x1] %vm1891_vm10, %v1884_v53  ;;  %v1646_v46 = vpop.xlane.xlu2 %1645 }
 0x2ca   :  { %v1547_v28 = vrot.slane %v1546_v12, 4  ;;  %v1693_v5 = vadd.f32 %v1646_v46, %v1643_v30  ;;  %v1432_v20 = vrot.slane %v1431_v40, 1 }
 0x2cc   :  { %v1548_v25 = vadd.f32 %v1547_v28, %v1546_v12  ;;  %v1694_v7 = vrot.slane %v1693_v5, 4 }
 0x2ce   :  { %v1549_v15 = vrot.slane %v1548_v25, 2  ;;  %v1695_v26 = vadd.f32 %v1694_v7, %v1693_v5 }
 0x2cf   :  { %v1510_v50 = vpop.xlane.xlu0 %1509 }
 0x2d0   :  { %v1560_v27 = vadd.f32 %v1513_v35, %v1510_v50  ;;  %v1764_v24 = vpop.xlane.xlu1 %1763  ;;  %v1550_v37 = vadd.f32 %v1549_v15, %v1548_v25  ;;  %v1696_v1 = vrot.slane %v1695_v26, 2  ;;  %v1433_v25 = vadd.f32 %v1432_v20, %v1431_v40 }
 0x2d1   :  { %v1767_v4 = vpop.xlane.xlu2 %1766 }
 0x2d2   :  { %v1561_v42 = vrot.slane %v1560_v27, 4  ;;  %v1812_v10 = vadd.f32 %v1767_v4, %v1764_v24  ;;  %v1551_v9 = vrot.slane %v1550_v37, 1  ;;  %v1697_v61 = vadd.f32 %v1696_v1, %v1695_v26 }
 0x2d4   :  { %v1813_v19 = vrot.slane %v1812_v10, 4  ;;  %v1562_v34 = vadd.f32 %v1561_v42, %v1560_v27  ;;  %v1552_v44 = vadd.f32 %v1551_v9, %v1550_v37  ;;  %v1698_v8 = vrot.slane %v1697_v61, 1 }
 0x2d6   :  { %v1814_v52 = vadd.f32 %v1813_v19, %v1812_v10  ;;  %v1563_v21 = vrot.slane %v1562_v34, 2  ;;  %v1592_v16 = vadd.f32 %v3405_v56, %v1552_v44  ;;  %v1699_v5 = vadd.f32 %v1698_v8, %v1697_v61 }
 0x2d7   :  { %v1631_v43 = vpop.xlane.xlu0 %1630 }
 0x2d8   :  { %v1679_v62 = vadd.f32 %v1634_v41, %v1631_v43  ;;  %v1374_v60 = vpop.xlane.xlu1 %1373  ;;  %v1815_v63 = vrot.slane %v1814_v52, 2  ;;  %v1564_v3 = vadd.f32 %v1563_v21, %v1562_v34  ;;  %v1867_v50 = vsel %vm1864_vm7, %v1459_v18, %v1592_v16 }
 0x2d9   :  { %v1776_v57 = vpop.xlane.xlu2 %1775  ;;  %v1727_v34 = vadd.f32 %v3410_v47, %v1699_v5 }
 0x2da   :  { %v1680_v35 = vrot.slane %v1679_v62, 4  ;;  %v1816_v14 = vadd.f32 %v1815_v63, %v1814_v52  ;;  %v1565_v38 = vrot.slane %v1564_v3, 1  ;;  %v1461_v52 = vadd.f32 %v3408_v49, %v1433_v25 }
 0x2dc   :  { %v1681_v39 = vadd.f32 %v1680_v35, %v1679_v62  ;;  %v1817_v0 = vrot.slane %v1816_v14, 1  ;;  %v1566_v28 = vadd.f32 %v1565_v38, %v1564_v3 }
 0x2de   :  { %v1682_v32 = vrot.slane %v1681_v39, 2  ;;  %v1818_v23 = vadd.f32 %v1817_v0, %v1816_v14  ;;  %v1594_v7 = vadd.f32 %v3405_v56, %v1566_v28 }
 0x2df   :  { %v1779_v17 = vpop.xlane.xlu0 %1778 }
 0x2e0   :  { %v1683_v54 = vadd.f32 %v1682_v32, %v1681_v39  ;;  %v1826_v41 = vadd.f32 %v1779_v17, %v1776_v57  ;;  %v1504_v55 = vpop.xlane.xlu1 %1503  ;;  %v1858_v46 = vadd.f32 %v3415_v6, %v1818_v23  ;;  %v1869_v26 = vsel %vm1864_vm7, %v1461_v52, %v1594_v7 }
 0x2e1   :  { %v1507_v22 = vpop.xlane.xlu2 %1506 }
 0x2e2   :  { %v1684_v48 = vrot.slane %v1683_v54, 1  ;;  %v1827_v13 = vrot.slane %v1826_v41, 4  ;;  %v1553_v30 = vadd.f32 %v1507_v22, %v1504_v55 }
 0x2e4   :  { %v1685_v53 = vadd.f32 %v1684_v48, %v1683_v54  ;;  %v1828_v12 = vadd.f32 %v1827_v13, %v1826_v41  ;;  %v1554_v42 = vrot.slane %v1553_v30, 4 }
 0x2e6   :  { %v1725_v45 = vadd.f32 %v3410_v47, %v1685_v53  ;;  %v1829_v59 = vrot.slane %v1828_v12, 2  ;;  %v1555_v37 = vadd.f32 %v1554_v42, %v1553_v30 }
 0x2e7   :  { %v1371_v27 = vpop.xlane.xlu0 %1370 }
 0x2e8   :  { %v1876_v24 = vsel %vm1873_vm8, %v1867_v50, %v1725_v45  ;;  %v1830_v31 = vadd.f32 %v1829_v59, %v1828_v12  ;;  %v1420_v4 = vadd.f32 %v1374_v60, %v1371_v27  ;;  %v1773_v10 = vpop.xlane.xlu1 %1772  ;;  %v1878_v60 = vsel %vm1873_vm8, %v1869_v26, %v1727_v34 }
 0x2e9   :  { %v1885_v58 = vsel %vm1882_vm9, %v1876_v24, %v1858_v46  ;;  %v1637_v15 = vpop.xlane.xlu2 %1636  ;;  %v1556_v57 = vrot.slane %v1555_v37, 2 }
 0x2ea   :  { %1894 = vst.msk [vmem:[%s3537_s10 + $0x2] sm:$0x1] %vm1891_vm10, %v1885_v58  ;;  %v1831_v19 = vrot.slane %v1830_v31, 1  ;;  %v1421_v51 = vrot.slane %v1420_v4, 4 }
 0x2eb   :  { %v1557_v14 = vadd.f32 %v1556_v57, %v1555_v37 }
 0x2ec   :  { %v1832_v11 = vadd.f32 %v1831_v19, %v1830_v31  ;;  %v1422_v62 = vadd.f32 %v1421_v51, %v1420_v4 }
 0x2ed   :  { %v1558_v32 = vrot.slane %v1557_v14, 1 }
 0x2ee   :  { %v1860_v43 = vadd.f32 %v3415_v6, %v1832_v11  ;;  %v1423_v9 = vrot.slane %v1422_v62, 2 }
 0x2ef   :  { %v1640_v2 = vpop.xlane.xlu0 %1639  ;;  %v1559_v36 = vadd.f32 %v1558_v32, %v1557_v14 }
 0x2f0   :  { %v1887_v63 = vsel %vm1882_vm9, %v1878_v60, %v1860_v43  ;;  %v1686_v21 = vadd.f32 %v1640_v2, %v1637_v15  ;;  %v1383_v35 = vpop.xlane.xlu1 %1382  ;;  %v1424_v29 = vadd.f32 %v1423_v9, %v1422_v62 }
 0x2f1   :  { %1896 = vst.msk [vmem:[%s3537_s10 + $0x4] sm:$0x1] %vm1891_vm10, %v1887_v63  ;;  %v1386_v33 = vpop.xlane.xlu2 %1385  ;;  %v1593_v20 = vadd.f32 %v3405_v56, %v1559_v36 }
 0x2f2   :  { %v1687_v1 = vrot.slane %v1686_v21, 4  ;;  %v1425_v54 = vrot.slane %v1424_v29, 1  ;;  %v1434_v24 = vadd.f32 %v1386_v33, %v1383_v35 }
 0x2f4   :  { %v1688_v39 = vadd.f32 %v1687_v1, %v1686_v21  ;;  %v1426_v38 = vadd.f32 %v1425_v54, %v1424_v29  ;;  %v1435_v42 = vrot.slane %v1434_v24, 4 }
 0x2f6   :  { %v1689_v0 = vrot.slane %v1688_v39, 2  ;;  %v1460_v30 = vadd.f32 %v3408_v49, %v1426_v38  ;;  %v1436_v7 = vadd.f32 %v1435_v42, %v1434_v24 }
 0x2f7   :  { %v1770_v3 = vpop.xlane.xlu0 %1769 }
 0x2f8   :  { %v1690_v40 = vadd.f32 %v1689_v0, %v1688_v39  ;;  %v1819_v44 = vadd.f32 %v1773_v10, %v1770_v3  ;;  %v3474_v61 = vpop.xlane.xlu1 %1530  ;;  %v1868_v46 = vsel %vm1864_vm7, %v1460_v30, %v1593_v20  ;;  %v1437_v11 = vrot.slane %v1436_v7, 2 }
 0x2f9   :  { %v3476_v17 = vpop.xlane.xlu2 %1394 }
 0x2fa   :  { %v1691_v41 = vrot.slane %v1690_v40, 1  ;;  %v1820_v55 = vrot.slane %v1819_v44, 4  ;;  %v1438_v2 = vadd.f32 %v1437_v11, %v1436_v7 }
 0x2fc   :  { %v1821_v23 = vadd.f32 %v1820_v55, %v1819_v44  ;;  %v1692_v22 = vadd.f32 %v1691_v41, %v1690_v40  ;;  %v1439_v1 = vrot.slane %v1438_v2, 1 }
 0x2fe   :  { %v1822_v48 = vrot.slane %v1821_v23, 2  ;;  %v1726_v53 = vadd.f32 %v3410_v47, %v1692_v22  ;;  %v1440_v44 = vadd.f32 %v1439_v1, %v1438_v2 }
 0x2ff   :  { %v3478_v13 = vpop.xlane.xlu0 %1397 }
 0x300   :  { %v1823_v16 = vadd.f32 %v1822_v48, %v1821_v23  ;;  %v1652_v8 = vpop.xlane.xlu1 %1651  ;;  %v1877_v45 = vsel %vm1873_vm8, %v1868_v46, %v1726_v53  ;;  %v1462_v48 = vadd.f32 %v3408_v49, %v1440_v44 }
 0x301   :  { %v1516_v12 = vpop.xlane.xlu2 %1515 }
 0x302   :  { %v1824_v18 = vrot.slane %v1823_v16, 1 }
 0x304   :  { %v1825_v28 = vadd.f32 %v1824_v18, %v1823_v16 }
 0x306   :  { %v1859_v59 = vadd.f32 %v3415_v6, %v1825_v28 }
 0x307   :  { %v1519_v25 = vpop.xlane.xlu0 %1518 }
 0x308   :  { %v1886_v50 = vsel %vm1882_vm9, %v1877_v45, %v1859_v59  ;;  %v1567_v5 = vadd.f32 %v1519_v25, %v1516_v12  ;;  %v1661_v27 = vpop.xlane.xlu1 %1660  ;;  %v1448_v45 = vadd.f32 %v3478_v13, %v3476_v17 }
 0x309   :  { %1895 = vst.msk [vmem:[%s3537_s10 + $0x3] sm:$0x1] %vm1891_vm10, %v1886_v50  ;;  %v1664_v31 = vpop.xlane.xlu2 %1663 }
 0x30a   :  { %v1568_v4 = vrot.slane %v1567_v5, 4  ;;  %v1714_v46 = vadd.f32 %v1664_v31, %v1661_v27  ;;  %v1449_v27 = vrot.slane %v1448_v45, 4 }
 0x30c   :  { %v1569_v10 = vadd.f32 %v1568_v4, %v1567_v5  ;;  %v1715_v42 = vrot.slane %v1714_v46, 4 }
 0x30e   :  { %v1570_v34 = vrot.slane %v1569_v10, 2  ;;  %v1716_v7 = vadd.f32 %v1715_v42, %v1714_v46 }
 0x30f   :  { %v1528_v58 = vpop.xlane.xlu0 %1527 }
 0x310   :  { %v1782_v15 = vpop.xlane.xlu1 %1781  ;;  %v1571_v26 = vadd.f32 %v1570_v34, %v1569_v10  ;;  %v1581_v53 = vadd.f32 %v3474_v61, %v1528_v58 }
 0x311   :  { %v1785_v19 = vpop.xlane.xlu2 %1784 }
 0x312   :  { %v1833_v51 = vadd.f32 %v1785_v19, %v1782_v15  ;;  %v1572_v21 = vrot.slane %v1571_v26, 1  ;;  %v1582_v24 = vrot.slane %v1581_v53, 4 }
 0x314   :  { %v1834_v52 = vrot.slane %v1833_v51, 4  ;;  %v1573_v29 = vadd.f32 %v1572_v21, %v1571_v26  ;;  %v1583_v17 = vadd.f32 %v1582_v24, %v1581_v53 }
 0x316   :  { %v1835_v37 = vadd.f32 %v1834_v52, %v1833_v51  ;;  %v1595_v23 = vadd.f32 %v3405_v56, %v1573_v29  ;;  %v1450_v51 = vadd.f32 %v1449_v27, %v1448_v45 }
 0x317   :  { %v1649_v43 = vpop.xlane.xlu0 %1648 }
 0x318   :  { %v1700_v62 = vadd.f32 %v1652_v8, %v1649_v43  ;;  %v1392_v60 = vpop.xlane.xlu1 %1391  ;;  %v1836_v63 = vrot.slane %v1835_v37, 2  ;;  %v1870_v18 = vsel %vm1864_vm7, %v1462_v48, %v1595_v23  ;;  %v1451_v2 = vrot.slane %v1450_v51, 2 }
 0x319   :  { %v1525_v33 = vpop.xlane.xlu2 %1524 }
 0x31a   :  { %v1701_v57 = vrot.slane %v1700_v62, 4  ;;  %v1837_v35 = vadd.f32 %v1836_v63, %v1835_v37  ;;  %v1584_v37 = vrot.slane %v1583_v17, 2  ;;  %v1452_v29 = vadd.f32 %v1451_v2, %v1450_v51 }
 0x31c   :  { %v1702_v9 = vadd.f32 %v1701_v57, %v1700_v62  ;;  %v1838_v14 = vrot.slane %v1837_v35, 1  ;;  %v1453_v23 = vrot.slane %v1452_v29, 1 }
 0x31e   :  { %v1703_v39 = vrot.slane %v1702_v9, 2  ;;  %v1839_v54 = vadd.f32 %v1838_v14, %v1837_v35  ;;  %v1585_v35 = vadd.f32 %v1584_v37, %v1583_v17 }
 0x31f   :  { %v1389_v0 = vpop.xlane.xlu0 %1388 }
 0x320   :  { %v1704_v3 = vadd.f32 %v1703_v39, %v1702_v9  ;;  %v1441_v32 = vadd.f32 %v1392_v60, %v1389_v0  ;;  %v1522_v40 = vpop.xlane.xlu1 %1521  ;;  %v1861_v20 = vadd.f32 %v3415_v6, %v1839_v54  ;;  %v1717_v60 = vrot.slane %v1716_v7, 2 }
 0x321   :  { %v1574_v41 = vadd.f32 %v1525_v33, %v1522_v40  ;;  %v1655_v8 = vpop.xlane.xlu2 %1654  ;;  %v1586_v44 = vrot.slane %v1585_v35, 1 }
 0x322   :  { %v1705_v55 = vrot.slane %v1704_v3, 1  ;;  %v1442_v36 = vrot.slane %v1441_v32, 4  ;;  %v1718_v1 = vadd.f32 %v1717_v60, %v1716_v7 }
 0x323   :  { %v1575_v22 = vrot.slane %v1574_v41, 4 }
 0x324   :  { %v1706_v38 = vadd.f32 %v1705_v55, %v1704_v3  ;;  %v1443_v30 = vadd.f32 %v1442_v36, %v1441_v32  ;;  %v1719_v36 = vrot.slane %v1718_v1, 1 }
 0x325   :  { %v1576_v16 = vadd.f32 %v1575_v22, %v1574_v41 }
 0x326   :  { %v1728_v12 = vadd.f32 %v3410_v47, %v1706_v38  ;;  %v1444_v61 = vrot.slane %v1443_v30, 2 }
 0x327   :  { %v1658_v28 = vpop.xlane.xlu0 %1657  ;;  %v1577_v25 = vrot.slane %v1576_v16, 2 }
 0x328   :  { %v1879_v59 = vsel %vm1873_vm8, %v1870_v18, %v1728_v12  ;;  %v1707_v50 = vadd.f32 %v1658_v28, %v1655_v8  ;;  %v1791_v58 = vpop.xlane.xlu1 %1790  ;;  %v1445_v13 = vadd.f32 %v1444_v61, %v1443_v30  ;;  %v1720_v12 = vadd.f32 %v1719_v36, %v1718_v1 }
 0x329   :  { %v1888_v5 = vsel %vm1882_vm9, %v1879_v59, %v1861_v20  ;;  %v1578_v31 = vadd.f32 %v1577_v25, %v1576_v16  ;;  %v1794_v14 = vpop.xlane.xlu2 %1793  ;;  %v1587_v16 = vadd.f32 %v1586_v44, %v1585_v35  ;;  %v1454_v30 = vadd.f32 %v1453_v23, %v1452_v29 }
 0x32a   :  { %1897 = vst.msk [vmem:[%s3537_s10 + $0x5] sm:$0x1] %vm1891_vm10, %v1888_v5  ;;  %v1708_v4 = vrot.slane %v1707_v50, 4  ;;  %v1446_v26 = vrot.slane %v1445_v13, 1  ;;  %v1730_v59 = vadd.f32 %v3410_v47, %v1720_v12 }
 0x32b   :  { %v1579_v34 = vrot.slane %v1578_v31, 1  ;;  %v1597_v28 = vadd.f32 %v3405_v56, %v1587_v16  ;;  %v1464_v25 = vadd.f32 %v3408_v49, %v1454_v30 }
 0x32c   :  { %v1709_v10 = vadd.f32 %v1708_v4, %v1707_v50  ;;  %v1447_v33 = vadd.f32 %v1446_v26, %v1445_v13 }
 0x32d   :  { %v1580_v63 = vadd.f32 %v1579_v34, %v1578_v31  ;;  %v1872_v5 = vsel %vm1864_vm7, %v1464_v25, %v1597_v28 }
 0x32e   :  { %v1710_v15 = vrot.slane %v1709_v10, 2  ;;  %v1463_v54 = vadd.f32 %v3408_v49, %v1447_v33  ;;  %v1881_v61 = vsel %vm1873_vm8, %v1872_v5, %v1730_v59 }
 0x32f   :  { %v1788_v19 = vpop.xlane.xlu0 %1787  ;;  %v1596_v0 = vadd.f32 %v3405_v56, %v1580_v63 }
 0x330   :  { %v1711_v52 = vadd.f32 %v1710_v15, %v1709_v10  ;;  %v1840_v11 = vadd.f32 %v1791_v58, %v1788_v19 }
 0x331   :  { %v1871_v22 = vsel %vm1864_vm7, %v1463_v54, %v1596_v0 }
 0x332   :  { %v1712_v43 = vrot.slane %v1711_v52, 1  ;;  %v1841_v62 = vrot.slane %v1840_v11, 4 }
 0x334   :  { %v1842_v57 = vadd.f32 %v1841_v62, %v1840_v11  ;;  %v1713_v21 = vadd.f32 %v1712_v43, %v1711_v52 }
 0x336   :  { %v1843_v9 = vrot.slane %v1842_v57, 2  ;;  %v1729_v40 = vadd.f32 %v3410_v47, %v1713_v21 }
 0x337   :  { %v1797_v39 = vpop.xlane.xlu0 %1796 }
 0x338   :  { %v1844_v3 = vadd.f32 %v1843_v9, %v1842_v57  ;;  %v1847_v32 = vadd.f32 %v1797_v39, %v1794_v14  ;;  %v1880_v20 = vsel %vm1873_vm8, %v1871_v22, %v1729_v40 }
 0x33a   :  { %v1845_v41 = vrot.slane %v1844_v3, 1  ;;  %v1848_v55 = vrot.slane %v1847_v32, 4 }
 0x33c   :  { %v1846_v38 = vadd.f32 %v1845_v41, %v1844_v3  ;;  %v1849_v48 = vadd.f32 %v1848_v55, %v1847_v32 }
 0x33e   :  { %v1862_v8 = vadd.f32 %v3415_v6, %v1846_v38  ;;  %v1850_v53 = vrot.slane %v1849_v48, 2 }
 0x340   :  { %v1889_v18 = vsel %vm1882_vm9, %v1880_v20, %v1862_v8  ;;  %v1851_v46 = vadd.f32 %v1850_v53, %v1849_v48 }
 0x341   :  { %1898 = vst.msk [vmem:[%s3537_s10 + $0x6] sm:$0x1] %vm1891_vm10, %v1889_v18 }
 0x342   :  { %v1852_v45 = vrot.slane %v1851_v46, 1 }
 0x344   :  { %v1853_v50 = vadd.f32 %v1852_v45, %v1851_v46 }
 0x346   :  { %v1863_v24 = vadd.f32 %v3415_v6, %v1853_v50 }
 0x348   :  { %v1890_v4 = vsel %vm1882_vm9, %v1881_v61, %v1863_v24 }
 0x349   :  { %1899 = vst.msk [vmem:[%s3537_s10 + $0x7] sm:$0x1] %vm1891_vm10, %v1890_v4 }
 0x34a   :  { %1904 = vsyncpa [#allocation4], 1 }
 0x34b   :  { %1905 = vsyncpa [#allocation7], 1 }
 0x34c   :  { %1906 = vsyncpa [#allocation5], 1 }

// kernel: tpu_custom_call.1
= control target key start
LH: loop header
LB: loop body
LE: loop exit
PB: predicated region body
PF: predicated region fallthrough
CT: control target
= control target key end

     0   :  { %16 = vsyncpa [#allocation4], 0  ;;  %s3527_s0 = inlined_call_operand.hbm [shape: f32[8,16,32], index: 0, kind: input, shape index: {}]   ;;  %s3528_s1 = inlined_call_operand.hbm [shape: bf16[8,16,64], index: 1, kind: input, shape index: {}]   ;;  %s3529_s2 = inlined_call_operand.vmem [shape: bf16[64,32], index: 2, kind: input, shape index: {}]   ;;  %s3530_s3 = inlined_call_operand.vmem [shape: f32[1,32], index: 3, kind: input, shape index: {}]   ;;  %s3531_s4 = inlined_call_operand.vmem [shape: bf16[16,16], index: 4, kind: input, shape index: {}]   ;;  %s3532_s5 = inlined_call_operand.vmem [shape: f32[16,1], index: 5, kind: input, shape index: {}]   ;;  %s3533_s6 = inlined_call_operand.vmem [shape: f32[1,32], index: 6, kind: input, shape index: {}]   ;;  %s3534_s7 = inlined_call_operand.<no memory space> [shape: f32[1], index: 7, kind: input, shape index: {}]   ;;  %s3535_s8 = inlined_call_operand.hbm [shape: f32[4,16,32], index: 8, kind: input, shape index: {}]   ;;  %s3536_s9 = inlined_call_operand.vmem [shape: f32[4], index: 9, kind: input, shape index: {}]   ;;  %s3537_s10 = inlined_call_operand.vmem [shape: f32[8,1,4], index: 10, kind: output, shape index: {}]  }
   0x1   :  { %17 = vsyncpa [#allocation7], 0  ;;  %s36_s15 = sshll.u32 %s3528_s1, 4  ;;  %s37_s15 = int_to_ptr.hbm [resolvable:$true] %s36_s15 }
   0x2   :  { %18 = vsyncpa [#allocation5], 0  ;;  %s2249_s16 = smov [#allocation6]   ;;  %s23_s20 = sshll.u32 %s3527_s0, 4  ;;  %s24_s20 = int_to_ptr.hbm [resolvable:$true] %s23_s20 }
   0x3   :  { %s38_s17 = sshll.u32 %s2249_s16, 4  ;;  %s2250_s21 = smov 64   ;;  %s39_s17 = int_to_ptr.vmem [resolvable:$true] %s38_s17 }
   0x4   :  { %s2251_s22 = smov 4   ;;  %s2252_s23 = smov [#allocation3]  }
   0x5   :  { %44 = dma.hbm_to_vmem [thread:$0]  %s37_s15, 1024, %s39_s17, [#allocation7], %s2250_s21, %s2250_s21, %s2251_s22  }
   0x6   :  { %s25_s24 = sshll.u32 %s2252_s23, 4  ;;  %s2253_s25 = smov 128   ;;  %s26_s24 = int_to_ptr.vmem [resolvable:$true] %s25_s24 }
   0x7   :  { %s2254_s26 = smov 8   ;;  %s61_s28 = sshll.u32 %s3535_s8, 4  ;;  %s62_s28 = int_to_ptr.hbm [resolvable:$true] %s61_s28 }
   0x8   :  { %31 = dma.hbm_to_vmem [thread:$0]  %s24_s20, 2048, %s26_s24, [#allocation4], %s2253_s25, %s2253_s25, %s2254_s26  }
   0x9   :  { %s2255_s29 = smov [#allocation8]   ;;  %s75_s12 = sshll.u32 %s3536_s9, 4  ;;  %s76_s12 = int_to_ptr.vmem [resolvable:$true] %s75_s12 }
   0xa   :  { %s63_s30 = sshll.u32 %s2255_s29, 4  ;;  %s2256_s13 = smov [#allocation9]   ;;  %s64_s30 = int_to_ptr.vmem [resolvable:$true] %s63_s30 }
   0xb   :  { %69 = dma.hbm_to_vmem [thread:$0]  %s62_s28, 1024, %s64_s30, [#allocation7], %s2253_s25, %s2253_s25, %s2254_s26  }
   0xc   :  { %78 = dma.vmem_to_smem %s76_s12, 16, %s2256_s13, [#allocation5]  }
   0xd   :  { %2243 = dma.done.wait [#allocation4], 2048  }
   0xe   :  { %2244 = vsyncadd [#allocation4], 4294965248 }
   0xf   :  { %2245 = dma.done.wait [#allocation7], 2048  }
  0x10   :  { %2246 = vsyncadd [#allocation7], 4294965248 }
  0x11   :  { %2247 = dma.done.wait [#allocation5], 16  }
  0x12   :  { %2248 = vsyncadd [#allocation5], 4294967280 }
  0x13   :  { %95 = sfence }
  0x14   :  { %v1989_v0 = vld [vmem:[%s3529_s2 + $0x18] sm:$0xff]  ;;  %v1988_v1 = vld [vmem:[%s3529_s2 + $0x10] sm:$0xff]  ;;  %v1987_v2 = vld [vmem:[%s3529_s2 + $0x8] sm:$0xff]  ;;  %vm201_vm0 = vcmask 523264   ;;  %v2257_v12 = vmov 0   ;;  %vm336_vm1 = vcmask 130048  }
  0x15   :  { %230 = vmatpush.bf16.msra.mxu0 %v1989_v0  ;;  %1993 = vmatpush.bf16.msra.mxu3 %v1989_v0  ;;  %v1986_v3 = vld [vmem:[%s3529_s2] sm:$0xff]  ;;  %v1984_v5 = vld [vmem:[#allocation6 + $0x30] sm:$0xff]  ;;  %v1983_v7 = vld [vmem:[#allocation6 + $0x28] sm:$0xff]  ;;  %vm515_vm2 = vcmask 261120   ;;  %s1455_s1 = sld [smem:[#allocation9]] }
  0x16   :  { %1991 = vmatpush.bf16.msra.mxu1 %v1989_v0  ;;  %1992 = vmatpush.bf16.msra.mxu2 %v1989_v0  ;;  %v1978_v4 = vld [vmem:[#allocation6] sm:$0xff]  ;;  %v1979_v8 = vld [vmem:[#allocation6 + $0x8] sm:$0xff]  ;;  %v1985_v9 = vld [vmem:[#allocation6 + $0x38] sm:$0xff]  ;;  %s1976_s27 = sld [smem:[#allocation9 + $0x2]] }
  0x17   :  { %v1982_v6 = vld [vmem:[#allocation6 + $0x20] sm:$0xff]  ;;  %v1980_v10 = vld [vmem:[#allocation6 + $0x10] sm:$0xff]  ;;  %v1981_v11 = vld [vmem:[#allocation6 + $0x18] sm:$0xff]  ;;  %2012 = vset.pattern.permute.xlu0 %v2257_v12  ;;  %s1977_s28 = sld [smem:[#allocation9 + $0x3]] }
  0x18   :  { %v313_v13 = vld [vmem:[%s3532_s5] sm:$0xff]  ;;  %v314_v14 = vld [vmem:[%s3532_s5 + $0x8] sm:$0xff]  ;;  %v99_v30 = vld [vmem:[#allocation3 + $0x10] sm:$0xff] }
  0x19   :  { %231 = vmatpush.bf16.msra.mxu0 %v1988_v1  ;;  %1996 = vmatpush.bf16.msra.mxu3 %v1988_v1  ;;  %v2354_v16 = vld [vmem:[%s3530_s3] ss:$0 sm:$0xff]  ;;  %v100_v45 = vld [vmem:[#allocation3 + $0x18] sm:$0xff]  ;;  %v98_v46 = vld [vmem:[#allocation3 + $0x8] sm:$0xff] }
  0x1a   :  { %1994 = vmatpush.bf16.msra.mxu1 %v1988_v1  ;;  %1995 = vmatpush.bf16.msra.mxu2 %v1988_v1  ;;  %v2365_v27 = vld [vmem:[%s3533_s6] ss:$0 sm:$0xff] }
  0x1b   :  { %317 = vperm.xlu0 %2012, %v313_v13   ;;  %v97_v31 = vld [vmem:[#allocation3] sm:$0xff]  ;;  %v501_v34 = vmul.f32 %v2365_v27, %v99_v30  ;;  %v502_v48 = vmul.f32 %v2365_v27, %v100_v45  ;;  %v500_v49 = vmul.f32 %v2365_v27, %v98_v46 }
  0x1c   :  { %v2370_v33 = vld [vmem:[%s3531_s4] sm:$0xff]  ;;  %v499_v35 = vmul.f32 %v2365_v27, %v97_v31 }
  0x1d   :  { %232 = vmatpush.bf16.msra.mxu0 %v1987_v2  ;;  %1999 = vmatpush.bf16.msra.mxu3 %v1987_v2  ;;  %v522_v38 = vsel %vm515_vm2, %v501_v34, 0.0  ;;  %v525_v55 = vsel %vm515_vm2, %v502_v48, 0.0  ;;  %v519_v56 = vsel %vm515_vm2, %v500_v49, 0.0  ;;  %v101_v46 = vld [vmem:[#allocation3 + $0x20] sm:$0xff] }
  0x1e   :  { %1997 = vmatpush.bf16.msra.mxu1 %v1987_v2  ;;  %1998 = vmatpush.bf16.msra.mxu2 %v1987_v2  ;;  %v516_v39 = vsel %vm515_vm2, %v499_v35, 0.0  ;;  %v102_v2 = vld [vmem:[#allocation3 + $0x28] sm:$0xff] }
  0x1f   :  { %523 = vadd.xlane.f32.xlu2 %v522_v38  ;;  %517 = vadd.xlane.f32.xlu1 %v516_v39 }
  0x21   :  { %233 = vmatpush.bf16.msra.mxu0 %v1986_v3  ;;  %2002 = vmatpush.bf16.msra.mxu3 %v1986_v3 }
  0x22   :  { %2000 = vmatpush.bf16.msra.mxu1 %v1986_v3  ;;  %2001 = vmatpush.bf16.msra.mxu2 %v1986_v3 }
  0x23   :  { %322 = vperm.xlu0 %2012, %v314_v14  }
  0x24   :  { %1955 = vmatmul.msk.bf16.vlgmr.msra.gmra.mxu0 %vm201_vm0, %v1978_v4  ;;  %1961 = vmatmul.msk.bf16.vlgmr.msra.gmra.mxu3 %vm201_vm0, %v1984_v5  ;;  %v504_v4 = vmul.f32 %v2365_v27, %v102_v2 }
  0x25   :  { %1959 = vmatmul.msk.bf16.vlgmr.msra.gmra.mxu1 %vm201_vm0, %v1982_v6  ;;  %1960 = vmatmul.msk.bf16.vlgmr.msra.gmra.mxu2 %vm201_vm0, %v1983_v7 }
  0x27   :  { %526 = vadd.xlane.f32.xlu2 %v525_v55  ;;  %520 = vadd.xlane.f32.xlu1 %v519_v56 }
  0x34   :  { %1956 = vmatmul.msk.bf16.gmra.mxu0 %vm201_vm0, %v1979_v8  ;;  %1962 = vmatmul.msk.bf16.gmra.mxu3 %vm201_vm0, %v1985_v9  ;;  %v531_v9 = vsel %vm515_vm2, %v504_v4, 0.0 }
  0x35   :  { %532 = vadd.xlane.f32.xlu1 %v531_v9 }
  0x44   :  { %1957 = vmatmul.msk.bf16.gmra.mxu0 %vm201_vm0, %v1980_v10 }
  0x54   :  { %1958 = vmatmul.msk.bf16.gmra.mxu0 %vm201_vm0, %v1981_v11 }
  0xa1   :  { %v235_v15 = vpop.f32.mrf.mxu0 }
  0xa2   :  { %v279_v17 = vadd.f32 %v2354_v16, %v235_v15  ;;  %v255_v18 = vpop.f32.mrf.mxu1 }
  0xa3   :  { %v287_v36 = vadd.f32 %v2354_v16, %v255_v18  ;;  %v104_v18 = vld [vmem:[#allocation3 + $0x38] sm:$0xff] }
  0xa4   :  { %v297_v21 = vpack.c.bf16 %v279_v17, %v279_v17  ;;  %v103_v17 = vld [vmem:[#allocation3 + $0x30] sm:$0xff] }
  0xa5   :  { %v305_v42 = vpack.c.bf16 %v287_v36, %v287_v36  ;;  %v105_v36 = vld [vmem:[#allocation3 + $0x40] sm:$0xff] }
  0xa6   :  { %v332_v24 = vunpack.c.l.b16 %v297_v21  ;;  %v505_v21 = vmul.f32 %v2365_v27, %v103_v17  ;;  %v507_v39 = vmul.f32 %v2365_v27, %v105_v36 }
  0xa7   :  { %v2357_v19 = vpop.f32.mrf.mxu3  ;;  %v416_v53 = vunpack.c.l.b16 %v305_v42 }
  0xa8   :  { %v260_v41 = vpop.f32.mrf.mxu2 }
  0xa9   :  { %v237_v20 = vpop.f32.mrf.mxu0  ;;  %v289_v7 = vadd.f32 %v2354_v16, %v260_v41  ;;  %v291_v41 = vadd.f32 %v2354_v16, %v2357_v19  ;;  %v107_v19 = vld [vmem:[#allocation3 + $0x50] sm:$0xff] }
  0xaa   :  { %v280_v22 = vadd.f32 %v2354_v16, %v237_v20  ;;  %v257_v29 = vpop.f32.mrf.mxu1  ;;  %v509_v48 = vmul.f32 %v2365_v27, %v107_v19 }
  0xab   :  { %v288_v37 = vadd.f32 %v2354_v16, %v257_v29  ;;  %v307_v13 = vpack.c.bf16 %v289_v7, %v289_v7  ;;  %v112_v7 = vld [vmem:[#allocation3 + $0x78] sm:$0xff] }
  0xac   :  { %v298_v23 = vpack.c.bf16 %v280_v22, %v280_v22  ;;  %v506_v22 = vmul.f32 %v2365_v27, %v104_v18  ;;  %v546_v55 = vsel %vm515_vm2, %v509_v48, 0.0  ;;  %v514_v9 = vmul.f32 %v2365_v27, %v112_v7  ;;  %v2445_v18 = vpop.permute.xlu0 %317 }
  0xad   :  { %v306_v43 = vpack.c.bf16 %v288_v37, %v288_v37  ;;  %v106_v37 = vld [vmem:[#allocation3 + $0x48] sm:$0xff] }
  0xae   :  { %v333_v25 = vunpack.c.l.b16 %v298_v23  ;;  %v537_v29 = vsel %vm515_vm2, %v506_v22, 0.0 }
  0xaf   :  { %v2360_v26 = vpop.f32.mrf.mxu3  ;;  %v417_v54 = vunpack.c.l.b16 %v306_v43  ;;  %538 = vadd.xlane.f32.xlu1 %v537_v29  ;;  %v540_v43 = vsel %vm515_vm2, %v507_v39, 0.0 }
  0xb0   :  { %v334_v28 = vpack.c.b16 %v333_v25, %v332_v24  ;;  %v262_v0 = vpop.f32.mrf.mxu2  ;;  %v436_v24 = vunpack.c.l.b16 %v307_v13  ;;  %v292_v42 = vadd.f32 %v2354_v16, %v2360_v26  ;;  %v503_v26 = vmul.f32 %v2365_v27, %v101_v46  ;;  %v2436_v13 = vpop.xlane.xlu1 %517 }
  0xb1   :  { %v240_v32 = vpop.f32.mrf.mxu0  ;;  %v418_v61 = vpack.c.b16 %v417_v54, %v416_v53  ;;  %v290_v8 = vadd.f32 %v2354_v16, %v262_v0 }
  0xb2   :  { %347 = vmatpush.bf16.msrb.mxu1 %v334_v28  ;;  %v281_v40 = vadd.f32 %v2354_v16, %v240_v32  ;;  %v534_v28 = vsel %vm515_vm2, %v505_v21, 0.0  ;;  %v528_v53 = vsel %vm515_vm2, %v503_v26, 0.0 }
  0xb3   :  { %v308_v14 = vpack.c.bf16 %v290_v8, %v290_v8  ;;  %535 = vadd.xlane.f32.xlu2 %v534_v28  ;;  %529 = vadd.xlane.f32.xlu0 %v528_v53 }
  0xb4   :  { %v299_v50 = vpack.c.bf16 %v281_v40, %v281_v40  ;;  %v508_v40 = vmul.f32 %v2365_v27, %v106_v37 }
  0xb5   :  { %1967 = vmatmul.msk.bf16.vlgmr.msrb.gmra.mxu1 %vm336_vm1, %v2370_v33  ;;  %v437_v25 = vunpack.c.l.b16 %v308_v14  ;;  %v2441_v14 = vstv %s3534_s7  ;;  %s1975_s7 = sld [smem:[#allocation9 + $0x1]] }
  0xb6   :  { %v356_v58 = vunpack.c.l.b16 %v299_v50  ;;  %v309_v50 = vpack.c.bf16 %v291_v41, %v291_v41 }
  0xb7   :  { %v270_v44 = vpop.f32.mrf.mxu3  ;;  %v438_v34 = vpack.c.b16 %v437_v25, %v436_v24 }
  0xb8   :  { %v293_v52 = vadd.f32 %v2354_v16, %v270_v44  ;;  %v543_v44 = vsel %vm515_vm2, %v508_v40, 0.0  ;;  %v2443_v17 = vpop.xlane.xlu1 %520 }
  0xb9   :  { %v242_v47 = vpop.f32.mrf.mxu0  ;;  %544 = vadd.xlane.f32.xlu1 %v543_v44 }
  0xba   :  { %v282_v51 = vadd.f32 %v2354_v16, %v242_v47  ;;  %v311_v60 = vpack.c.bf16 %v293_v52, %v293_v52  ;;  %v108_v47 = vld [vmem:[#allocation3 + $0x58] sm:$0xff] }
  0xbb   :  { %541 = vadd.xlane.f32.xlu2 %v540_v43  ;;  %v510_v49 = vmul.f32 %v2365_v27, %v108_v47 }
  0xbc   :  { %v300_v57 = vpack.c.bf16 %v282_v51, %v282_v51  ;;  %v476_v5 = vunpack.c.l.b16 %v311_v60  ;;  %v310_v51 = vpack.c.bf16 %v292_v42, %v292_v42  ;;  %v456_v60 = vunpack.c.l.b16 %v309_v50 }
  0xbd   :  { %v549_v56 = vsel %vm515_vm2, %v510_v49, 0.0 }
  0xbe   :  { %v357_v59 = vunpack.c.l.b16 %v300_v57 }
  0xbf   :  { %v272_v62 = vpop.f32.mrf.mxu3 }
  0xc0   :  { %v358_v63 = vpack.c.b16 %v357_v59, %v356_v58  ;;  %v294_v1 = vadd.f32 %v2354_v16, %v272_v62  ;;  %v109_v58 = vld [vmem:[#allocation3 + $0x60] sm:$0xff]  ;;  %v110_v59 = vld [vmem:[#allocation3 + $0x68] sm:$0xff] }
  0xc1   :  { %v245_v3 = vpop.f32.mrf.mxu0  ;;  %550 = vadd.xlane.f32.xlu1 %v549_v56  ;;  %v511_v0 = vmul.f32 %v2365_v27, %v109_v58 }
  0xc2   :  { %367 = vmatpush.bf16.msrb.mxu2 %v358_v63  ;;  %v312_v6 = vpack.c.bf16 %v294_v1, %v294_v1  ;;  %v283_v10 = vadd.f32 %v2354_v16, %v245_v3  ;;  %v512_v1 = vmul.f32 %v2365_v27, %v110_v59 }
  0xc3   :  { %547 = vadd.xlane.f32.xlu2 %v546_v55 }
  0xc4   :  { %v477_v11 = vunpack.c.l.b16 %v312_v6  ;;  %v301_v15 = vpack.c.bf16 %v283_v10, %v283_v10  ;;  %v555_v6 = vsel %vm515_vm2, %v512_v1, 0.0 }
  0xc5   :  { %1968 = vmatmul.msk.bf16.vlgmr.msrb.gmra.mxu2 %vm336_vm1, %v2370_v33 }
  0xc6   :  { %427 = vmatpush.bf16.msra.mxu2 %v418_v61  ;;  %v478_v12 = vpack.c.b16 %v477_v11, %v476_v5  ;;  %v376_v30 = vunpack.c.l.b16 %v301_v15  ;;  %v457_v61 = vunpack.c.l.b16 %v310_v51  ;;  %v552_v5 = vsel %vm515_vm2, %v511_v0, 0.0 }
  0xc7   :  { %v561_v11 = vsel %vm515_vm2, %v514_v9, 0.0 }
  0xc8   :  { %v458_v3 = vpack.c.b16 %v457_v61, %v456_v60 }
  0xc9   :  { %v247_v20 = vpop.f32.mrf.mxu0  ;;  %556 = vadd.xlane.f32.xlu1 %v555_v6 }
  0xca   :  { %487 = vmatpush.bf16.msrb.mxu2 %v478_v12  ;;  %v284_v23 = vadd.f32 %v2354_v16, %v247_v20  ;;  %v524_v12 = vpop.xlane.xlu2 %523 }
  0xcb   :  { %553 = vadd.xlane.f32.xlu2 %v552_v5  ;;  %v567_v20 = vadd.f32 %v2441_v14, %v524_v12 }
  0xcc   :  { %v302_v31 = vpack.c.bf16 %v284_v23, %v284_v23 }
  0xcd   :  { %v583_v23 = vmul.f32 0.17677669, %v567_v20 }
  0xce   :  { %v377_v32 = vunpack.c.l.b16 %v302_v31  ;;  %v533_v31 = vpop.xlane.xlu1 %532 }
  0xd0   :  { %v378_v35 = vpack.c.b16 %v377_v32, %v376_v30 }
  0xd1   :  { %v250_v38 = vpop.f32.mrf.mxu0  ;;  %562 = vadd.xlane.f32.xlu1 %v561_v11 }
  0xd2   :  { %387 = vmatpush.bf16.msrb.mxu3 %v378_v35  ;;  %v285_v45 = vadd.f32 %v2354_v16, %v250_v38  ;;  %v527_v15 = vpop.xlane.xlu2 %526 }
  0xd3   :  { %v568_v21 = vadd.f32 %v2441_v14, %v527_v15 }
  0xd4   :  { %v303_v52 = vpack.c.bf16 %v285_v45, %v285_v45 }
  0xd5   :  { %1969 = vmatmul.msk.bf16.vlgmr.msrb.gmra.mxu3 %vm336_vm1, %v2370_v33  ;;  %1971 = vmatmul.msk.bf16.vlgmr.msra.gmra.mxu2 %vm336_vm1, %v2370_v33 }
  0xd6   :  { %447 = vmatpush.bf16.msra.mxu3 %v438_v34  ;;  %v396_v62 = vunpack.c.l.b16 %v303_v52  ;;  %v2455_v34 = vpop.permute.xlu0 %322 }
  0xd9   :  { %v252_v54 = vpop.f32.mrf.mxu0 }
  0xda   :  { %v286_v57 = vadd.f32 %v2354_v16, %v252_v54  ;;  %v111_v16 = vld [vmem:[#allocation3 + $0x70] sm:$0xff] }
  0xdb   :  { %v513_v8 = vmul.f32 %v2365_v27, %v111_v16 }
  0xdc   :  { %v304_v63 = vpack.c.bf16 %v286_v57, %v286_v57 }
  0xdd   :  { %v558_v10 = vsel %vm515_vm2, %v513_v8, 0.0 }
  0xde   :  { %v397_v2 = vunpack.c.l.b16 %v304_v63  ;;  %559 = vadd.xlane.f32.xlu2 %v558_v10 }
  0xe0   :  { %v398_v4 = vpack.c.b16 %v397_v2, %v396_v62 }
  0xe2   :  { %407 = vmatpush.bf16.msra.mxu1 %v398_v4 }
  0xe5   :  { %1970 = vmatmul.msk.bf16.vlgmr.msra.gmra.mxu1 %vm336_vm1, %v2370_v33  ;;  %1972 = vmatmul.msk.bf16.vlgmr.msra.gmra.mxu3 %vm336_vm1, %v2370_v33 }
  0xe6   :  { %467 = vmatpush.bf16.msrb.mxu1 %v458_v3  ;;  %1974 = vmatmul.msk.bf16.vlgmr.msrb.gmra.mxu2 %vm336_vm1, %v2370_v33  ;;  %v570_v3 = vadd.f32 %v2441_v14, %v533_v31 }
  0xe8   :  { %v2488_v11 = vmul.f32 0.17677669, %v570_v3 }
  0xf5   :  { %1973 = vmatmul.msk.bf16.vlgmr.msrb.gmra.mxu1 %vm336_vm1, %v2370_v33  ;;  %v584_v33 = vmul.f32 0.17677669, %v568_v21 }
  0xf7   :  { %v700_v25 = vmax.f32 %v583_v23, %v584_v33 }
  0xf9   :  { %v701_v29 = vrot.slane %v700_v25, 4 }
  0xfb   :  { %v702_v32 = vmax.f32 %v700_v25, %v701_v29 }
  0xfd   :  { %v703_v36 = vrot.slane %v702_v32, 2 }
  0xff   :  { %v704_v38 = vmax.f32 %v702_v32, %v703_v36 }
 0x101   :  { %v705_v40 = vrot.slane %v704_v38, 1 }
 0x103   :  { %v706_v42 = vmax.f32 %v704_v38, %v705_v40 }
 0x105   :  { %v751_v45 = vsub.f32 %v583_v23, %v706_v42  ;;  %v752_v46 = vsub.f32 %v584_v33, %v706_v42 }
 0x107   :  { %v769_v26 = vmul.f32 1.442695, %v751_v45  ;;  %v771_v48 = vmul.f32 1.442695, %v752_v46 }
 0x109   :  { %2015 = vpow2.f32 %v769_v26 }
 0x10a   :  { %2017 = vpow2.f32 %v771_v48 }
 0x10f   :  { %v2474_v59 = vpop.eup %2015 }
 0x110   :  { %v2476_v60 = vpop.eup %2017 }
 0x111   :  { %v804_v63 = vadd.f32 %v2476_v60, %v2474_v59 }
 0x113   :  { %v805_v2 = vrot.slane %v804_v63, 4 }
 0x115   :  { %v806_v16 = vadd.f32 %v805_v2, %v804_v63 }
 0x117   :  { %v807_v10 = vrot.slane %v806_v16, 2 }
 0x119   :  { %v808_v23 = vadd.f32 %v807_v10, %v806_v16 }
 0x11b   :  { %v809_v32 = vrot.slane %v808_v23, 1 }
 0x11d   :  { %v810_v40 = vadd.f32 %v809_v32, %v808_v23 }
 0x11f   :  { %vm874_vm3 = vweird.f32 %v810_v40  ;;  %v880_v2 = vand.u32 2147483648, %v810_v40 }
 0x121   :  { %v881_v23 = vor.u32 1.1754944e-38, %v880_v2 }
 0x122   :  { %v539_v44 = vpop.xlane.xlu1 %538 }
 0x123   :  { %v572_v47 = vadd.f32 %v2441_v14, %v539_v44 }
 0x125   :  { %v588_v50 = vmul.f32 0.17677669, %v572_v47 }
 0x126   :  { %v536_v43 = vpop.xlane.xlu2 %535  ;;  %v530_v6 = vpop.xlane.xlu0 %529 }
 0x127   :  { %v571_v19 = vadd.f32 %v2441_v14, %v536_v43  ;;  %v569_v9 = vadd.f32 %v2441_v14, %v530_v6 }
 0x129   :  { %v587_v49 = vmul.f32 0.17677669, %v571_v19  ;;  %v2491_v33 = vmul.f32 0.17677669, %v569_v9  ;;  %v878_v9 = vand.u32 2147483647, %v810_v40 }
 0x12b   :  { %v714_v51 = vmax.f32 %v587_v49, %v588_v50  ;;  %vm879_vm6 = vcmp.eq.f32.partialorder %v878_v9, 8.507059e+37 }
 0x12c   :  { %v2472_v58 = vpop.xlane.xlu1 %544 }
 0x12d   :  { %v715_v54 = vrot.slane %v714_v51, 4 }
 0x12e   :  { %v2468_v55 = vpop.xlane.xlu2 %541 }
 0x12f   :  { %v716_v57 = vmax.f32 %v714_v51, %v715_v54 }
 0x131   :  { %v717_v62 = vrot.slane %v716_v57, 2 }
 0x132   :  { %v349_v22 = vpop.f32.mrf.mxu1 }
 0x133   :  { %v2450_v24 = vadd.f32 %v349_v22, %v2445_v18  ;;  %v718_v0 = vmax.f32 %v716_v57, %v717_v62 }
 0x134   :  { %v551_v22 = vpop.xlane.xlu1 %550 }
 0x135   :  { %v597_v28 = vmul.f32 %v2365_v27, %v2450_v24  ;;  %v719_v5 = vrot.slane %v718_v0, 1  ;;  %v576_v36 = vadd.f32 %v2441_v14, %v551_v22 }
 0x136   :  { %v548_v12 = vpop.xlane.xlu2 %547 }
 0x137   :  { %v613_v30 = vsel %vm515_vm2, %v597_v28, 0.0  ;;  %v720_v8 = vmax.f32 %v718_v0, %v719_v5  ;;  %v575_v29 = vadd.f32 %v2441_v14, %v548_v12  ;;  %v2509_v45 = vmul.f32 0.17677669, %v576_v36 }
 0x138   :  { %614 = vadd.xlane.f32.xlu2 %v613_v30 }
 0x139   :  { %v755_v20 = vsub.f32 %v587_v49, %v720_v8  ;;  %v756_v21 = vsub.f32 %v588_v50, %v720_v8  ;;  %v2507_v44 = vmul.f32 0.17677669, %v575_v29 }
 0x13a   :  { %v351_v35 = vpop.f32.mrf.mxu1 }
 0x13b   :  { %v2458_v37 = vadd.f32 %v351_v35, %v2455_v34  ;;  %v777_v25 = vmul.f32 1.442695, %v755_v20  ;;  %v779_v28 = vmul.f32 1.442695, %v756_v21  ;;  %v707_v35 = vmax.f32 %v2491_v33, %v2488_v11 }
 0x13c   :  { %v728_v48 = vmax.f32 %v2507_v44, %v2509_v45 }
 0x13d   :  { %v598_v39 = vmul.f32 %v2365_v27, %v2458_v37  ;;  %2019 = vpow2.f32 %v777_v25 }
 0x13e   :  { %2021 = vpow2.f32 %v779_v28  ;;  %v729_v0 = vrot.slane %v728_v48, 4 }
 0x13f   :  { %v616_v41 = vsel %vm515_vm2, %v598_v39, 0.0  ;;  %2023 = vrcp.f32 %v810_v40 }
 0x140   :  { %617 = vadd.xlane.f32.xlu0 %v616_v41  ;;  %v708_v41 = vrot.slane %v707_v35, 4  ;;  %v730_v21 = vmax.f32 %v728_v48, %v729_v0  ;;  %v566_v48 = vadd.f32 %v2441_v14, %v2443_v17 }
 0x142   :  { %v709_v47 = vmax.f32 %v707_v35, %v708_v41 }
 0x143   :  { %v2513_v26 = vpop.eup %2019 }
 0x144   :  { %v2517_v49 = vpop.eup %2021 }
 0x145   :  { %v818_v57 = vadd.f32 %v2517_v49, %v2513_v26 }
 0x147   :  { %v819_v16 = vrot.slane %v818_v57, 4 }
 0x148   :  { %v369_v52 = vpop.f32.mrf.mxu2 }
 0x149   :  { %v2466_v53 = vadd.f32 %v369_v52, %v2445_v18  ;;  %v710_v52 = vrot.slane %v709_v47, 2 }
 0x14b   :  { %v599_v56 = vmul.f32 %v2365_v27, %v2466_v53  ;;  %v711_v63 = vmax.f32 %v709_v47, %v710_v52  ;;  %v557_v52 = vpop.xlane.xlu1 %556 }
 0x14d   :  { %v619_v61 = vsel %vm515_vm2, %v599_v56, 0.0 }
 0x14e   :  { %620 = vadd.xlane.f32.xlu1 %v619_v61  ;;  %v2024_v61 = vpop.eup %2023 }
 0x14f   :  { %vm875_vm4 = vweird.f32 %v2024_v61 }
 0x150   :  { %v371_v1 = vpop.f32.mrf.mxu2  ;;  %vm2537_vm5 = vmor %vm874_vm3, %vm875_vm4 }
 0x151   :  { %v2483_v4 = vadd.f32 %v371_v1, %v2455_v34  ;;  %v870_v1 = vmul.f32 %v2024_v61, %v810_v40 }
 0x153   :  { %v600_v7 = vmul.f32 %v2365_v27, %v2483_v4  ;;  %v871_v8 = vsub.f32 1.0, %v870_v1 }
 0x155   :  { %v622_v15 = vsel %vm515_vm2, %v600_v7, 0.0  ;;  %v712_v7 = vrot.slane %v711_v63, 1  ;;  %v872_v22 = vmul.f32 %v2024_v61, %v871_v8 }
 0x156   :  { %623 = vadd.xlane.f32.xlu2 %v622_v15  ;;  %v820_v15 = vadd.f32 %v819_v16, %v818_v57 }
 0x157   :  { %v713_v20 = vmax.f32 %v711_v63, %v712_v7  ;;  %v873_v35 = vadd.f32 %v2024_v61, %v872_v22 }
 0x158   :  { %v389_v30 = vpop.f32.mrf.mxu3  ;;  %v429_v31 = vpop.f32.mrf.mxu2 }
 0x159   :  { %v2498_v38 = vadd.f32 %v389_v30, %v2445_v18  ;;  %v2501_v39 = vadd.f32 %v429_v31, %v2445_v18  ;;  %v821_v30 = vrot.slane %v820_v15, 2  ;;  %v753_v31 = vsub.f32 %v2491_v33, %v713_v20 }
 0x15a   :  { %v754_v32 = vsub.f32 %v2488_v11, %v713_v20  ;;  %v565_v11 = vadd.f32 %v2441_v14, %v2436_v13 }
 0x15b   :  { %v601_v42 = vmul.f32 %v2365_v27, %v2498_v38  ;;  %v605_v43 = vmul.f32 %v2365_v27, %v2501_v39  ;;  %v773_v1 = vmul.f32 1.442695, %v753_v31 }
 0x15d   :  { %v625_v46 = vsel %vm515_vm2, %v601_v42, 0.0  ;;  %v637_v19 = vsel %vm515_vm2, %v605_v43, 0.0  ;;  %v822_v43 = vadd.f32 %v821_v30, %v820_v15 }
 0x15e   :  { %626 = vadd.xlane.f32.xlu0 %v625_v46  ;;  %638 = vadd.xlane.f32.xlu1 %v637_v19  ;;  %v731_v46 = vrot.slane %v730_v21, 2  ;;  %v877_v19 = vsel %vm2537_vm5, %v2024_v61, %v873_v35 }
 0x15f   :  { %v882_v47 = vsel %vm879_vm6, %v881_v23, %v877_v19  ;;  %v823_v17 = vrot.slane %v822_v43, 1 }
 0x160   :  { %v391_v50 = vpop.f32.mrf.mxu3  ;;  %v431_v51 = vpop.f32.mrf.mxu2  ;;  %v2561_v57 = vmul.f32 %v2474_v59, %v882_v47  ;;  %v732_v0 = vmax.f32 %v730_v21, %v731_v46  ;;  %v578_v59 = vadd.f32 %v2441_v14, %v557_v52 }
 0x161   :  { %v2520_v54 = vadd.f32 %v391_v50, %v2455_v34  ;;  %v2523_v56 = vadd.f32 %v431_v51, %v2455_v34  ;;  %v554_v51 = vpop.xlane.xlu2 %553  ;;  %v824_v7 = vadd.f32 %v823_v17, %v822_v43 }
 0x162   :  { %v409_v62 = vpop.f32.mrf.mxu1  ;;  %v577_v2 = vadd.f32 %v2441_v14, %v554_v51  ;;  %v733_v21 = vrot.slane %v732_v0, 1  ;;  %v2589_v23 = vmul.f32 0.17677669, %v578_v59 }
 0x163   :  { %v606_v3 = vmul.f32 %v2365_v27, %v2523_v56  ;;  %v2530_v5 = vadd.f32 %v409_v62, %v2445_v18  ;;  %v602_v6 = vmul.f32 %v2365_v27, %v2520_v54  ;;  %v2564_v62 = vmul.f32 %v2476_v60, %v882_v47 }
 0x164   :  { %v2576_v60 = vmul.f32 0.17677669, %v566_v48  ;;  %2025 = vrcp.f32 %v824_v7  ;;  %v2587_v22 = vmul.f32 0.17677669, %v577_v2  ;;  %v912_v47 = vand.u32 2147483648, %v824_v7 }
 0x165   :  { %3547 = vst [vmem:[#allocation13_spill] sm:$0xff] %v2530_v5  ;;  %v640_v10 = vsel %vm515_vm2, %v606_v3, 0.0  ;;  %v628_v12 = vsel %vm515_vm2, %v602_v6, 0.0  ;;  %v603_v29 = vmul.f32 %v2365_v27, %v2530_v5  ;;  %v2574_v3 = vmul.f32 0.17677669, %v565_v11 }
 0x166   :  { %641 = vadd.xlane.f32.xlu2 %v640_v10  ;;  %629 = vadd.xlane.f32.xlu1 %v628_v12  ;;  %v775_v12 = vmul.f32 1.442695, %v754_v32  ;;  %2027 = vpow2.f32 %v773_v1  ;;  %vm906_vm7 = vweird.f32 %v824_v7  ;;  %v574_v1 = vadd.f32 %v2441_v14, %v2472_v58 }
 0x167   :  { %v631_v50 = vsel %vm515_vm2, %v603_v29, 0.0  ;;  %v693_v25 = vmax.f32 %v2574_v3, %v2576_v60 }
 0x168   :  { %v449_v28 = vpop.f32.mrf.mxu3  ;;  %2029 = vpow2.f32 %v775_v12 }
 0x169   :  { %v2546_v36 = vadd.f32 %v449_v28, %v2445_v18  ;;  %v489_v41 = vpop.f32.mrf.mxu2  ;;  %v694_v46 = vrot.slane %v693_v25, 4 }
 0x16a   :  { %v2549_v40 = vadd.f32 %v489_v41, %v2445_v18  ;;  %v411_v42 = vpop.f32.mrf.mxu1  ;;  %v734_v41 = vmax.f32 %v732_v0, %v733_v21  ;;  %v2026_v43 = vpop.eup %2025  ;;  %v573_v0 = vadd.f32 %v2441_v14, %v2468_v55 }
 0x16b   :  { %3550 = vst [vmem:[#allocation14_spill] sm:$0xff] %v2546_v36  ;;  %v607_v33 = vmul.f32 %v2365_v27, %v2546_v36  ;;  %v2567_v61 = vadd.f32 %v411_v42, %v2455_v34  ;;  %v735_v42 = vmax.f32 %v2587_v22, %v2589_v23  ;;  %v902_v11 = vmul.f32 %v2026_v43, %v824_v7 }
 0x16c   :  { %3551 = vst [vmem:[#allocation15_spill] sm:$0xff] %v2549_v40  ;;  %v611_v13 = vmul.f32 %v2365_v27, %v2549_v40  ;;  %v759_v19 = vsub.f32 %v2507_v44, %v734_v41  ;;  %vm907_vm8 = vweird.f32 %v2026_v43  ;;  %v695_v17 = vmax.f32 %v693_v25, %v694_v46 }
 0x16d   :  { %3552 = vst [vmem:[#allocation16_spill] sm:$0xff] %v2567_v61  ;;  %v643_v63 = vsel %vm515_vm2, %v607_v33, 0.0  ;;  %v604_v10 = vmul.f32 %v2365_v27, %v2567_v61  ;;  %v2607_v33 = vpop.eup %2027  ;;  %v736_v52 = vrot.slane %v735_v42, 4  ;;  %vm2626_vm9 = vmor %vm906_vm7, %vm907_vm8 }
 0x16e   :  { %644 = vadd.xlane.f32.xlu0 %v643_v63  ;;  %632 = vadd.xlane.f32.xlu2 %v631_v50  ;;  %v655_v6 = vsel %vm515_vm2, %v611_v13, 0.0  ;;  %v910_v50 = vand.u32 2147483647, %v824_v7  ;;  %v2611_v63 = vpop.eup %2029  ;;  %v903_v13 = vsub.f32 1.0, %v902_v11  ;;  %v2633_v7 = vmul.f32 0.17677669, %v573_v0 }
 0x16f   :  { %656 = vadd.xlane.f32.xlu1 %v655_v6  ;;  %v634_v31 = vsel %vm515_vm2, %v604_v10, 0.0  ;;  %v811_v2 = vadd.f32 %v2611_v63, %v2607_v33  ;;  %v913_v6 = vor.u32 1.1754944e-38, %v912_v47  ;;  %v737_v12 = vmax.f32 %v735_v42, %v736_v52 }
 0x170   :  { %v451_v16 = vpop.f32.mrf.mxu3  ;;  %v904_v59 = vmul.f32 %v2026_v43, %v903_v13  ;;  %vm911_vm10 = vcmp.eq.f32.partialorder %v910_v50, 8.507059e+37 }
 0x171   :  { %v2580_v8 = vadd.f32 %v451_v16, %v2455_v34  ;;  %v491_v9 = vpop.f32.mrf.mxu2  ;;  %v812_v10 = vrot.slane %v811_v2, 4  ;;  %v738_v25 = vrot.slane %v737_v12, 2 }
 0x172   :  { %v2585_v15 = vadd.f32 %v491_v9, %v2455_v34  ;;  %v469_v20 = vpop.f32.mrf.mxu1  ;;  %v905_v58 = vadd.f32 %v2026_v43, %v904_v59 }
 0x173   :  { %3553 = vst [vmem:[#allocation17_spill] sm:$0xff] %v2580_v8  ;;  %v608_v29 = vmul.f32 %v2365_v27, %v2580_v8  ;;  %v2598_v30 = vadd.f32 %v469_v20, %v2445_v18  ;;  %v760_v18 = vsub.f32 %v2509_v45, %v734_v41  ;;  %v785_v45 = vmul.f32 1.442695, %v759_v19 }
 0x174   :  { %3554 = vst [vmem:[#allocation18_spill] sm:$0xff] %v2585_v15  ;;  %v612_v28 = vmul.f32 %v2365_v27, %v2585_v15  ;;  %v813_v21 = vadd.f32 %v812_v10, %v811_v2 }
 0x175   :  { %3555 = vst [vmem:[#allocation19_spill] sm:$0xff] %v2598_v30  ;;  %v646_v35 = vsel %vm515_vm2, %v608_v29, 0.0  ;;  %v609_v48 = vmul.f32 %v2365_v27, %v2598_v30  ;;  %2031 = vpow2.f32 %v785_v45  ;;  %v787_v55 = vmul.f32 1.442695, %v760_v18 }
 0x176   :  { %635 = vadd.xlane.f32.xlu0 %v634_v31  ;;  %v658_v32 = vsel %vm515_vm2, %v612_v28, 0.0  ;;  %v2635_v28 = vmul.f32 0.17677669, %v574_v1  ;;  %v696_v29 = vrot.slane %v695_v17, 2 }
 0x177   :  { %659 = vadd.xlane.f32.xlu2 %v658_v32  ;;  %647 = vadd.xlane.f32.xlu1 %v646_v35  ;;  %v649_v16 = vsel %vm515_vm2, %v609_v48, 0.0  ;;  %2033 = vpow2.f32 %v787_v55  ;;  %v814_v32 = vrot.slane %v813_v21, 2  ;;  %v739_v35 = vmax.f32 %v737_v12, %v738_v25 }
 0x178   :  { %v697_v47 = vmax.f32 %v695_v17, %v696_v29 }
 0x179   :  { %v815_v19 = vadd.f32 %v814_v32, %v813_v21  ;;  %v740_v18 = vrot.slane %v739_v35, 1 }
 0x17a   :  { %v471_v51 = vpop.f32.mrf.mxu1  ;;  %v698_v0 = vrot.slane %v697_v47, 1 }
 0x17b   :  { %v2614_v44 = vadd.f32 %v471_v51, %v2455_v34  ;;  %v2643_v46 = vpop.eup %2031  ;;  %v816_v48 = vrot.slane %v815_v19, 1  ;;  %v741_v50 = vmax.f32 %v739_v35, %v740_v18 }
 0x17c   :  { %v699_v17 = vmax.f32 %v697_v47, %v698_v0 }
 0x17d   :  { %3556 = vst [vmem:[#allocation20_spill] sm:$0xff] %v2614_v44  ;;  %v610_v9 = vmul.f32 %v2365_v27, %v2614_v44  ;;  %v909_v27 = vsel %vm2626_vm9, %v2026_v43, %v905_v58  ;;  %v721_v43 = vmax.f32 %v2633_v7, %v2635_v28  ;;  %v2647_v11 = vpop.eup %2033  ;;  %v761_v52 = vsub.f32 %v2587_v22, %v741_v50  ;;  %v560_v22 = vpop.xlane.xlu2 %559 }
 0x17e   :  { %v914_v31 = vsel %vm911_vm10, %v913_v6, %v909_v27  ;;  %v832_v51 = vadd.f32 %v2647_v11, %v2643_v46  ;;  %v563_v58 = vpop.xlane.xlu1 %562  ;;  %v579_v32 = vadd.f32 %v2441_v14, %v560_v22 }
 0x17f   :  { %650 = vadd.xlane.f32.xlu2 %v649_v16  ;;  %v652_v20 = vsel %vm515_vm2, %v610_v9, 0.0  ;;  %v2638_v41 = vmul.f32 %v2513_v26, %v914_v31  ;;  %v2641_v42 = vmul.f32 %v2517_v49, %v914_v31  ;;  %v817_v26 = vadd.f32 %v816_v48, %v815_v19 }
 0x180   :  { %653 = vadd.xlane.f32.xlu0 %v652_v20  ;;  %v762_v49 = vsub.f32 %v2589_v23, %v741_v50  ;;  %v722_v13 = vrot.slane %v721_v43, 4  ;;  %v833_v45 = vrot.slane %v832_v51, 4  ;;  %v789_v2 = vmul.f32 1.442695, %v761_v52 }
 0x181   :  { %2035 = vrcp.f32 %v817_v26  ;;  %v749_v23 = vsub.f32 %v2574_v3, %v699_v17  ;;  %v750_v20 = vsub.f32 %v2576_v60, %v699_v17  ;;  %vm890_vm11 = vweird.f32 %v817_v26 }
 0x182   :  { %v834_v1 = vadd.f32 %v833_v45, %v832_v51  ;;  %v791_v59 = vmul.f32 1.442695, %v762_v49  ;;  %v723_v6 = vmax.f32 %v721_v43, %v722_v13  ;;  %2037 = vpow2.f32 %v789_v2 }
 0x183   :  { %v896_v21 = vand.u32 2147483648, %v817_v26  ;;  %v894_v27 = vand.u32 2147483647, %v817_v26  ;;  %v580_v35 = vadd.f32 %v2441_v14, %v563_v58  ;;  %v765_v3 = vmul.f32 1.442695, %v749_v23 }
 0x184   :  { %v835_v16 = vrot.slane %v834_v1, 2  ;;  %2039 = vpow2.f32 %v791_v59  ;;  %v724_v10 = vrot.slane %v723_v6, 2  ;;  %v767_v48 = vmul.f32 1.442695, %v750_v20 }
 0x185   :  { %v897_v60 = vor.u32 1.1754944e-38, %v896_v21  ;;  %vm895_vm14 = vcmp.eq.f32.partialorder %v894_v27, 8.507059e+37  ;;  %v2665_v52 = vmul.f32 0.17677669, %v580_v35 }
 0x186   :  { %v836_v9 = vadd.f32 %v835_v16, %v834_v1  ;;  %v725_v18 = vmax.f32 %v723_v6, %v724_v10 }
 0x187   :  { %v2036_v34 = vpop.eup %2035 }
 0x188   :  { %v886_v55 = vmul.f32 %v2036_v34, %v817_v26  ;;  %v837_v12 = vrot.slane %v836_v9, 1  ;;  %vm891_vm12 = vweird.f32 %v2036_v34  ;;  %v2655_v31 = vpop.eup %2037  ;;  %v2663_v26 = vmul.f32 0.17677669, %v579_v32 }
 0x189   :  { %vm892_vm13 = vmor %vm890_vm11, %vm891_vm12  ;;  %v726_v49 = vrot.slane %v725_v18, 1 }
 0x18a   :  { %v887_v25 = vsub.f32 1.0, %v886_v55  ;;  %v838_v29 = vadd.f32 %v837_v12, %v836_v9  ;;  %v2659_v19 = vpop.eup %2039  ;;  %v742_v17 = vmax.f32 %v2663_v26, %v2665_v52 }
 0x18b   :  { %v839_v47 = vadd.f32 %v2659_v19, %v2655_v31  ;;  %v727_v9 = vmax.f32 %v725_v18, %v726_v49 }
 0x18c   :  { %v888_v43 = vmul.f32 %v2036_v34, %v887_v25  ;;  %2041 = vrcp.f32 %v838_v29  ;;  %vm938_vm15 = vweird.f32 %v838_v29  ;;  %v944_v10 = vand.u32 2147483648, %v838_v29 }
 0x18d   :  { %v840_v51 = vrot.slane %v839_v47, 4  ;;  %2043 = vpow2.f32 %v765_v3  ;;  %v942_v55 = vand.u32 2147483647, %v838_v29  ;;  %v743_v23 = vrot.slane %v742_v17, 4 }
 0x18e   :  { %v889_v50 = vadd.f32 %v2036_v34, %v888_v43  ;;  %2045 = vpow2.f32 %v767_v48  ;;  %v757_v21 = vsub.f32 %v2633_v7, %v727_v9  ;;  %v758_v32 = vsub.f32 %v2635_v28, %v727_v9 }
 0x18f   :  { %v841_v0 = vadd.f32 %v840_v51, %v839_v47  ;;  %vm943_vm3 = vcmp.eq.f32.partialorder %v942_v55, 8.507059e+37  ;;  %v744_v18 = vmax.f32 %v742_v17, %v743_v23 }
 0x190   :  { %v893_v13 = vsel %vm892_vm13, %v2036_v34, %v889_v50  ;;  %v781_v3 = vmul.f32 1.442695, %v757_v21  ;;  %v783_v7 = vmul.f32 1.442695, %v758_v32 }
 0x191   :  { %v898_v45 = vsel %vm895_vm14, %v897_v60, %v893_v13  ;;  %v842_v16 = vrot.slane %v841_v0, 2  ;;  %v745_v50 = vrot.slane %v744_v18, 2 }
 0x192   :  { %v2042_v1 = vpop.eup %2041  ;;  %v2668_v2 = vmul.f32 %v2607_v33, %v898_v45  ;;  %v2671_v59 = vmul.f32 %v2611_v63, %v898_v45  ;;  %v945_v63 = vor.u32 1.1754944e-38, %v944_v10 }
 0x193   :  { %v934_v6 = vmul.f32 %v2042_v1, %v838_v29  ;;  %vm939_vm0 = vweird.f32 %v2042_v1  ;;  %v843_v12 = vadd.f32 %v842_v16, %v841_v0  ;;  %v2675_v22 = vpop.eup %2043  ;;  %v746_v45 = vmax.f32 %v744_v18, %v745_v50 }
 0x194   :  { %v2677_v20 = vpop.eup %2045  ;;  %vm940_vm1 = vmor %vm938_vm15, %vm939_vm0 }
 0x195   :  { %v935_v34 = vsub.f32 1.0, %v934_v6  ;;  %v844_v33 = vrot.slane %v843_v12, 1  ;;  %v797_v29 = vadd.f32 %v2677_v20, %v2675_v22 }
 0x197   :  { %v936_v58 = vmul.f32 %v2042_v1, %v935_v34  ;;  %v845_v27 = vadd.f32 %v844_v33, %v843_v12  ;;  %v798_v48 = vrot.slane %v797_v29, 4  ;;  %v747_v34 = vrot.slane %v746_v45, 1 }
 0x199   :  { %v937_v25 = vadd.f32 %v2042_v1, %v936_v58  ;;  %2047 = vrcp.f32 %v845_v27  ;;  %v799_v49 = vadd.f32 %v798_v48, %v797_v29  ;;  %v960_v13 = vand.u32 2147483648, %v845_v27 }
 0x19a   :  { %2049 = vpow2.f32 %v781_v3  ;;  %vm954_vm4 = vweird.f32 %v845_v27  ;;  %v748_v32 = vmax.f32 %v746_v45, %v747_v34 }
 0x19b   :  { %v941_v35 = vsel %vm940_vm1, %v2042_v1, %v937_v25  ;;  %2051 = vpow2.f32 %v783_v7  ;;  %v958_v1 = vand.u32 2147483647, %v845_v27  ;;  %v961_v17 = vor.u32 1.1754944e-38, %v960_v13 }
 0x19c   :  { %v946_v43 = vsel %vm943_vm3, %v945_v63, %v941_v35  ;;  %v763_v7 = vsub.f32 %v2663_v26, %v748_v32  ;;  %v764_v48 = vsub.f32 %v2665_v52, %v748_v32 }
 0x19d   :  { %v2684_v60 = vmul.f32 %v2643_v46, %v946_v43  ;;  %v2687_v47 = vmul.f32 %v2647_v11, %v946_v43  ;;  %v800_v11 = vrot.slane %v799_v49, 2  ;;  %vm959_vm7 = vcmp.eq.f32.partialorder %v958_v1, 8.507059e+37 }
 0x19e   :  { %v793_v13 = vmul.f32 1.442695, %v763_v7 }
 0x19f   :  { %v2048_v51 = vpop.eup %2047  ;;  %v801_v33 = vadd.f32 %v800_v11, %v799_v49 }
 0x1a0   :  { %v950_v28 = vmul.f32 %v2048_v51, %v845_v27  ;;  %vm955_vm5 = vweird.f32 %v2048_v51  ;;  %v2689_v16 = vpop.eup %2049 }
 0x1a1   :  { %vm956_vm6 = vmor %vm954_vm4, %vm955_vm5  ;;  %v2691_v9 = vpop.eup %2051  ;;  %v802_v18 = vrot.slane %v801_v33, 1 }
 0x1a2   :  { %v951_v0 = vsub.f32 1.0, %v950_v28  ;;  %v825_v23 = vadd.f32 %v2691_v9, %v2689_v16 }
 0x1a4   :  { %v952_v6 = vmul.f32 %v2048_v51, %v951_v0  ;;  %v826_v43 = vrot.slane %v825_v23, 4 }
 0x1a6   :  { %v953_v10 = vadd.f32 %v2048_v51, %v952_v6  ;;  %v827_v28 = vadd.f32 %v826_v43, %v825_v23 }
 0x1a8   :  { %v957_v12 = vsel %vm956_vm6, %v2048_v51, %v953_v10  ;;  %v803_v51 = vadd.f32 %v802_v18, %v801_v33 }
 0x1a9   :  { %v962_v63 = vsel %vm959_vm7, %v961_v17, %v957_v12 }
 0x1aa   :  { %v2698_v25 = vmul.f32 %v2655_v31, %v962_v63  ;;  %v2701_v27 = vmul.f32 %v2659_v19, %v962_v63  ;;  %v795_v31 = vmul.f32 1.442695, %v764_v48  ;;  %2053 = vrcp.f32 %v803_v51 }
 0x1ab   :  { %v615_v46 = vpop.xlane.xlu2 %614  ;;  %v828_v19 = vrot.slane %v827_v28, 2  ;;  %2055 = vpow2.f32 %v793_v13  ;;  %vm858_vm8 = vweird.f32 %v803_v51 }
 0x1ac   :  { %v661_v55 = vadd.f32 %v615_v46, %v2441_v14  ;;  %3559 = vst [vmem:[#allocation21_spill] sm:$0xff] %v2698_v25  ;;  %2057 = vpow2.f32 %v795_v31 }
 0x1ad   :  { %3560 = vst [vmem:[#allocation22_spill] sm:$0xff] %v2701_v27  ;;  %v829_v6 = vadd.f32 %v828_v19, %v827_v28 }
 0x1ae   :  { %v677_v35 = vmul.f32 0.17677669, %v661_v55 }
 0x1af   :  { %v830_v55 = vrot.slane %v829_v6, 1 }
 0x1b0   :  { %v2705_v17 = vpop.eup %2053 }
 0x1b1   :  { %v2707_v10 = vpop.eup %2055  ;;  %v854_v63 = vmul.f32 %v2705_v17, %v803_v51  ;;  %vm859_vm9 = vweird.f32 %v2705_v17 }
 0x1b2   :  { %v2709_v34 = vpop.eup %2057  ;;  %vm2730_vm10 = vmor %vm858_vm8, %vm859_vm9 }
 0x1b3   :  { %v618_v58 = vpop.xlane.xlu0 %617  ;;  %3561 = vst [vmem:[#allocation23_spill] sm:$0xff] %v2709_v34  ;;  %v846_v32 = vadd.f32 %v2709_v34, %v2707_v10  ;;  %v855_v43 = vsub.f32 1.0, %v854_v63 }
 0x1b4   :  { %v662_v21 = vadd.f32 %v618_v58, %v2441_v14 }
 0x1b5   :  { %v847_v7 = vrot.slane %v846_v32, 4  ;;  %v856_v13 = vmul.f32 %v2705_v17, %v855_v43 }
 0x1b6   :  { %v678_v29 = vmul.f32 0.17677669, %v662_v21 }
 0x1b7   :  { %v848_v19 = vadd.f32 %v847_v7, %v846_v32 }
 0x1b8   :  { %v981_v3 = vmax.f32 %v677_v35, %v678_v29 }
 0x1ba   :  { %v982_v50 = vrot.slane %v981_v3, 4 }
 0x1bc   :  { %v983_v49 = vmax.f32 %v981_v3, %v982_v50 }
 0x1be   :  { %v984_v0 = vrot.slane %v983_v49, 2 }
 0x1c0   :  { %v985_v1 = vmax.f32 %v983_v49, %v984_v0 }
 0x1c1   :  { %v621_v11 = vpop.xlane.xlu1 %620 }
 0x1c2   :  { %v986_v45 = vrot.slane %v985_v1, 1  ;;  %v663_v33 = vadd.f32 %v621_v11, %v2441_v14 }
 0x1c4   :  { %v987_v46 = vmax.f32 %v985_v1, %v986_v45 }
 0x1c6   :  { %v1037_v26 = vsub.f32 %v677_v35, %v987_v46  ;;  %v1038_v52 = vsub.f32 %v678_v29, %v987_v46  ;;  %v2716_v29 = vadd.f32 %v830_v55, %v829_v6  ;;  %v679_v35 = vmul.f32 0.17677669, %v663_v33 }
 0x1c7   :  { %v862_v6 = vand.u32 2147483647, %v803_v51  ;;  %v864_v46 = vand.u32 2147483648, %v803_v51  ;;  %v849_v33 = vrot.slane %v848_v19, 2 }
 0x1c8   :  { %v1053_v12 = vmul.f32 1.442695, %v1037_v26  ;;  %v1055_v58 = vmul.f32 1.442695, %v1038_v52  ;;  %v857_v26 = vadd.f32 %v2705_v17, %v856_v13  ;;  %vm922_vm12 = vweird.f32 %v2716_v29 }
 0x1c9   :  { %v624_v23 = vpop.xlane.xlu2 %623  ;;  %vm2735_vm11 = vcmp.eq.f32.partialorder %v862_v6, 8.507059e+37  ;;  %v865_v51 = vor.u32 1.1754944e-38, %v864_v46 }
 0x1ca   :  { %2059 = vpow2.f32 %v1053_v12  ;;  %v664_v21 = vadd.f32 %v624_v23, %v2441_v14 }
 0x1cb   :  { %2061 = vpow2.f32 %v1055_v58 }
 0x1cc   :  { %v680_v18 = vmul.f32 0.17677669, %v664_v21  ;;  %2063 = vrcp.f32 %v2716_v29 }
 0x1ce   :  { %v988_v3 = vmax.f32 %v679_v35, %v680_v18 }
 0x1d0   :  { %v2718_v48 = vpop.eup %2059  ;;  %v989_v50 = vrot.slane %v988_v3, 4 }
 0x1d1   :  { %v2721_v28 = vpop.eup %2061  ;;  %v639_v49 = vpop.xlane.xlu1 %638 }
 0x1d2   :  { %v1085_v31 = vadd.f32 %v2721_v28, %v2718_v48  ;;  %v990_v0 = vmax.f32 %v988_v3, %v989_v50  ;;  %v2727_v11 = vpop.eup %2063  ;;  %v627_v12 = vpop.xlane.xlu0 %626  ;;  %v669_v23 = vadd.f32 %v639_v49, %v2441_v14  ;;  %v861_v50 = vsel %vm2730_vm10, %v2705_v17, %v857_v26 }
 0x1d3   :  { %v918_v43 = vmul.f32 %v2727_v11, %v2716_v29  ;;  %v665_v3 = vadd.f32 %v627_v12, %v2441_v14  ;;  %v866_v12 = vsel %vm2735_vm11, %v865_v51, %v861_v50  ;;  %vm923_vm13 = vweird.f32 %v2727_v11 }
 0x1d4   :  { %v1086_v1 = vrot.slane %v1085_v31, 4  ;;  %v991_v45 = vrot.slane %v990_v0, 2  ;;  %vm2838_vm4 = vmor %vm922_vm12, %vm923_vm13 }
 0x1d5   :  { %v919_v58 = vsub.f32 1.0, %v918_v43  ;;  %v2753_v17 = vmul.f32 0.17677669, %v665_v3 }
 0x1d6   :  { %v1087_v52 = vadd.f32 %v1086_v1, %v1085_v31  ;;  %v992_v55 = vmax.f32 %v990_v0, %v991_v45  ;;  %v850_v1 = vadd.f32 %v849_v33, %v848_v19  ;;  %v2746_v45 = vmul.f32 0.17677669, %v669_v23 }
 0x1d8   :  { %v1088_v63 = vrot.slane %v1087_v52, 2  ;;  %v993_v21 = vrot.slane %v992_v55, 1  ;;  %v851_v23 = vrot.slane %v850_v1, 1 }
 0x1d9   :  { %v642_v7 = vpop.xlane.xlu2 %641  ;;  %v630_v0 = vpop.xlane.xlu1 %629 }
 0x1da   :  { %v1089_v13 = vadd.f32 %v1088_v63, %v1087_v52  ;;  %v994_v31 = vmax.f32 %v992_v55, %v993_v21  ;;  %v670_v49 = vadd.f32 %v642_v7, %v2441_v14  ;;  %v666_v6 = vadd.f32 %v630_v0, %v2441_v14  ;;  %v2144_v0 = vld [vmem:[#allocation3] sm:$0xff] }
 0x1db   :  { %v867_v63 = vmul.f32 %v2675_v22, %v866_v12  ;;  %v2768_v3 = vadd.f32 %v851_v23, %v850_v1  ;;  %v926_v22 = vand.u32 2147483647, %v2716_v29 }
 0x1dc   :  { %v1090_v46 = vrot.slane %v1089_v13, 1  ;;  %v1039_v44 = vsub.f32 %v679_v35, %v994_v31  ;;  %v1040_v30 = vsub.f32 %v680_v18, %v994_v31  ;;  %v2749_v27 = vmul.f32 0.17677669, %v670_v49 }
 0x1dd   :  { %v2755_v26 = vmul.f32 0.17677669, %v666_v6  ;;  %v928_v18 = vand.u32 2147483648, %v2716_v29  ;;  %v2775_v6 = vmul.f32 %v2144_v0, %v867_v63  ;;  %vm2817_vm1 = vcmp.eq.f32.partialorder %v926_v22, 8.507059e+37 }
 0x1de   :  { %v2757_v52 = vadd.f32 %v1090_v46, %v1089_v13  ;;  %v1057_v19 = vmul.f32 1.442695, %v1039_v44  ;;  %v1059_v55 = vmul.f32 1.442695, %v1040_v30  ;;  %v1009_v33 = vmax.f32 %v2746_v45, %v2749_v27  ;;  %v2143_v13 = vld [vmem:[#allocation3 + $0x10] sm:$0xff] }
 0x1df   :  { %v995_v35 = vmax.f32 %v2753_v17, %v2755_v26  ;;  %v868_v30 = vmul.f32 %v2677_v20, %v866_v12  ;;  %v920_v44 = vmul.f32 %v2727_v11, %v919_v58  ;;  %v2771_v31 = vmul.f32 %v2143_v13, %v2561_v57 }
 0x1e0   :  { %2065 = vrcp.f32 %v2757_v52  ;;  %v1010_v21 = vrot.slane %v1009_v33, 4  ;;  %v1150_v49 = vand.u32 2147483647, %v2757_v52  ;;  %v2777_v46 = vor.u32 1.1754944e-38, %v928_v18 }
 0x1e1   :  { %2067 = vpow2.f32 %v1057_v19  ;;  %v996_v32 = vrot.slane %v995_v35, 4  ;;  %v645_v51 = vpop.xlane.xlu0 %644  ;;  %v633_v43 = vpop.xlane.xlu2 %632  ;;  %v2145_v19 = vld [vmem:[#allocation3 + $0x8] sm:$0xff]  ;;  %v1152_v57 = vand.u32 2147483648, %v2757_v52  ;;  %vm1146_vm14 = vweird.f32 %v2757_v52 }
 0x1e2   :  { %2069 = vpow2.f32 %v1059_v55  ;;  %v1011_v7 = vmax.f32 %v1009_v33, %v1010_v21  ;;  %v657_v58 = vpop.xlane.xlu1 %656  ;;  %v2779_v55 = vmul.f32 %v2145_v19, %v868_v30  ;;  %v2782_v33 = vadd.f32 %v2727_v11, %v920_v44 }
 0x1e3   :  { %v997_v50 = vmax.f32 %v995_v35, %v996_v32  ;;  %v671_v23 = vadd.f32 %v645_v51, %v2441_v14  ;;  %2071 = vrcp.f32 %v2768_v3  ;;  %vm2795_vm15 = vcmp.eq.f32.partialorder %v1150_v49, 8.507059e+37 }
 0x1e4   :  { %v1012_v20 = vrot.slane %v1011_v7, 2  ;;  %v667_v51 = vadd.f32 %v633_v43, %v2441_v14  ;;  %v675_v44 = vadd.f32 %v657_v58, %v2441_v14  ;;  %vm970_vm9 = vweird.f32 %v2768_v3 }
 0x1e5   :  { %v998_v12 = vrot.slane %v997_v50, 2 }
 0x1e6   :  { %v2066_v1 = vpop.eup %2065  ;;  %v1013_v63 = vmax.f32 %v1011_v7, %v1012_v20  ;;  %v2803_v20 = vmul.f32 0.17677669, %v671_v23  ;;  %v2806_v40 = vmul.f32 0.17677669, %v667_v51  ;;  %v2808_v58 = vmul.f32 0.17677669, %v675_v44 }
 0x1e7   :  { %v2786_v35 = vpop.eup %2067  ;;  %v1142_v18 = vmul.f32 %v2066_v1, %v2757_v52  ;;  %v999_v21 = vmax.f32 %v997_v50, %v998_v12  ;;  %vm1147_vm0 = vweird.f32 %v2066_v1  ;;  %v1153_v50 = vor.u32 1.1754944e-38, %v1152_v57 }
 0x1e8   :  { %v2792_v32 = vpop.eup %2069  ;;  %v1014_v19 = vrot.slane %v1013_v63, 1  ;;  %vm1148_vm3 = vmor %vm1146_vm14, %vm1147_vm0 }
 0x1e9   :  { %v1143_v13 = vsub.f32 1.0, %v1142_v18  ;;  %v1092_v0 = vadd.f32 %v2792_v32, %v2786_v35  ;;  %v1000_v25 = vrot.slane %v999_v21, 1  ;;  %v636_v7 = vpop.xlane.xlu0 %635  ;;  %v2813_v61 = vpop.eup %2071 }
 0x1ea   :  { %v668_v49 = vadd.f32 %v636_v7, %v2441_v14  ;;  %v660_v12 = vpop.xlane.xlu2 %659  ;;  %v1015_v15 = vmax.f32 %v1013_v63, %v1014_v19  ;;  %v648_v22 = vpop.xlane.xlu1 %647  ;;  %vm971_vm10 = vweird.f32 %v2813_v61 }
 0x1eb   :  { %v1144_v8 = vmul.f32 %v2066_v1, %v1143_v13  ;;  %v1093_v36 = vrot.slane %v1092_v0, 4  ;;  %v1001_v43 = vmax.f32 %v999_v21, %v1000_v25  ;;  %v676_v34 = vadd.f32 %v660_v12, %v2441_v14 }
 0x1ec   :  { %v2810_v18 = vmul.f32 0.17677669, %v668_v49  ;;  %v1045_v5 = vsub.f32 %v2746_v45, %v1015_v15  ;;  %v1046_v7 = vsub.f32 %v2749_v27, %v1015_v15  ;;  %v672_v30 = vadd.f32 %v648_v22, %v2441_v14 }
 0x1ed   :  { %v1145_v57 = vadd.f32 %v2066_v1, %v1144_v8  ;;  %v1094_v23 = vadd.f32 %v1093_v36, %v1092_v0  ;;  %v1041_v25 = vsub.f32 %v2753_v17, %v1001_v43  ;;  %v1042_v63 = vsub.f32 %v2755_v26, %v1001_v43 }
 0x1ee   :  { %v1002_v8 = vmax.f32 %v2806_v40, %v2810_v18  ;;  %v2828_v36 = vmul.f32 0.17677669, %v676_v34  ;;  %v1069_v15 = vmul.f32 1.442695, %v1045_v5  ;;  %v1071_v27 = vmul.f32 1.442695, %v1046_v7 }
 0x1ef   :  { %v1149_v45 = vsel %vm1148_vm3, %v2066_v1, %v1145_v57  ;;  %v1095_v21 = vrot.slane %v1094_v23, 2  ;;  %v1061_v44 = vmul.f32 1.442695, %v1041_v25  ;;  %v1063_v52 = vmul.f32 1.442695, %v1042_v63 }
 0x1f0   :  { %v1154_v51 = vsel %vm2795_vm15, %v1153_v50, %v1149_v45  ;;  %v1003_v0 = vrot.slane %v1002_v8, 4  ;;  %2073 = vpow2.f32 %v1069_v15  ;;  %v1030_v1 = vmax.f32 %v2808_v58, %v2828_v36  ;;  %v2146_v15 = vld [vmem:[#allocation3 + $0x18] sm:$0xff]  ;;  %vm3010_vm15 = vmor %vm970_vm9, %vm971_vm10 }
 0x1f1   :  { %v1155_v17 = vmul.f32 %v2718_v48, %v1154_v51  ;;  %v1156_v26 = vmul.f32 %v2721_v28, %v1154_v51  ;;  %v1096_v19 = vadd.f32 %v1095_v21, %v1094_v23  ;;  %2075 = vpow2.f32 %v1071_v27 }
 0x1f2   :  { %v1004_v34 = vmax.f32 %v1002_v8, %v1003_v0  ;;  %2077 = vpow2.f32 %v1061_v44  ;;  %v1031_v29 = vrot.slane %v1030_v1, 4  ;;  %v2847_v12 = vmul.f32 0.17677669, %v672_v30  ;;  %v651_v43 = vpop.xlane.xlu2 %650 }
 0x1f3   :  { %v1285_v48 = vmul.f32 %v1155_v17, %v2450_v24  ;;  %v1286_v28 = vmul.f32 %v1156_v26, %v2458_v37  ;;  %v1097_v50 = vrot.slane %v1096_v19, 1  ;;  %2079 = vpow2.f32 %v1063_v52  ;;  %v654_v57 = vpop.xlane.xlu0 %653 }
 0x1f4   :  { %v1005_v49 = vrot.slane %v1004_v34, 2  ;;  %v925_v23 = vsel %vm2838_vm4, %v2727_v11, %v2782_v33  ;;  %v2855_v7 = vmul.f32 %v2813_v61, %v2768_v3  ;;  %v1032_v8 = vmax.f32 %v1030_v1, %v1031_v29  ;;  %v2147_v33 = vld [vmem:[#allocation3 + $0x30] sm:$0xff] }
 0x1f5   :  { %v1302_v24 = vadd.f32 %v1286_v28, %v2779_v55  ;;  %v2858_v37 = vadd.f32 %v1097_v50, %v1096_v19  ;;  %v1301_v25 = vadd.f32 %v1285_v48, %v2775_v6  ;;  %v1016_v45 = vmax.f32 %v2803_v20, %v2847_v12 }
 0x1f6   :  { %v1006_v63 = vmax.f32 %v1004_v34, %v1005_v49  ;;  %v2863_v21 = vpop.eup %2073  ;;  %v2866_v11 = vmul.f32 %v2146_v15, %v2564_v62  ;;  %v2869_v27 = vmul.f32 %v2147_v33, %v2638_v41  ;;  %v673_v55 = vadd.f32 %v651_v43, %v2441_v14  ;;  %v2896_v49 = vld [vmem:[#allocation8 + $0x18] sm:$0xff] }
 0x1f7   :  { %v674_v22 = vadd.f32 %v654_v57, %v2441_v14  ;;  %v2873_v6 = vpop.eup %2075  ;;  %2081 = vtanh.f32 %v1302_v24  ;;  %v1033_v44 = vrot.slane %v1032_v8, 2  ;;  %v1017_v52 = vrot.slane %v1016_v45, 4 }
 0x1f8   :  { %v1007_v51 = vrot.slane %v1006_v63, 1  ;;  %v2875_v0 = vpop.eup %2077  ;;  %v2880_v62 = vsel %vm2817_vm1, %v2777_v46, %v925_v23  ;;  %2083 = vrcp.f32 %v2858_v37  ;;  %v1113_v14 = vadd.f32 %v2873_v6, %v2863_v21 }
 0x1f9   :  { %v2886_v17 = vpop.eup %2079  ;;  %2085 = vtanh.f32 %v1301_v25  ;;  %v1034_v19 = vmax.f32 %v1032_v8, %v1033_v44  ;;  %v1018_v5 = vmax.f32 %v1016_v45, %v1017_v52  ;;  %v2890_v13 = vmul.f32 0.17677669, %v673_v55 }
 0x1fa   :  { %v1008_v26 = vmax.f32 %v1006_v63, %v1007_v51  ;;  %v1114_v34 = vrot.slane %v1113_v14, 4  ;;  %v1099_v1 = vadd.f32 %v2886_v17, %v2875_v0  ;;  %v2892_v46 = vmul.f32 0.17677669, %v674_v22 }
 0x1fb   :  { %v1035_v28 = vrot.slane %v1034_v19, 1  ;;  %v1019_v50 = vrot.slane %v1018_v5, 2  ;;  %v1166_v29 = vand.u32 2147483647, %v2858_v37  ;;  %v1168_v44 = vand.u32 2147483648, %v2858_v37 }
 0x1fc   :  { %v1043_v30 = vsub.f32 %v2806_v40, %v1008_v26  ;;  %v1044_v48 = vsub.f32 %v2810_v18, %v1008_v26  ;;  %v1115_v43 = vadd.f32 %v1114_v34, %v1113_v14  ;;  %v1100_v57 = vrot.slane %v1099_v1, 4 }
 0x1fd   :  { %v1023_v23 = vmax.f32 %v2890_v13, %v2892_v46  ;;  %v2901_v24 = vpop.eup %2081  ;;  %v1036_v8 = vmax.f32 %v1034_v19, %v1035_v28  ;;  %v1020_v45 = vmax.f32 %v1018_v5, %v1019_v50  ;;  %vm1162_vm6 = vweird.f32 %v2858_v37 }
 0x1fe   :  { %v1065_v25 = vmul.f32 1.442695, %v1043_v30  ;;  %v1067_v63 = vmul.f32 1.442695, %v1044_v48  ;;  %v2084_v40 = vpop.eup %2083  ;;  %v1116_v15 = vrot.slane %v1115_v43, 2  ;;  %v1101_v18 = vadd.f32 %v1100_v57, %v1099_v1 }
 0x1ff   :  { %v1024_v33 = vrot.slane %v1023_v23, 4  ;;  %v1469_v55 = vmul.f32 %v2901_v24, %v2896_v49  ;;  %v2905_v22 = vpop.eup %2085  ;;  %v1158_v51 = vmul.f32 %v2084_v40, %v2858_v37  ;;  %v1051_v52 = vsub.f32 %v2808_v58, %v1036_v8 }
 0x200   :  { %2087 = vpow2.f32 %v1065_v25  ;;  %v1117_v14 = vadd.f32 %v1116_v15, %v1115_v43  ;;  %v1102_v26 = vrot.slane %v1101_v18, 2  ;;  %v1052_v19 = vsub.f32 %v2828_v36, %v1036_v8 }
 0x201   :  { %2089 = vpow2.f32 %v1067_v63  ;;  %v1159_v5 = vsub.f32 1.0, %v1158_v51  ;;  %v1081_v34 = vmul.f32 1.442695, %v1051_v52  ;;  %v1021_v1 = vrot.slane %v1020_v45, 1 }
 0x202   :  { %v1025_v30 = vmax.f32 %v1023_v23, %v1024_v33  ;;  %v1118_v48 = vrot.slane %v1117_v14, 1  ;;  %v1103_v28 = vadd.f32 %v1102_v26, %v1101_v18  ;;  %v1083_v50 = vmul.f32 1.442695, %v1052_v19 }
 0x203   :  { %v1487_v57 = vsel %vm515_vm2, %v1469_v55, 0.0  ;;  %v1160_v41 = vmul.f32 %v2084_v40, %v1159_v5  ;;  %vm1163_vm5 = vweird.f32 %v2084_v40  ;;  %2091 = vpow2.f32 %v1081_v34 }
 0x204   :  { %v1022_v25 = vmax.f32 %v1020_v45, %v1021_v1  ;;  %1488 = vadd.xlane.f32.xlu2 %v1487_v57  ;;  %v2912_v58 = vadd.f32 %v1118_v48, %v1117_v14  ;;  %v1104_v43 = vrot.slane %v1103_v28, 1  ;;  %2093 = vpow2.f32 %v1083_v50  ;;  %vm1164_vm7 = vmor %vm1162_vm6, %vm1163_vm5 }
 0x205   :  { %v1026_v63 = vrot.slane %v1025_v30, 2  ;;  %v1161_v8 = vadd.f32 %v2084_v40, %v1160_v41  ;;  %v931_v45 = vmul.f32 %v2689_v16, %v2880_v62  ;;  %vm1167_vm8 = vcmp.eq.f32.partialorder %v1166_v29, 8.507059e+37  ;;  %v2929_v41 = vld [vmem:[#allocation8 + $0x8] sm:$0xff] }
 0x206   :  { %v2914_v36 = vpop.eup %2087  ;;  %v1047_v23 = vsub.f32 %v2803_v20, %v1022_v25  ;;  %v1048_v15 = vsub.f32 %v2847_v12, %v1022_v25  ;;  %v1169_v33 = vor.u32 1.1754944e-38, %v1168_v44  ;;  %2095 = vrcp.f32 %v2912_v58  ;;  %v2148_v12 = vld [vmem:[#allocation3 + $0x38] sm:$0xff]  ;;  %v2960_v25 = vld [vmem:[#allocation8] sm:$0xff] }
 0x207   :  { %v2919_v18 = vpop.eup %2089  ;;  %v1165_v55 = vsel %vm1164_vm7, %v2084_v40, %v1161_v8  ;;  %v2925_v51 = vadd.f32 %v1104_v43, %v1103_v28  ;;  %v2932_v52 = vmul.f32 %v2148_v12, %v2641_v42  ;;  %v1027_v26 = vmax.f32 %v1025_v30, %v1026_v63  ;;  %v2149_v42 = vld [vmem:[#allocation3 + $0x40] sm:$0xff] }
 0x208   :  { %v1106_v37 = vadd.f32 %v2919_v18, %v2914_v36  ;;  %v1073_v20 = vmul.f32 1.442695, %v1047_v23  ;;  %v1170_v16 = vsel %vm1167_vm8, %v1169_v33, %v1165_v55  ;;  %v1075_v14 = vmul.f32 1.442695, %v1048_v15  ;;  %v2969_v15 = vld [vmem:[#allocation8 + $0x20] sm:$0xff] }
 0x209   :  { %v2934_v29 = vpop.eup %2091  ;;  %v2938_v40 = vmul.f32 %v2691_v9, %v2880_v62  ;;  %v3572_v44 = vsub.f32 1.0, %v2855_v7  ;;  %v1171_v5 = vmul.f32 %v2786_v35, %v1170_v16  ;;  %2097 = vrcp.f32 %v2925_v51 }
 0x20a   :  { %v2945_v34 = vpop.eup %2093  ;;  %v2947_v1 = vmul.f32 %v2149_v42, %v931_v45  ;;  %v1107_v30 = vrot.slane %v1106_v37, 4  ;;  %2099 = vpow2.f32 %v1073_v20  ;;  %v1336_v48 = vmul.f32 %v2901_v24, %v2929_v41 }
 0x20b   :  { %v968_v19 = vmul.f32 %v2813_v61, %v3572_v44  ;;  %v974_v9 = vand.u32 2147483647, %v2768_v3  ;;  %v976_v7 = vand.u32 2147483648, %v2768_v3  ;;  %v1134_v35 = vadd.f32 %v2945_v34, %v2934_v29 }
 0x20c   :  { %2101 = vpow2.f32 %v1075_v14  ;;  %v2956_v62 = vpop.eup %2095  ;;  %v1287_v28 = vmul.f32 %v1171_v5, %v2466_v53  ;;  %v1108_v50 = vadd.f32 %v1107_v30, %v1106_v37  ;;  %v1028_v57 = vrot.slane %v1027_v26, 1 }
 0x20d   :  { %v2963_v43 = vadd.f32 %v2813_v61, %v968_v19  ;;  %v1172_v63 = vmul.f32 %v2792_v32, %v1170_v16  ;;  %v1206_v8 = vmul.f32 %v2956_v62, %v2912_v58  ;;  %v1216_v23 = vand.u32 2147483648, %v2912_v58 }
 0x20e   :  { %v1109_v45 = vrot.slane %v1108_v50, 2  ;;  %v1135_v33 = vrot.slane %v1134_v35, 4  ;;  %v1029_v55 = vmax.f32 %v1027_v26, %v1028_v57  ;;  %v1354_v53 = vsel %vm515_vm2, %v1336_v48, 0.0 }
 0x20f   :  { %v2972_v37 = vpop.eup %2097  ;;  %v1207_v20 = vsub.f32 1.0, %v1206_v8  ;;  %vm1178_vm11 = vweird.f32 %v2925_v51  ;;  %v1184_v12 = vand.u32 2147483648, %v2925_v51  ;;  %1355 = vadd.xlane.f32.xlu1 %v1354_v53  ;;  %v1335_v32 = vmul.f32 %v2905_v22, %v2960_v25 }
 0x210   :  { %v2978_v16 = vpop.eup %2099  ;;  %v1303_v14 = vadd.f32 %v1287_v28, %v2771_v31  ;;  %v1174_v26 = vmul.f32 %v2972_v37, %v2925_v51  ;;  %v1110_v44 = vadd.f32 %v1109_v45, %v1108_v50  ;;  %v1601_v19 = vmul.f32 %v2905_v22, %v2969_v15 }
 0x211   :  { %v1208_v42 = vmul.f32 %v2956_v62, %v1207_v20  ;;  %v1136_v30 = vadd.f32 %v1135_v33, %v1134_v35  ;;  %v1049_v48 = vsub.f32 %v2890_v13, %v1029_v55  ;;  %v1050_v57 = vsub.f32 %v2892_v46, %v1029_v55 }
 0x212   :  { %v2985_v5 = vpop.eup %2101  ;;  %v1175_v8 = vsub.f32 1.0, %v1174_v26  ;;  %v1111_v53 = vrot.slane %v1110_v44, 1  ;;  %v1351_v28 = vsel %vm515_vm2, %v1335_v32, 0.0  ;;  %vm2993_vm12 = vcmp.eq.f32.partialorder %v974_v9, 8.507059e+37  ;;  %v3002_v26 = vld [vmem:[#allocation8 + $0x10] sm:$0xff] }
 0x213   :  { %v1120_v31 = vadd.f32 %v2985_v5, %v2978_v16  ;;  %vm1179_vm13 = vweird.f32 %v2972_v37  ;;  %v1137_v45 = vrot.slane %v1136_v30, 2  ;;  %v1077_v20 = vmul.f32 1.442695, %v1049_v48  ;;  %1352 = vadd.xlane.f32.xlu0 %v1351_v28  ;;  %v2154_v48 = vld [vmem:[#allocation3 + $0x58] sm:$0xff] }
 0x214   :  { %v1079_v35 = vmul.f32 1.442695, %v1050_v57  ;;  %v1176_v13 = vmul.f32 %v2972_v37, %v1175_v8  ;;  %v2999_v46 = vadd.f32 %v1111_v53, %v1110_v44  ;;  %v1617_v55 = vsel %vm515_vm2, %v1601_v19, 0.0  ;;  %vm3024_vm1 = vmor %vm1178_vm11, %vm1179_vm13 }
 0x215   :  { %v1121_v33 = vrot.slane %v1120_v31, 4  ;;  %v1209_v9 = vadd.f32 %v2956_v62, %v1208_v42  ;;  %vm1211_vm14 = vweird.f32 %v2956_v62  ;;  %v1138_v32 = vadd.f32 %v1137_v45, %v1136_v30  ;;  %1618 = vadd.xlane.f32.xlu2 %v1617_v55 }
 0x216   :  { %2103 = vpow2.f32 %v1077_v20  ;;  %v1288_v44 = vmul.f32 %v1172_v63, %v2483_v4  ;;  %v1177_v19 = vadd.f32 %v2972_v37, %v1176_v13  ;;  %v1182_v57 = vand.u32 2147483647, %v2925_v51 }
 0x217   :  { %2105 = vrcp.f32 %v2999_v46  ;;  %v977_v42 = vor.u32 1.1754944e-38, %v976_v7  ;;  %vm1210_vm0 = vweird.f32 %v2912_v58  ;;  %v1214_v30 = vand.u32 2147483647, %v2912_v58 }
 0x218   :  { %v1468_v4 = vmul.f32 %v2905_v22, %v3002_v26  ;;  %vm3030_vm3 = vmor %vm1210_vm0, %vm1211_vm14  ;;  %v1181_v7 = vsel %vm3024_vm1, %v2972_v37, %v1177_v19  ;;  %v1139_v58 = vrot.slane %v1138_v32, 1  ;;  %v1122_v8 = vadd.f32 %v1121_v33, %v1120_v31  ;;  %v3066_v19 = vld [vmem:[#allocation8 + $0x28] sm:$0xff] }
 0x219   :  { %2107 = vpow2.f32 %v1079_v35  ;;  %v973_v51 = vsel %vm3010_vm15, %v2813_v61, %v2963_v43  ;;  %v1213_v53 = vsel %vm3030_vm3, %v2956_v62, %v1209_v9  ;;  %v1185_v28 = vor.u32 1.1754944e-38, %v1184_v12  ;;  %v2150_v43 = vld [vmem:[#allocation3 + $0x48] sm:$0xff]  ;;  %v2151_v62 = vld [vmem:[#allocation3 + $0x20] sm:$0xff]  ;;  %v2153_v9 = vld [vmem:[#allocation3 + $0x50] sm:$0xff] }
 0x21a   :  { %2109 = vtanh.f32 %v1303_v14  ;;  %v1304_v45 = vadd.f32 %v1288_v44, %v2866_v11  ;;  %v1217_v20 = vor.u32 1.1754944e-38, %v1216_v23  ;;  %vm1183_vm4 = vcmp.eq.f32.partialorder %v1182_v57, 8.507059e+37  ;;  %v2152_v12 = vld [vmem:[#allocation3 + $0x28] sm:$0xff] }
 0x21b   :  { %v3045_v13 = vadd.f32 %v1139_v58, %v1138_v32  ;;  %vm1215_vm5 = vcmp.eq.f32.partialorder %v1214_v30, 8.507059e+37  ;;  %v1186_v31 = vsel %vm1183_vm4, %v1185_v28, %v1181_v7  ;;  %v1123_v35 = vrot.slane %v1122_v8, 2 }
 0x21c   :  { %v3047_v37 = vpop.eup %2103  ;;  %v1484_v33 = vsel %vm515_vm2, %v1468_v4, 0.0  ;;  %v3053_v14 = vmul.f32 %v2150_v43, %v2938_v40  ;;  %v1273_v11 = vmul.f32 %v2151_v62, %v2668_v2  ;;  %v1218_v23 = vsel %vm1215_vm5, %v1217_v20, %v1213_v53  ;;  %v3068_v2 = vld [vmem:[#allocation8 + $0x38] sm:$0xff] }
 0x21d   :  { %v3050_v61 = vpop.eup %2105  ;;  %2111 = vrcp.f32 %v3045_v13  ;;  %1485 = vadd.xlane.f32.xlu1 %v1484_v33  ;;  %v1274_v55 = vmul.f32 %v2152_v12, %v2671_v59  ;;  %v3059_v32 = vmul.f32 %v2153_v9, %v2684_v60  ;;  %v3062_v44 = vmul.f32 %v2154_v48, %v2687_v47  ;;  %v3106_v33 = vld [vmem:[#allocation8 + $0x30] sm:$0xff] }
 0x21e   :  { %v1190_v40 = vmul.f32 %v3050_v61, %v2999_v46  ;;  %v3074_v59 = vsel %vm2993_vm12, %v977_v42, %v973_v51  ;;  %2113 = vtanh.f32 %v1304_v45  ;;  %v1187_v60 = vmul.f32 %v2875_v0, %v1186_v31 }
 0x21f   :  { %v3070_v57 = vpop.eup %2107  ;;  %vm1194_vm6 = vweird.f32 %v2999_v46  ;;  %v3081_v30 = vmul.f32 %v2863_v21, %v1218_v23  ;;  %v1124_v4 = vadd.f32 %v1123_v35, %v1122_v8  ;;  %v1188_v7 = vmul.f32 %v2886_v17, %v1186_v31 }
 0x220   :  { %v3078_v47 = vpop.eup %2109  ;;  %v1191_v3 = vsub.f32 1.0, %v1190_v40  ;;  %v1127_v63 = vadd.f32 %v3070_v57, %v3047_v37  ;;  %v1200_v50 = vand.u32 2147483648, %v2999_v46  ;;  %v1602_v42 = vmul.f32 %v2901_v24, %v3066_v19 }
 0x221   :  { %v1735_v0 = vmul.f32 %v2901_v24, %v3068_v2  ;;  %vm1195_vm7 = vweird.f32 %v3050_v61  ;;  %v1125_v21 = vrot.slane %v1124_v4, 1  ;;  %v1289_v53 = vmul.f32 %v1187_v60, %v2498_v38 }
 0x222   :  { %v1192_v58 = vmul.f32 %v3050_v61, %v1191_v3  ;;  %v1128_v51 = vrot.slane %v1127_v63, 4  ;;  %v1198_v17 = vand.u32 2147483647, %v2999_v46  ;;  %v1620_v28 = vsel %vm515_vm2, %v1602_v42, 0.0  ;;  %vm1196_vm8 = vmor %vm1194_vm6, %vm1195_vm7 }
 0x223   :  { %v3093_v8 = vpop.eup %2111  ;;  %v1337_v45 = vmul.f32 %v3078_v47, %v2960_v25  ;;  %v3103_v31 = vadd.f32 %v1125_v21, %v1124_v4  ;;  %1621 = vadd.xlane.f32.xlu0 %v1620_v28  ;;  %v1753_v35 = vsel %vm515_vm2, %v1735_v0, 0.0  ;;  %v1220_v43 = vmul.f32 %v2873_v6, %v1218_v23 }
 0x224   :  { %v1193_v20 = vadd.f32 %v3050_v61, %v1192_v58  ;;  %v1254_v24 = vmul.f32 %v3093_v8, %v3045_v13  ;;  %v3108_v38 = vpop.eup %2113  ;;  %v1201_v62 = vor.u32 1.1754944e-38, %v1200_v50  ;;  %v1129_v12 = vadd.f32 %v1128_v51, %v1127_v63 }
 0x225   :  { %1754 = vadd.xlane.f32.xlu1 %v1753_v35  ;;  %v1357_v9 = vsel %vm515_vm2, %v1337_v45, 0.0  ;;  %v1290_v48 = vmul.f32 %v1188_v7, %v2520_v54  ;;  %2115 = vrcp.f32 %v3103_v31  ;;  %v1305_v3 = vadd.f32 %v1289_v53, %v1273_v11 }
 0x226   :  { %v1197_v40 = vsel %vm1196_vm8, %v3050_v61, %v1193_v20  ;;  %v1255_v60 = vsub.f32 1.0, %v1254_v24  ;;  %1358 = vadd.xlane.f32.xlu2 %v1357_v9  ;;  %vm1199_vm9 = vcmp.eq.f32.partialorder %v1198_v17, 8.507059e+37  ;;  %v1130_v6 = vrot.slane %v1129_v12, 2 }
 0x227   :  { %v1734_v46 = vmul.f32 %v2905_v22, %v3106_v33  ;;  %v1202_v23 = vsel %vm1199_vm9, %v1201_v62, %v1197_v40  ;;  %vm1259_vm10 = vweird.f32 %v3093_v8  ;;  %v1471_v54 = vmul.f32 %v3108_v38, %v2896_v49 }
 0x228   :  { %v1256_v4 = vmul.f32 %v3093_v8, %v1255_v60  ;;  %v1294_v61 = vmul.f32 %v1220_v43, %v2523_v56  ;;  %vm1258_vm11 = vweird.f32 %v3045_v13  ;;  %v1264_v63 = vand.u32 2147483648, %v3045_v13 }
 0x229   :  { %v1131_v11 = vadd.f32 %v1130_v6, %v1129_v12  ;;  %v1306_v7 = vadd.f32 %v1290_v48, %v1274_v55  ;;  %v1262_v22 = vand.u32 2147483647, %v3045_v13  ;;  %v1604_v42 = vmul.f32 %v3108_v38, %v3066_v19  ;;  %vm3135_vm12 = vmor %vm1258_vm11, %vm1259_vm10  ;;  %v3584_v12 = vld [vmem:[#allocation16_spill] sm:$0xff] }
 0x22a   :  { %v1257_v50 = vadd.f32 %v3093_v8, %v1256_v4  ;;  %v979_v0 = vmul.f32 %v2707_v10, %v3074_v59  ;;  %v1203_v58 = vmul.f32 %v2914_v36, %v1202_v23  ;;  %v1750_v51 = vsel %vm515_vm2, %v1734_v46, 0.0 }
 0x22b   :  { %v1132_v21 = vrot.slane %v1131_v11, 1  ;;  %v2116_v55 = vpop.eup %2115  ;;  %2117 = vtanh.f32 %v1305_v3  ;;  %v1204_v53 = vmul.f32 %v2919_v18, %v1202_v23  ;;  %1751 = vadd.xlane.f32.xlu0 %v1750_v51  ;;  %v1493_v10 = vsel %vm515_vm2, %v1471_v54, 0.0  ;;  %v3585_v3 = vld [vmem:[#allocation23_spill] sm:$0xff] }
 0x22c   :  { %v1261_v13 = vsel %vm3135_vm12, %v3093_v8, %v1257_v50  ;;  %v1265_v17 = vor.u32 1.1754944e-38, %v1264_v63  ;;  %v1222_v36 = vmul.f32 %v2116_v55, %v3103_v31  ;;  %v1626_v45 = vsel %vm515_vm2, %v1604_v42, 0.0  ;;  %v3583_v8 = vld [vmem:[#allocation13_spill] sm:$0xff]  ;;  %v3586_v42 = vld [vmem:[#allocation15_spill] sm:$0xff] }
 0x22d   :  { %v3146_v28 = vadd.f32 %v1132_v21, %v1131_v11  ;;  %1494 = vadd.xlane.f32.xlu1 %v1493_v10  ;;  %v1293_v20 = vmul.f32 %v3081_v30, %v2501_v39  ;;  %v1310_v18 = vadd.f32 %v1294_v61, %v3053_v14  ;;  %2119 = vtanh.f32 %v1306_v7 }
 0x22e   :  { %vm1263_vm13 = vcmp.eq.f32.partialorder %v1262_v22, 8.507059e+37  ;;  %1627 = vadd.xlane.f32.xlu2 %v1626_v45  ;;  %v1291_v24 = vmul.f32 %v1203_v58, %v3583_v8  ;;  %v1223_v43 = vsub.f32 1.0, %v1222_v36  ;;  %v1338_v62 = vmul.f32 %v3108_v38, %v2929_v41  ;;  %v3588_v36 = vld [vmem:[#allocation14_spill] sm:$0xff]  ;;  %v3589_v45 = vld [vmem:[#allocation17_spill] sm:$0xff] }
 0x22f   :  { %v1266_v35 = vsel %vm1263_vm13, %v1265_v17, %v1261_v13  ;;  %v1292_v9 = vmul.f32 %v1204_v53, %v3584_v12  ;;  %v1232_v48 = vand.u32 2147483648, %v3103_v31  ;;  %2121 = vrcp.f32 %v3146_v28  ;;  %v3587_v13 = vld [vmem:[#allocation18_spill] sm:$0xff] }
 0x230   :  { %v1603_v39 = vmul.f32 %v3078_v47, %v2969_v15  ;;  %v1224_v14 = vmul.f32 %v2116_v55, %v1223_v43  ;;  %vm1227_vm14 = vweird.f32 %v2116_v55  ;;  %v1230_v30 = vand.u32 2147483647, %v3103_v31 }
 0x231   :  { %v1736_v40 = vmul.f32 %v3078_v47, %v3106_v33  ;;  %v3163_v60 = vpop.eup %2117  ;;  %v980_v6 = vmul.f32 %v3585_v3, %v3074_v59  ;;  %v1309_v46 = vadd.f32 %v1293_v20, %v2947_v1  ;;  %2123 = vtanh.f32 %v1310_v18 }
 0x232   :  { %v1267_v23 = vmul.f32 %v2934_v29, %v1266_v35  ;;  %v1307_v4 = vadd.f32 %v1291_v24, %v2869_v27  ;;  %v1225_v54 = vadd.f32 %v2116_v55, %v1224_v14  ;;  %vm1226_vm15 = vweird.f32 %v3103_v31  ;;  %v2155_v29 = vld [vmem:[#allocation3 + $0x70] sm:$0xff] }
 0x233   :  { %v1360_v61 = vsel %vm515_vm2, %v1338_v62, 0.0  ;;  %v3172_v63 = vpop.eup %2119  ;;  %v1308_v11 = vadd.f32 %v1292_v9, %v2932_v52  ;;  %v1268_v7 = vmul.f32 %v2945_v34, %v1266_v35  ;;  %vm1228_vm0 = vmor %vm1226_vm15, %vm1227_vm14  ;;  %v1233_v59 = vor.u32 1.1754944e-38, %v1232_v48 }
 0x234   :  { %1361 = vadd.xlane.f32.xlu0 %v1360_v61  ;;  %v1623_v1 = vsel %vm515_vm2, %v1603_v39, 0.0  ;;  %v1283_v50 = vmul.f32 %v2155_v29, %v979_v0  ;;  %v1229_v27 = vsel %vm1228_vm0, %v2116_v55, %v1225_v54  ;;  %vm1231_vm1 = vcmp.eq.f32.partialorder %v1230_v30, 8.507059e+37  ;;  %v2156_v55 = vld [vmem:[#allocation3 + $0x78] sm:$0xff] }
 0x235   :  { %1624 = vadd.xlane.f32.xlu1 %v1623_v1  ;;  %v1756_v31 = vsel %vm515_vm2, %v1736_v40, 0.0  ;;  %v2122_v22 = vpop.eup %2121  ;;  %2125 = vtanh.f32 %v1309_v46  ;;  %v1299_v58 = vmul.f32 %v1267_v23, %v3586_v42  ;;  %v1234_v52 = vsel %vm1231_vm1, %v1233_v59, %v1229_v27  ;;  %v2157_v1 = vld [vmem:[#allocation3 + $0x60] sm:$0xff]  ;;  %v3591_v27 = vld [vmem:[#allocation22_spill] sm:$0xff] }
 0x236   :  { %v1470_v34 = vmul.f32 %v3078_v47, %v3002_v26  ;;  %1757 = vadd.xlane.f32.xlu2 %v1756_v31  ;;  %2127 = vtanh.f32 %v1307_v4  ;;  %v1235_v56 = vmul.f32 %v2978_v16, %v1234_v52  ;;  %v1236_v21 = vmul.f32 %v2985_v5, %v1234_v52 }
 0x237   :  { %v1238_v0 = vmul.f32 %v2122_v22, %v3146_v28  ;;  %v3185_v51 = vpop.eup %2123  ;;  %v1284_v53 = vmul.f32 %v2156_v55, %v980_v6  ;;  %2129 = vtanh.f32 %v1308_v11  ;;  %v1300_v10 = vmul.f32 %v1268_v7, %v3587_v13 }
 0x238   :  { %v1339_v17 = vmul.f32 %v3163_v60, %v2960_v25  ;;  %v1295_v47 = vmul.f32 %v1235_v56, %v3588_v36  ;;  %v1296_v20 = vmul.f32 %v1236_v21, %v3589_v45  ;;  %v1340_v16 = vmul.f32 %v3172_v63, %v2929_v41 }
 0x239   :  { %v1239_v18 = vsub.f32 1.0, %v1238_v0  ;;  %v1315_v5 = vadd.f32 %v1299_v58, %v1283_v50  ;;  %v1246_v8 = vand.u32 2147483647, %v3146_v28  ;;  %v1248_v24 = vand.u32 2147483648, %v3146_v28  ;;  %v2158_v50 = vld [vmem:[#allocation3 + $0x68] sm:$0xff]  ;;  %v3592_v58 = vld [vmem:[#allocation19_spill] sm:$0xff] }
 0x23a   :  { %v1490_v35 = vsel %vm515_vm2, %v1470_v34, 0.0  ;;  %v1311_v43 = vadd.f32 %v1295_v47, %v3059_v32  ;;  %v1312_v62 = vadd.f32 %v1296_v20, %v3062_v44  ;;  %vm1243_vm3 = vweird.f32 %v2122_v22  ;;  %v3593_v34 = vld [vmem:[#allocation20_spill] sm:$0xff] }
 0x23b   :  { %v1240_v12 = vmul.f32 %v2122_v22, %v1239_v18  ;;  %v3199_v9 = vpop.eup %2125  ;;  %v1316_v48 = vadd.f32 %v1300_v10, %v1284_v53  ;;  %vm1242_vm4 = vweird.f32 %v3146_v28  ;;  %v1363_v39 = vsel %vm515_vm2, %v1339_v17, 0.0 }
 0x23c   :  { %1491 = vadd.xlane.f32.xlu0 %v1490_v35  ;;  %v3205_v14 = vmul.f32 %v3163_v60, %v2969_v15  ;;  %v2128_v30 = vpop.eup %2127  ;;  %2131 = vtanh.f32 %v1311_v43  ;;  %v1366_v32 = vsel %vm515_vm2, %v1340_v16, 0.0  ;;  %v3210_v44 = vmul.f32 %v3185_v51, %v3068_v2  ;;  %vm1244_vm5 = vmor %vm1242_vm4, %vm1243_vm3 }
 0x23d   :  { %v1241_v40 = vadd.f32 %v2122_v22, %v1240_v12  ;;  %1364 = vadd.xlane.f32.xlu1 %v1363_v39  ;;  %v3212_v3 = vpop.eup %2129  ;;  %2133 = vtanh.f32 %v1315_v5  ;;  %v1249_v28 = vor.u32 1.1754944e-38, %v1248_v24  ;;  %vm1247_vm6 = vcmp.eq.f32.partialorder %v1246_v8, 8.507059e+37 }
 0x23e   :  { %1367 = vadd.xlane.f32.xlu2 %v1366_v32  ;;  %2135 = vtanh.f32 %v1312_v62  ;;  %v1737_v46 = vmul.f32 %v3108_v38, %v3068_v2  ;;  %v1477_v4 = vmul.f32 %v3185_v51, %v2896_v49  ;;  %v3220_v54 = vmul.f32 %v2128_v30, %v2960_v25  ;;  %v3590_v38 = vld [vmem:[#allocation21_spill] sm:$0xff] }
 0x23f   :  { %v1245_v6 = vsel %vm1244_vm5, %v2122_v22, %v1241_v40  ;;  %v3223_v61 = vmul.f32 %v2128_v30, %v3002_v26  ;;  %2137 = vtanh.f32 %v1316_v48  ;;  %v1343_v59 = vmul.f32 %v3199_v9, %v2960_v25 }
 0x240   :  { %v1250_v23 = vsel %vm1247_vm6, %v1249_v28, %v1245_v6  ;;  %v1281_v29 = vmul.f32 %v2157_v1, %v3590_v38  ;;  %v1282_v31 = vmul.f32 %v2158_v50, %v3591_v27  ;;  %v3233_v22 = vmul.f32 %v3212_v3, %v3066_v19 }
 0x241   :  { %v1251_v11 = vmul.f32 %v3047_v37, %v1250_v23  ;;  %v1252_v7 = vmul.f32 %v3070_v57, %v1250_v23  ;;  %v1759_v57 = vsel %vm515_vm2, %v1737_v46, 0.0  ;;  %v3240_v56 = vmul.f32 %v3212_v3, %v3068_v2 }
 0x242   :  { %v2132_v42 = vpop.eup %2131  ;;  %v1511_v0 = vsel %vm515_vm2, %v1477_v4, 0.0  ;;  %v3244_v55 = vmul.f32 %v2128_v30, %v2969_v15  ;;  %v3247_v53 = vmul.f32 %v2128_v30, %v3106_v33  ;;  %v1375_v47 = vsel %vm515_vm2, %v1343_v59, 0.0 }
 0x243   :  { %v1297_v52 = vmul.f32 %v1251_v11, %v3592_v58  ;;  %v1298_v37 = vmul.f32 %v1252_v7, %v3593_v34  ;;  %v2134_v21 = vpop.eup %2133  ;;  %v3250_v13 = vmul.f32 %v2132_v42, %v2960_v25  ;;  %v1344_v20 = vmul.f32 %v3185_v51, %v2929_v41 }
 0x244   :  { %1760 = vadd.xlane.f32.xlu0 %v1759_v57  ;;  %v3252_v10 = vpop.eup %2135  ;;  %v3260_v18 = vmul.f32 %v2134_v21, %v2960_v25  ;;  %v1606_v16 = vmul.f32 %v3172_v63, %v3066_v19  ;;  %v1472_v8 = vmul.f32 %v3163_v60, %v3002_v26  ;;  %v3271_v24 = vmul.f32 %v2132_v42, %v3002_v26 }
 0x245   :  { %v1313_v17 = vadd.f32 %v1297_v52, %v1281_v29  ;;  %v1314_v36 = vadd.f32 %v1298_v37, %v1282_v31  ;;  %1512 = vadd.xlane.f32.xlu1 %v1511_v0  ;;  %v3255_v45 = vpop.eup %2137  ;;  %v3266_v5 = vmul.f32 %v3252_v10, %v3066_v19  ;;  %v3274_v35 = vmul.f32 %v2134_v21, %v3002_v26 }
 0x246   :  { %1376 = vadd.xlane.f32.xlu2 %v1375_v47  ;;  %v3277_v43 = vmul.f32 %v2134_v21, %v2969_v15  ;;  %v3281_v62 = vmul.f32 %v3255_v45, %v3066_v19  ;;  %v1378_v12 = vsel %vm515_vm2, %v1344_v20, 0.0  ;;  %v3285_v48 = vmul.f32 %v2132_v42, %v2969_v15 }
 0x247   :  { %2139 = vtanh.f32 %v1313_v17  ;;  %v3288_v39 = vmul.f32 %v2132_v42, %v3106_v33  ;;  %v1632_v30 = vsel %vm515_vm2, %v1606_v16, 0.0  ;;  %v3293_v40 = vmul.f32 %v3252_v10, %v3068_v2 }
 0x248   :  { %2141 = vtanh.f32 %v1314_v36  ;;  %v3296_v32 = vmul.f32 %v2134_v21, %v3106_v33  ;;  %v1496_v6 = vsel %vm515_vm2, %v1472_v8, 0.0  ;;  %v3301_v46 = vmul.f32 %v3255_v45, %v3068_v2 }
 0x249   :  { %v1473_v59 = vmul.f32 %v3172_v63, %v2896_v49  ;;  %v1610_v50 = vmul.f32 %v3185_v51, %v3066_v19  ;;  %v1476_v58 = vmul.f32 %v3199_v9, %v3002_v26  ;;  %v1739_v52 = vmul.f32 %v3172_v63, %v3068_v2 }
 0x24a   :  { %v1342_v37 = vmul.f32 %v3212_v3, %v2929_v41  ;;  %v1475_v57 = vmul.f32 %v3212_v3, %v2896_v49  ;;  %v1777_v21 = vsel %vm515_vm2, %v3210_v44, 0.0  ;;  %v1771_v0 = vsel %vm515_vm2, %v3240_v56, 0.0 }
 0x24b   :  { %v1499_v27 = vsel %vm515_vm2, %v1473_v59, 0.0  ;;  %v1644_v42 = vsel %vm515_vm2, %v1610_v50, 0.0  ;;  %v1765_v34 = vsel %vm515_vm2, %v1739_v52, 0.0  ;;  %v1635_v3 = vsel %vm515_vm2, %v3244_v55, 0.0 }
 0x24c   :  { %1379 = vadd.xlane.f32.xlu0 %v1378_v12  ;;  %v1346_v44 = vmul.f32 %v3252_v10, %v2929_v41  ;;  %v1381_v17 = vsel %vm515_vm2, %v3250_v13, 0.0  ;;  %v1483_v56 = vmul.f32 %v3255_v45, %v2896_v49  ;;  %v1768_v55 = vsel %vm515_vm2, %v3247_v53, 0.0 }
 0x24d   :  { %v2140_v28 = vpop.eup %2139  ;;  %1633 = vadd.xlane.f32.xlu1 %v1632_v30  ;;  %v1350_v13 = vmul.f32 %v3255_v45, %v2929_v41  ;;  %v1650_v53 = vsel %vm515_vm2, %v3266_v5, 0.0  ;;  %v1514_v12 = vsel %vm515_vm2, %v3271_v24, 0.0  ;;  %v1659_v5 = vsel %vm515_vm2, %v3277_v43, 0.0 }
 0x24e   :  { %v3303_v23 = vpop.eup %2141  ;;  %1497 = vadd.xlane.f32.xlu2 %v1496_v6  ;;  %v3306_v4 = vmul.f32 %v2140_v28, %v2960_v25  ;;  %v3309_v11 = vmul.f32 %v2140_v28, %v3002_v26  ;;  %v3312_v7 = vmul.f32 %v2140_v28, %v2969_v15  ;;  %v3321_v38 = vmul.f32 %v2140_v28, %v3106_v33 }
 0x24f   :  { %v3318_v1 = vmul.f32 %v3303_v23, %v3066_v19  ;;  %v1609_v25 = vmul.f32 %v3199_v9, %v2969_v15  ;;  %v3327_v29 = vmul.f32 %v3303_v23, %v3068_v2  ;;  %v1738_v15 = vmul.f32 %v3163_v60, %v3106_v33 }
 0x250   :  { %v1508_v19 = vsel %vm515_vm2, %v1476_v58, 0.0  ;;  %v1742_v26 = vmul.f32 %v3199_v9, %v3106_v33  ;;  %v1629_v60 = vsel %vm515_vm2, %v3205_v14, 0.0  ;;  %v1372_v2 = vsel %vm515_vm2, %v1342_v37, 0.0 }
 0x251   :  { %v1641_v31 = vsel %vm515_vm2, %v1609_v25, 0.0  ;;  %v1762_v51 = vsel %vm515_vm2, %v1738_v15, 0.0  ;;  %v1502_v33 = vsel %vm515_vm2, %v3223_v61, 0.0  ;;  %v1505_v9 = vsel %vm515_vm2, %v1475_v57, 0.0 }
 0x252   :  { %v1774_v63 = vsel %vm515_vm2, %v1742_v26, 0.0  ;;  %v1369_v14 = vsel %vm515_vm2, %v3220_v54, 0.0  ;;  %v1638_v61 = vsel %vm515_vm2, %v3233_v22, 0.0  ;;  %v1384_v54 = vsel %vm515_vm2, %v1346_v44, 0.0 }
 0x253   :  { %v1529_v36 = vsel %vm515_vm2, %v1483_v56, 0.0  ;;  %v1393_v22 = vsel %vm515_vm2, %v3260_v18, 0.0  ;;  %v1396_v16 = vsel %vm515_vm2, %v1350_v13, 0.0  ;;  %v1479_v18 = vmul.f32 %v3252_v10, %v2896_v49 }
 0x254   :  { %1500 = vadd.xlane.f32.xlu0 %v1499_v27  ;;  %v1662_v24 = vsel %vm515_vm2, %v3281_v62, 0.0  ;;  %v1780_v43 = vsel %vm515_vm2, %v3288_v39, 0.0  ;;  %v1783_v62 = vsel %vm515_vm2, %v3293_v40, 0.0  ;;  %v1481_v39 = vmul.f32 %v3303_v23, %v2896_v49 }
 0x255   :  { %1642 = vadd.xlane.f32.xlu1 %v1641_v31  ;;  %v1517_v25 = vsel %vm515_vm2, %v1479_v18, 0.0  ;;  %v1647_v44 = vsel %vm515_vm2, %v3285_v48, 0.0  ;;  %v3405_v56 = vstv %s1975_s7  ;;  %v3408_v49 = vstv %s1455_s1 }
 0x256   :  { %1645 = vadd.xlane.f32.xlu2 %v1644_v42  ;;  %vm1864_vm7 = vcmask 7168   ;;  %vm1873_vm8 = vcmask 15360   ;;  %vm1882_vm9 = vcmask 23552   ;;  %vm1891_vm10 = vcmask 24576  }
 0x25c   :  { %1509 = vadd.xlane.f32.xlu0 %v1508_v19 }
 0x25d   :  { %1763 = vadd.xlane.f32.xlu1 %v1762_v51 }
 0x25e   :  { %1766 = vadd.xlane.f32.xlu2 %v1765_v34  ;;  %v1526_v34 = vsel %vm515_vm2, %v3274_v35, 0.0 }
 0x264   :  { %1630 = vadd.xlane.f32.xlu0 %v1629_v60 }
 0x265   :  { %1373 = vadd.xlane.f32.xlu1 %v1372_v2 }
 0x266   :  { %1775 = vadd.xlane.f32.xlu2 %v1774_v63 }
 0x26c   :  { %1778 = vadd.xlane.f32.xlu0 %v1777_v21 }
 0x26d   :  { %1503 = vadd.xlane.f32.xlu1 %v1502_v33 }
 0x26e   :  { %1506 = vadd.xlane.f32.xlu2 %v1505_v9  ;;  %v1348_v9 = vmul.f32 %v3303_v23, %v2929_v41  ;;  %v1523_v41 = vsel %vm515_vm2, %v1481_v39, 0.0 }
 0x274   :  { %1370 = vadd.xlane.f32.xlu0 %v1369_v14 }
 0x275   :  { %1772 = vadd.xlane.f32.xlu1 %v1771_v0 }
 0x276   :  { %1636 = vadd.xlane.f32.xlu2 %v1635_v3 }
 0x277   :  { %v1489_v20 = vpop.xlane.xlu2 %1488 }
 0x27c   :  { %1639 = vadd.xlane.f32.xlu0 %v1638_v61 }
 0x27d   :  { %1382 = vadd.xlane.f32.xlu1 %v1381_v17 }
 0x27e   :  { %1385 = vadd.xlane.f32.xlu2 %v1384_v54  ;;  %v1390_v54 = vsel %vm515_vm2, %v1348_v9, 0.0 }
 0x282   :  { %v1356_v47 = vpop.xlane.xlu1 %1355 }
 0x284   :  { %1769 = vadd.xlane.f32.xlu0 %v1768_v55 }
 0x285   :  { %1530 = vadd.xlane.f32.xlu1 %v1529_v36 }
 0x286   :  { %1394 = vadd.xlane.f32.xlu2 %v1393_v22  ;;  %v1353_v8 = vpop.xlane.xlu0 %1352 }
 0x287   :  { %v1399_v30 = vadd.f32 %v1356_v47, %v1353_v8  ;;  %v3410_v47 = vstv %s1976_s27 }
 0x288   :  { %v1619_v6 = vpop.xlane.xlu2 %1618 }
 0x289   :  { %v1400_v59 = vrot.slane %v1399_v30, 4 }
 0x28b   :  { %v1401_v31 = vadd.f32 %v1400_v59, %v1399_v30 }
 0x28c   :  { %1397 = vadd.xlane.f32.xlu0 %v1396_v16 }
 0x28d   :  { %1651 = vadd.xlane.f32.xlu1 %v1650_v53  ;;  %v1402_v19 = vrot.slane %v1401_v31, 2 }
 0x28e   :  { %1515 = vadd.xlane.f32.xlu2 %v1514_v12 }
 0x28f   :  { %v1403_v60 = vadd.f32 %v1402_v19, %v1401_v31 }
 0x290   :  { %v1486_v28 = vpop.xlane.xlu1 %1485 }
 0x291   :  { %v1532_v45 = vadd.f32 %v1489_v20, %v1486_v28  ;;  %v1404_v0 = vrot.slane %v1403_v60, 1 }
 0x293   :  { %v1533_v50 = vrot.slane %v1532_v45, 4  ;;  %v1405_v55 = vadd.f32 %v1404_v0, %v1403_v60 }
 0x294   :  { %1518 = vadd.xlane.f32.xlu0 %v1517_v25 }
 0x295   :  { %v1534_v27 = vadd.f32 %v1533_v50, %v1532_v45  ;;  %1660 = vadd.xlane.f32.xlu1 %v1659_v5  ;;  %v1457_v12 = vadd.f32 %v3408_v49, %v1405_v55  ;;  %v1387_v45 = vsel %vm515_vm2, %v3306_v4, 0.0  ;;  %v1520_v5 = vsel %vm515_vm2, %v3309_v11, 0.0 }
 0x296   :  { %1663 = vadd.xlane.f32.xlu2 %v1662_v24  ;;  %v1622_v42 = vpop.xlane.xlu0 %1621 }
 0x297   :  { %v1665_v10 = vadd.f32 %v1622_v42, %v1619_v6  ;;  %v1535_v58 = vrot.slane %v1534_v27, 2  ;;  %v3415_v6 = vstv %s1977_s28 }
 0x298   :  { %v1755_v15 = vpop.xlane.xlu1 %1754 }
 0x299   :  { %v1359_v52 = vpop.xlane.xlu2 %1358  ;;  %v1666_v51 = vrot.slane %v1665_v10, 4  ;;  %v1536_v26 = vadd.f32 %v1535_v58, %v1534_v27  ;;  %v1653_v27 = vsel %vm515_vm2, %v3312_v7, 0.0 }
 0x29b   :  { %v1667_v37 = vadd.f32 %v1666_v51, %v1665_v10  ;;  %v1537_v21 = vrot.slane %v1536_v26, 1 }
 0x29c   :  { %1527 = vadd.xlane.f32.xlu0 %v1526_v34  ;;  %v1656_v34 = vsel %vm515_vm2, %v3318_v1, 0.0 }
 0x29d   :  { %1781 = vadd.xlane.f32.xlu1 %v1780_v43  ;;  %v1668_v2 = vrot.slane %v1667_v37, 2  ;;  %v1538_v61 = vadd.f32 %v1537_v21, %v1536_v26  ;;  %v1789_v26 = vsel %vm515_vm2, %v3327_v29, 0.0  ;;  %v1792_v43 = vsel %vm515_vm2, %v3296_v32, 0.0 }
 0x29e   :  { %1784 = vadd.xlane.f32.xlu2 %v1783_v62  ;;  %v1752_v63 = vpop.xlane.xlu0 %1751  ;;  %v1786_v29 = vsel %vm515_vm2, %v3321_v38, 0.0  ;;  %v1795_v38 = vsel %vm515_vm2, %v3301_v46, 0.0 }
 0x29f   :  { %v1669_v57 = vadd.f32 %v1668_v2, %v1667_v37  ;;  %v1798_v35 = vadd.f32 %v1755_v15, %v1752_v63  ;;  %v1590_v48 = vadd.f32 %v3405_v56, %v1538_v61 }
 0x2a0   :  { %v1495_v33 = vpop.xlane.xlu1 %1494 }
 0x2a1   :  { %v1628_v14 = vpop.xlane.xlu2 %1627  ;;  %v1799_v3 = vrot.slane %v1798_v35, 4  ;;  %v1670_v40 = vrot.slane %v1669_v57, 1  ;;  %v1865_v25 = vsel %vm1864_vm7, %v1457_v12, %v1590_v48 }
 0x2a3   :  { %v1800_v17 = vadd.f32 %v1799_v3, %v1798_v35  ;;  %v1671_v23 = vadd.f32 %v1670_v40, %v1669_v57 }
 0x2a4   :  { %1648 = vadd.xlane.f32.xlu0 %v1647_v44 }
 0x2a5   :  { %1391 = vadd.xlane.f32.xlu1 %v1390_v54  ;;  %v1801_v36 = vrot.slane %v1800_v17, 2  ;;  %v1723_v28 = vadd.f32 %v3410_v47, %v1671_v23 }
 0x2a6   :  { %1524 = vadd.xlane.f32.xlu2 %v1523_v41 }
 0x2a7   :  { %v1362_v22 = vpop.xlane.xlu0 %1361  ;;  %v1802_v13 = vadd.f32 %v1801_v36, %v1800_v17  ;;  %v1874_v4 = vsel %vm1873_vm8, %v1865_v25, %v1723_v28 }
 0x2a8   :  { %v1406_v20 = vadd.f32 %v1362_v22, %v1359_v52  ;;  %v1625_v16 = vpop.xlane.xlu1 %1624 }
 0x2a9   :  { %v1672_v8 = vadd.f32 %v1628_v14, %v1625_v16  ;;  %v1758_v53 = vpop.xlane.xlu2 %1757  ;;  %v1803_v30 = vrot.slane %v1802_v13, 1 }
 0x2aa   :  { %v1407_v18 = vrot.slane %v1406_v20, 4 }
 0x2ab   :  { %v1673_v59 = vrot.slane %v1672_v8, 4  ;;  %v1804_v50 = vadd.f32 %v1803_v30, %v1802_v13 }
 0x2ac   :  { %1388 = vadd.xlane.f32.xlu0 %v1387_v45  ;;  %v1408_v31 = vadd.f32 %v1407_v18, %v1406_v20 }
 0x2ad   :  { %1521 = vadd.xlane.f32.xlu1 %v1520_v5  ;;  %v1856_v24 = vadd.f32 %v3415_v6, %v1804_v50  ;;  %v1674_v10 = vadd.f32 %v1673_v59, %v1672_v8 }
 0x2ae   :  { %1654 = vadd.xlane.f32.xlu2 %v1653_v27  ;;  %v1409_v7 = vrot.slane %v1408_v31, 2 }
 0x2af   :  { %v1492_v42 = vpop.xlane.xlu0 %1491  ;;  %v1883_v58 = vsel %vm1882_vm9, %v1874_v4, %v1856_v24  ;;  %v1675_v51 = vrot.slane %v1674_v10, 2 }
 0x2b0   :  { %v1539_v15 = vadd.f32 %v1495_v33, %v1492_v42  ;;  %v1365_v52 = vpop.xlane.xlu1 %1364  ;;  %1892 = vst.msk [vmem:[%s3537_s10] sm:$0x1] %vm1891_vm10, %v1883_v58  ;;  %v1410_v62 = vadd.f32 %v1409_v7, %v1408_v31 }
 0x2b1   :  { %v1368_v11 = vpop.xlane.xlu2 %1367  ;;  %v1676_v2 = vadd.f32 %v1675_v51, %v1674_v10 }
 0x2b2   :  { %v1540_v19 = vrot.slane %v1539_v15, 4  ;;  %v1411_v9 = vrot.slane %v1410_v62, 1  ;;  %v1413_v18 = vadd.f32 %v1368_v11, %v1365_v52 }
 0x2b3   :  { %v1677_v39 = vrot.slane %v1676_v2, 1 }
 0x2b4   :  { %v1541_v37 = vadd.f32 %v1540_v19, %v1539_v15  ;;  %1657 = vadd.xlane.f32.xlu0 %v1656_v34  ;;  %v1412_v32 = vadd.f32 %v1411_v9, %v1410_v62  ;;  %v1414_v45 = vrot.slane %v1413_v18, 4 }
 0x2b5   :  { %1790 = vadd.xlane.f32.xlu1 %v1789_v26  ;;  %v1678_v44 = vadd.f32 %v1677_v39, %v1676_v2 }
 0x2b6   :  { %v1542_v60 = vrot.slane %v1541_v37, 2  ;;  %1793 = vadd.xlane.f32.xlu2 %v1792_v43  ;;  %v1458_v36 = vadd.f32 %v3408_v49, %v1412_v32  ;;  %v1415_v31 = vadd.f32 %v1414_v45, %v1413_v18 }
 0x2b7   :  { %v1761_v63 = vpop.xlane.xlu0 %1760  ;;  %v1724_v22 = vadd.f32 %v3410_v47, %v1678_v44 }
 0x2b8   :  { %v1543_v57 = vadd.f32 %v1542_v60, %v1541_v37  ;;  %v1805_v21 = vadd.f32 %v1761_v63, %v1758_v53  ;;  %v1513_v35 = vpop.xlane.xlu1 %1512  ;;  %v1416_v51 = vrot.slane %v1415_v31, 2 }
 0x2b9   :  { %v1377_v33 = vpop.xlane.xlu2 %1376 }
 0x2ba   :  { %v1544_v1 = vrot.slane %v1543_v57, 1  ;;  %v1806_v14 = vrot.slane %v1805_v21, 4  ;;  %v1417_v2 = vadd.f32 %v1416_v51, %v1415_v31 }
 0x2bc   :  { %v1545_v0 = vadd.f32 %v1544_v1, %v1543_v57  ;;  %v1807_v3 = vadd.f32 %v1806_v14, %v1805_v21  ;;  %1787 = vadd.xlane.f32.xlu0 %v1786_v29  ;;  %v1418_v29 = vrot.slane %v1417_v2, 1 }
 0x2be   :  { %v1808_v40 = vrot.slane %v1807_v3, 2  ;;  %v1591_v17 = vadd.f32 %v3405_v56, %v1545_v0 }
 0x2bf   :  { %v1380_v61 = vpop.xlane.xlu0 %1379 }
 0x2c0   :  { %v1809_v54 = vadd.f32 %v1808_v40, %v1807_v3  ;;  %v1634_v41 = vpop.xlane.xlu1 %1633  ;;  %v1866_v48 = vsel %vm1864_vm7, %v1458_v36, %v1591_v17  ;;  %v1427_v59 = vadd.f32 %v1380_v61, %v1377_v33  ;;  %v1419_v36 = vadd.f32 %v1418_v29, %v1417_v2 }
 0x2c1   :  { %v1498_v55 = vpop.xlane.xlu2 %1497  ;;  %v1875_v16 = vsel %vm1873_vm8, %v1866_v48, %v1724_v22 }
 0x2c2   :  { %v1810_v23 = vrot.slane %v1809_v54, 1  ;;  %v1428_v58 = vrot.slane %v1427_v59, 4  ;;  %v1459_v18 = vadd.f32 %v3408_v49, %v1419_v36 }
 0x2c4   :  { %v1811_v13 = vadd.f32 %v1810_v23, %v1809_v54  ;;  %1796 = vadd.xlane.f32.xlu0 %v1795_v38  ;;  %v1429_v11 = vadd.f32 %v1428_v58, %v1427_v59 }
 0x2c6   :  { %v1857_v20 = vadd.f32 %v3415_v6, %v1811_v13  ;;  %v1430_v33 = vrot.slane %v1429_v11, 2 }
 0x2c7   :  { %v1501_v8 = vpop.xlane.xlu0 %1500 }
 0x2c8   :  { %v1884_v53 = vsel %vm1882_vm9, %v1875_v16, %v1857_v20  ;;  %v1546_v12 = vadd.f32 %v1501_v8, %v1498_v55  ;;  %v1643_v30 = vpop.xlane.xlu1 %1642  ;;  %v1431_v40 = vadd.f32 %v1430_v33, %v1429_v11 }
 0x2c9   :  { %1893 = vst.msk [vmem:[%s3537_s10 + $0x1] sm:$0x1] %vm1891_vm10, %v1884_v53  ;;  %v1646_v46 = vpop.xlane.xlu2 %1645 }
 0x2ca   :  { %v1547_v28 = vrot.slane %v1546_v12, 4  ;;  %v1693_v5 = vadd.f32 %v1646_v46, %v1643_v30  ;;  %v1432_v20 = vrot.slane %v1431_v40, 1 }
 0x2cc   :  { %v1548_v25 = vadd.f32 %v1547_v28, %v1546_v12  ;;  %v1694_v7 = vrot.slane %v1693_v5, 4 }
 0x2ce   :  { %v1549_v15 = vrot.slane %v1548_v25, 2  ;;  %v1695_v26 = vadd.f32 %v1694_v7, %v1693_v5 }
 0x2cf   :  { %v1510_v50 = vpop.xlane.xlu0 %1509 }
 0x2d0   :  { %v1560_v27 = vadd.f32 %v1513_v35, %v1510_v50  ;;  %v1764_v24 = vpop.xlane.xlu1 %1763  ;;  %v1550_v37 = vadd.f32 %v1549_v15, %v1548_v25  ;;  %v1696_v1 = vrot.slane %v1695_v26, 2  ;;  %v1433_v25 = vadd.f32 %v1432_v20, %v1431_v40 }
 0x2d1   :  { %v1767_v4 = vpop.xlane.xlu2 %1766 }
 0x2d2   :  { %v1561_v42 = vrot.slane %v1560_v27, 4  ;;  %v1812_v10 = vadd.f32 %v1767_v4, %v1764_v24  ;;  %v1551_v9 = vrot.slane %v1550_v37, 1  ;;  %v1697_v61 = vadd.f32 %v1696_v1, %v1695_v26 }
 0x2d4   :  { %v1813_v19 = vrot.slane %v1812_v10, 4  ;;  %v1562_v34 = vadd.f32 %v1561_v42, %v1560_v27  ;;  %v1552_v44 = vadd.f32 %v1551_v9, %v1550_v37  ;;  %v1698_v8 = vrot.slane %v1697_v61, 1 }
 0x2d6   :  { %v1814_v52 = vadd.f32 %v1813_v19, %v1812_v10  ;;  %v1563_v21 = vrot.slane %v1562_v34, 2  ;;  %v1592_v16 = vadd.f32 %v3405_v56, %v1552_v44  ;;  %v1699_v5 = vadd.f32 %v1698_v8, %v1697_v61 }
 0x2d7   :  { %v1631_v43 = vpop.xlane.xlu0 %1630 }
 0x2d8   :  { %v1679_v62 = vadd.f32 %v1634_v41, %v1631_v43  ;;  %v1374_v60 = vpop.xlane.xlu1 %1373  ;;  %v1815_v63 = vrot.slane %v1814_v52, 2  ;;  %v1564_v3 = vadd.f32 %v1563_v21, %v1562_v34  ;;  %v1867_v50 = vsel %vm1864_vm7, %v1459_v18, %v1592_v16 }
 0x2d9   :  { %v1776_v57 = vpop.xlane.xlu2 %1775  ;;  %v1727_v34 = vadd.f32 %v3410_v47, %v1699_v5 }
 0x2da   :  { %v1680_v35 = vrot.slane %v1679_v62, 4  ;;  %v1816_v14 = vadd.f32 %v1815_v63, %v1814_v52  ;;  %v1565_v38 = vrot.slane %v1564_v3, 1  ;;  %v1461_v52 = vadd.f32 %v3408_v49, %v1433_v25 }
 0x2dc   :  { %v1681_v39 = vadd.f32 %v1680_v35, %v1679_v62  ;;  %v1817_v0 = vrot.slane %v1816_v14, 1  ;;  %v1566_v28 = vadd.f32 %v1565_v38, %v1564_v3 }
 0x2de   :  { %v1682_v32 = vrot.slane %v1681_v39, 2  ;;  %v1818_v23 = vadd.f32 %v1817_v0, %v1816_v14  ;;  %v1594_v7 = vadd.f32 %v3405_v56, %v1566_v28 }
 0x2df   :  { %v1779_v17 = vpop.xlane.xlu0 %1778 }
 0x2e0   :  { %v1683_v54 = vadd.f32 %v1682_v32, %v1681_v39  ;;  %v1826_v41 = vadd.f32 %v1779_v17, %v1776_v57  ;;  %v1504_v55 = vpop.xlane.xlu1 %1503  ;;  %v1858_v46 = vadd.f32 %v3415_v6, %v1818_v23  ;;  %v1869_v26 = vsel %vm1864_vm7, %v1461_v52, %v1594_v7 }
 0x2e1   :  { %v1507_v22 = vpop.xlane.xlu2 %1506 }
 0x2e2   :  { %v1684_v48 = vrot.slane %v1683_v54, 1  ;;  %v1827_v13 = vrot.slane %v1826_v41, 4  ;;  %v1553_v30 = vadd.f32 %v1507_v22, %v1504_v55 }
 0x2e4   :  { %v1685_v53 = vadd.f32 %v1684_v48, %v1683_v54  ;;  %v1828_v12 = vadd.f32 %v1827_v13, %v1826_v41  ;;  %v1554_v42 = vrot.slane %v1553_v30, 4 }
 0x2e6   :  { %v1725_v45 = vadd.f32 %v3410_v47, %v1685_v53  ;;  %v1829_v59 = vrot.slane %v1828_v12, 2  ;;  %v1555_v37 = vadd.f32 %v1554_v42, %v1553_v30 }
 0x2e7   :  { %v1371_v27 = vpop.xlane.xlu0 %1370 }
 0x2e8   :  { %v1876_v24 = vsel %vm1873_vm8, %v1867_v50, %v1725_v45  ;;  %v1830_v31 = vadd.f32 %v1829_v59, %v1828_v12  ;;  %v1420_v4 = vadd.f32 %v1374_v60, %v1371_v27  ;;  %v1773_v10 = vpop.xlane.xlu1 %1772  ;;  %v1878_v60 = vsel %vm1873_vm8, %v1869_v26, %v1727_v34 }
 0x2e9   :  { %v1885_v58 = vsel %vm1882_vm9, %v1876_v24, %v1858_v46  ;;  %v1637_v15 = vpop.xlane.xlu2 %1636  ;;  %v1556_v57 = vrot.slane %v1555_v37, 2 }
 0x2ea   :  { %1894 = vst.msk [vmem:[%s3537_s10 + $0x2] sm:$0x1] %vm1891_vm10, %v1885_v58  ;;  %v1831_v19 = vrot.slane %v1830_v31, 1  ;;  %v1421_v51 = vrot.slane %v1420_v4, 4 }
 0x2eb   :  { %v1557_v14 = vadd.f32 %v1556_v57, %v1555_v37 }
 0x2ec   :  { %v1832_v11 = vadd.f32 %v1831_v19, %v1830_v31  ;;  %v1422_v62 = vadd.f32 %v1421_v51, %v1420_v4 }
 0x2ed   :  { %v1558_v32 = vrot.slane %v1557_v14, 1 }
 0x2ee   :  { %v1860_v43 = vadd.f32 %v3415_v6, %v1832_v11  ;;  %v1423_v9 = vrot.slane %v1422_v62, 2 }
 0x2ef   :  { %v1640_v2 = vpop.xlane.xlu0 %1639  ;;  %v1559_v36 = vadd.f32 %v1558_v32, %v1557_v14 }
 0x2f0   :  { %v1887_v63 = vsel %vm1882_vm9, %v1878_v60, %v1860_v43  ;;  %v1686_v21 = vadd.f32 %v1640_v2, %v1637_v15  ;;  %v1383_v35 = vpop.xlane.xlu1 %1382  ;;  %v1424_v29 = vadd.f32 %v1423_v9, %v1422_v62 }
 0x2f1   :  { %1896 = vst.msk [vmem:[%s3537_s10 + $0x4] sm:$0x1] %vm1891_vm10, %v1887_v63  ;;  %v1386_v33 = vpop.xlane.xlu2 %1385  ;;  %v1593_v20 = vadd.f32 %v3405_v56, %v1559_v36 }
 0x2f2   :  { %v1687_v1 = vrot.slane %v1686_v21, 4  ;;  %v1425_v54 = vrot.slane %v1424_v29, 1  ;;  %v1434_v24 = vadd.f32 %v1386_v33, %v1383_v35 }
 0x2f4   :  { %v1688_v39 = vadd.f32 %v1687_v1, %v1686_v21  ;;  %v1426_v38 = vadd.f32 %v1425_v54, %v1424_v29  ;;  %v1435_v42 = vrot.slane %v1434_v24, 4 }
 0x2f6   :  { %v1689_v0 = vrot.slane %v1688_v39, 2  ;;  %v1460_v30 = vadd.f32 %v3408_v49, %v1426_v38  ;;  %v1436_v7 = vadd.f32 %v1435_v42, %v1434_v24 }
 0x2f7   :  { %v1770_v3 = vpop.xlane.xlu0 %1769 }
 0x2f8   :  { %v1690_v40 = vadd.f32 %v1689_v0, %v1688_v39  ;;  %v1819_v44 = vadd.f32 %v1773_v10, %v1770_v3  ;;  %v3474_v61 = vpop.xlane.xlu1 %1530  ;;  %v1868_v46 = vsel %vm1864_vm7, %v1460_v30, %v1593_v20  ;;  %v1437_v11 = vrot.slane %v1436_v7, 2 }
 0x2f9   :  { %v3476_v17 = vpop.xlane.xlu2 %1394 }
 0x2fa   :  { %v1691_v41 = vrot.slane %v1690_v40, 1  ;;  %v1820_v55 = vrot.slane %v1819_v44, 4  ;;  %v1438_v2 = vadd.f32 %v1437_v11, %v1436_v7 }
 0x2fc   :  { %v1821_v23 = vadd.f32 %v1820_v55, %v1819_v44  ;;  %v1692_v22 = vadd.f32 %v1691_v41, %v1690_v40  ;;  %v1439_v1 = vrot.slane %v1438_v2, 1 }
 0x2fe   :  { %v1822_v48 = vrot.slane %v1821_v23, 2  ;;  %v1726_v53 = vadd.f32 %v3410_v47, %v1692_v22  ;;  %v1440_v44 = vadd.f32 %v1439_v1, %v1438_v2 }
 0x2ff   :  { %v3478_v13 = vpop.xlane.xlu0 %1397 }
 0x300   :  { %v1823_v16 = vadd.f32 %v1822_v48, %v1821_v23  ;;  %v1652_v8 = vpop.xlane.xlu1 %1651  ;;  %v1877_v45 = vsel %vm1873_vm8, %v1868_v46, %v1726_v53  ;;  %v1462_v48 = vadd.f32 %v3408_v49, %v1440_v44 }
 0x301   :  { %v1516_v12 = vpop.xlane.xlu2 %1515 }
 0x302   :  { %v1824_v18 = vrot.slane %v1823_v16, 1 }
 0x304   :  { %v1825_v28 = vadd.f32 %v1824_v18, %v1823_v16 }
 0x306   :  { %v1859_v59 = vadd.f32 %v3415_v6, %v1825_v28 }
 0x307   :  { %v1519_v25 = vpop.xlane.xlu0 %1518 }
 0x308   :  { %v1886_v50 = vsel %vm1882_vm9, %v1877_v45, %v1859_v59  ;;  %v1567_v5 = vadd.f32 %v1519_v25, %v1516_v12  ;;  %v1661_v27 = vpop.xlane.xlu1 %1660  ;;  %v1448_v45 = vadd.f32 %v3478_v13, %v3476_v17 }
 0x309   :  { %1895 = vst.msk [vmem:[%s3537_s10 + $0x3] sm:$0x1] %vm1891_vm10, %v1886_v50  ;;  %v1664_v31 = vpop.xlane.xlu2 %1663 }
 0x30a   :  { %v1568_v4 = vrot.slane %v1567_v5, 4  ;;  %v1714_v46 = vadd.f32 %v1664_v31, %v1661_v27  ;;  %v1449_v27 = vrot.slane %v1448_v45, 4 }
 0x30c   :  { %v1569_v10 = vadd.f32 %v1568_v4, %v1567_v5  ;;  %v1715_v42 = vrot.slane %v1714_v46, 4 }
 0x30e   :  { %v1570_v34 = vrot.slane %v1569_v10, 2  ;;  %v1716_v7 = vadd.f32 %v1715_v42, %v1714_v46 }
 0x30f   :  { %v1528_v58 = vpop.xlane.xlu0 %1527 }
 0x310   :  { %v1782_v15 = vpop.xlane.xlu1 %1781  ;;  %v1571_v26 = vadd.f32 %v1570_v34, %v1569_v10  ;;  %v1581_v53 = vadd.f32 %v3474_v61, %v1528_v58 }
 0x311   :  { %v1785_v19 = vpop.xlane.xlu2 %1784 }
 0x312   :  { %v1833_v51 = vadd.f32 %v1785_v19, %v1782_v15  ;;  %v1572_v21 = vrot.slane %v1571_v26, 1  ;;  %v1582_v24 = vrot.slane %v1581_v53, 4 }
 0x314   :  { %v1834_v52 = vrot.slane %v1833_v51, 4  ;;  %v1573_v29 = vadd.f32 %v1572_v21, %v1571_v26  ;;  %v1583_v17 = vadd.f32 %v1582_v24, %v1581_v53 }
 0x316   :  { %v1835_v37 = vadd.f32 %v1834_v52, %v1833_v51  ;;  %v1595_v23 = vadd.f32 %v3405_v56, %v1573_v29  ;;  %v1450_v51 = vadd.f32 %v1449_v27, %v1448_v45 }
 0x317   :  { %v1649_v43 = vpop.xlane.xlu0 %1648 }
 0x318   :  { %v1700_v62 = vadd.f32 %v1652_v8, %v1649_v43  ;;  %v1392_v60 = vpop.xlane.xlu1 %1391  ;;  %v1836_v63 = vrot.slane %v1835_v37, 2  ;;  %v1870_v18 = vsel %vm1864_vm7, %v1462_v48, %v1595_v23  ;;  %v1451_v2 = vrot.slane %v1450_v51, 2 }
 0x319   :  { %v1525_v33 = vpop.xlane.xlu2 %1524 }
 0x31a   :  { %v1701_v57 = vrot.slane %v1700_v62, 4  ;;  %v1837_v35 = vadd.f32 %v1836_v63, %v1835_v37  ;;  %v1584_v37 = vrot.slane %v1583_v17, 2  ;;  %v1452_v29 = vadd.f32 %v1451_v2, %v1450_v51 }
 0x31c   :  { %v1702_v9 = vadd.f32 %v1701_v57, %v1700_v62  ;;  %v1838_v14 = vrot.slane %v1837_v35, 1  ;;  %v1453_v23 = vrot.slane %v1452_v29, 1 }
 0x31e   :  { %v1703_v39 = vrot.slane %v1702_v9, 2  ;;  %v1839_v54 = vadd.f32 %v1838_v14, %v1837_v35  ;;  %v1585_v35 = vadd.f32 %v1584_v37, %v1583_v17 }
 0x31f   :  { %v1389_v0 = vpop.xlane.xlu0 %1388 }
 0x320   :  { %v1704_v3 = vadd.f32 %v1703_v39, %v1702_v9  ;;  %v1441_v32 = vadd.f32 %v1392_v60, %v1389_v0  ;;  %v1522_v40 = vpop.xlane.xlu1 %1521  ;;  %v1861_v20 = vadd.f32 %v3415_v6, %v1839_v54  ;;  %v1717_v60 = vrot.slane %v1716_v7, 2 }
 0x321   :  { %v1574_v41 = vadd.f32 %v1525_v33, %v1522_v40  ;;  %v1655_v8 = vpop.xlane.xlu2 %1654  ;;  %v1586_v44 = vrot.slane %v1585_v35, 1 }
 0x322   :  { %v1705_v55 = vrot.slane %v1704_v3, 1  ;;  %v1442_v36 = vrot.slane %v1441_v32, 4  ;;  %v1718_v1 = vadd.f32 %v1717_v60, %v1716_v7 }
 0x323   :  { %v1575_v22 = vrot.slane %v1574_v41, 4 }
 0x324   :  { %v1706_v38 = vadd.f32 %v1705_v55, %v1704_v3  ;;  %v1443_v30 = vadd.f32 %v1442_v36, %v1441_v32  ;;  %v1719_v36 = vrot.slane %v1718_v1, 1 }
 0x325   :  { %v1576_v16 = vadd.f32 %v1575_v22, %v1574_v41 }
 0x326   :  { %v1728_v12 = vadd.f32 %v3410_v47, %v1706_v38  ;;  %v1444_v61 = vrot.slane %v1443_v30, 2 }
 0x327   :  { %v1658_v28 = vpop.xlane.xlu0 %1657  ;;  %v1577_v25 = vrot.slane %v1576_v16, 2 }
 0x328   :  { %v1879_v59 = vsel %vm1873_vm8, %v1870_v18, %v1728_v12  ;;  %v1707_v50 = vadd.f32 %v1658_v28, %v1655_v8  ;;  %v1791_v58 = vpop.xlane.xlu1 %1790  ;;  %v1445_v13 = vadd.f32 %v1444_v61, %v1443_v30  ;;  %v1720_v12 = vadd.f32 %v1719_v36, %v1718_v1 }
 0x329   :  { %v1888_v5 = vsel %vm1882_vm9, %v1879_v59, %v1861_v20  ;;  %v1578_v31 = vadd.f32 %v1577_v25, %v1576_v16  ;;  %v1794_v14 = vpop.xlane.xlu2 %1793  ;;  %v1587_v16 = vadd.f32 %v1586_v44, %v1585_v35  ;;  %v1454_v30 = vadd.f32 %v1453_v23, %v1452_v29 }
 0x32a   :  { %1897 = vst.msk [vmem:[%s3537_s10 + $0x5] sm:$0x1] %vm1891_vm10, %v1888_v5  ;;  %v1708_v4 = vrot.slane %v1707_v50, 4  ;;  %v1446_v26 = vrot.slane %v1445_v13, 1  ;;  %v1730_v59 = vadd.f32 %v3410_v47, %v1720_v12 }
 0x32b   :  { %v1579_v34 = vrot.slane %v1578_v31, 1  ;;  %v1597_v28 = vadd.f32 %v3405_v56, %v1587_v16  ;;  %v1464_v25 = vadd.f32 %v3408_v49, %v1454_v30 }
 0x32c   :  { %v1709_v10 = vadd.f32 %v1708_v4, %v1707_v50  ;;  %v1447_v33 = vadd.f32 %v1446_v26, %v1445_v13 }
 0x32d   :  { %v1580_v63 = vadd.f32 %v1579_v34, %v1578_v31  ;;  %v1872_v5 = vsel %vm1864_vm7, %v1464_v25, %v1597_v28 }
 0x32e   :  { %v1710_v15 = vrot.slane %v1709_v10, 2  ;;  %v1463_v54 = vadd.f32 %v3408_v49, %v1447_v33  ;;  %v1881_v61 = vsel %vm1873_vm8, %v1872_v5, %v1730_v59 }
 0x32f   :  { %v1788_v19 = vpop.xlane.xlu0 %1787  ;;  %v1596_v0 = vadd.f32 %v3405_v56, %v1580_v63 }
 0x330   :  { %v1711_v52 = vadd.f32 %v1710_v15, %v1709_v10  ;;  %v1840_v11 = vadd.f32 %v1791_v58, %v1788_v19 }
 0x331   :  { %v1871_v22 = vsel %vm1864_vm7, %v1463_v54, %v1596_v0 }
 0x332   :  { %v1712_v43 = vrot.slane %v1711_v52, 1  ;;  %v1841_v62 = vrot.slane %v1840_v11, 4 }
 0x334   :  { %v1842_v57 = vadd.f32 %v1841_v62, %v1840_v11  ;;  %v1713_v21 = vadd.f32 %v1712_v43, %v1711_v52 }
 0x336   :  { %v1843_v9 = vrot.slane %v1842_v57, 2  ;;  %v1729_v40 = vadd.f32 %v3410_v47, %v1713_v21 }
 0x337   :  { %v1797_v39 = vpop.xlane.xlu0 %1796 }
 0x338   :  { %v1844_v3 = vadd.f32 %v1843_v9, %v1842_v57  ;;  %v1847_v32 = vadd.f32 %v1797_v39, %v1794_v14  ;;  %v1880_v20 = vsel %vm1873_vm8, %v1871_v22, %v1729_v40 }
 0x33a   :  { %v1845_v41 = vrot.slane %v1844_v3, 1  ;;  %v1848_v55 = vrot.slane %v1847_v32, 4 }
 0x33c   :  { %v1846_v38 = vadd.f32 %v1845_v41, %v1844_v3  ;;  %v1849_v48 = vadd.f32 %v1848_v55, %v1847_v32 }
 0x33e   :  { %v1862_v8 = vadd.f32 %v3415_v6, %v1846_v38  ;;  %v1850_v53 = vrot.slane %v1849_v48, 2 }
 0x340   :  { %v1889_v18 = vsel %vm1882_vm9, %v1880_v20, %v1862_v8  ;;  %v1851_v46 = vadd.f32 %v1850_v53, %v1849_v48 }
 0x341   :  { %1898 = vst.msk [vmem:[%s3537_s10 + $0x6] sm:$0x1] %vm1891_vm10, %v1889_v18 }
 0x342   :  { %v1852_v45 = vrot.slane %v1851_v46, 1 }
 0x344   :  { %v1853_v50 = vadd.f32 %v1852_v45, %v1851_v46 }
 0x346   :  { %v1863_v24 = vadd.f32 %v3415_v6, %v1853_v50 }
 0x348   :  { %v1890_v4 = vsel %vm1882_vm9, %v1881_v61, %v1863_v24 }
 0x349   :  { %1899 = vst.msk [vmem:[%s3537_s10 + $0x7] sm:$0x1] %vm1891_vm10, %v1890_v4 }
 0x34a   :  { %1904 = vsyncpa [#allocation4], 1 }
 0x34b   :  { %1905 = vsyncpa [#allocation7], 1 }
 0x34c   :  { %1906 = vsyncpa [#allocation5], 1 }

</bundles_post_ra>
